<compile_context>
chip_gen: v7x
topology: tpu7x:2x2x1
jax: 0.10.0
libtpu: 0.0.40
codegen_flags: <defaults>
</compile_context>

<pallas_src>
import numpy as np
import jax
import jax.numpy as jnp
from jax import lax
from jax.experimental import pallas as pl
from jax.experimental.pallas import tpu as pltpu

LANES = 128  # lane-dense channel padding target


def make_basic_block_kernel(H, W, Cp, TR):
    HW = H * W
    P0 = 2 * W              # first interior row of the flat padded buffers
    R = HW + 4 * W          # rows in each flat padded buffer
    CHUNK = TR + 2 * W      # per-kx column chunk (covers ky = 0, 1, 2)
    n_tiles = HW // TR

    def kernel(x_ref, w1_ref, w2_ref, bn_ref, out_ref, pad1_ref, pad2_ref):
        # x_ref  : (1, HW, Cp)  f32   one image, channels zero-padded to Cp
        # w1_ref : (9, Cp, Cp)  bf16  conv1 taps (ky*3+kx, Cin_pad, Cout_pad)
        # w2_ref : (9, Cp, Cp)  bf16  conv2 taps
        # bn_ref : (4, Cp)      f32   rows = [scale1, bias1, scale2, bias2]
        # out_ref: (1, HW, Cp)  f32
        # pad1/2 : (R, Cp)      f32   flat, vertically zero-padded activations

        # Zero only the vertical pad rows (aligned stores; interiors are fully
        # overwritten below).  Re-done every step so the kernel stays correct
        # when the batch axis is sharded across TensorCores.
        zpad = jnp.zeros((2 * W, Cp), jnp.float32)
        pad1_ref[0:P0, :] = zpad
        pad1_ref[P0 + HW:R, :] = zpad
        pad2_ref[0:P0, :] = zpad
        pad2_ref[P0 + HW:R, :] = zpad

        # conv1 input: x written once with a tile-aligned store.
        pad1_ref[P0:P0 + HW, :] = x_ref[0]

        s1 = bn_ref[0:1, :]
        b1 = bn_ref[1:2, :]
        s2 = bn_ref[2:3, :]
        b2 = bn_ref[3:4, :]

        def edge_mask(edge_col):
            # Output-column mask (valid for every ky because TR % W == 0).
            jj = lax.broadcasted_iota(jnp.int32, (CHUNK, Cp), 0) % W
            return jj == edge_col

        def conv3x3_tile(pad_ref, w_ref, t):
            """One (TR, Cp) output row tile of a 3x3 'same' convolution.

            All 9 taps are chained into one register accumulation (no VMEM
            accumulator round trips); the ky shifts are free vreg-aligned
            slices of the hoisted per-kx column chunk.
            """
            acc = None
            for kx in range(3):
                start = P0 + t * TR - W + (kx - 1)
                chunk = pad_ref[start:start + CHUNK, :].astype(jnp.bfloat16)
                if kx == 0:        # left neighbour column: invalid at x == 0
                    chunk = jnp.where(edge_mask(0), jnp.zeros_like(chunk), chunk)
                elif kx == 2:      # right neighbour column: invalid at x == W-1
                    chunk = jnp.where(edge_mask(W - 1), jnp.zeros_like(chunk), chunk)
                for ky in range(3):
                    patch = chunk[ky * W:ky * W + TR, :]
                    d = jnp.dot(patch, w_ref[ky * 3 + kx],
                                preferred_element_type=jnp.float32)
                    acc = d if acc is None else acc + d
            return acc

        # ---- conv1 -> bn1 (folded) -> relu, row tile by row tile ----
        for t in range(n_tiles):
            h1 = jnp.maximum(conv3x3_tile(pad1_ref, w1_ref, t) * s1 + b1, 0.0)
            pad2_ref[P0 + t * TR:P0 + (t + 1) * TR, :] = h1   # aligned store

        # ---- conv2 -> bn2 (folded) -> +identity -> relu ----
        for t in range(n_tiles):
            h2 = conv3x3_tile(pad2_ref, w2_ref, t) * s2 + b2
            ident = x_ref[0, t * TR:(t + 1) * TR, :]
            out_ref[0, t * TR:(t + 1) * TR, :] = jnp.maximum(h2 + ident, 0.0)

    return kernel


def basic_block_pallas(x_nchw, w1_oihw, bn1, w2_oihw, bn2, eps=1e-5):
    """Fused BasicBlock forward (stride=1, downsample=None), PyTorch layouts.

    x_nchw : (N, C, H, W) float32
    w*_oihw: (C, C, 3, 3) float32 (PyTorch Conv2d weight layout, bias=False)
    bn*    : (gamma, beta, running_mean, running_var), each (C,)
    Returns (N, C, H, W) float32.
    """
    N, Cin, H, W = x_nchw.shape
    Cout = w1_oihw.shape[0]
    assert Cin == Cout, "identity skip requires in_channel == out_channel"
    assert W % 8 == 0, "W must be a multiple of 8 for tile-aligned stores"
    HW = H * W

    # Row-tile size: keeps the live f32 accumulator at <=16 vregs.
    TR = HW if HW <= 128 else max(W, (128 // W) * W)
    assert HW % TR == 0 and TR % W == 0

    # Channel padding: 128 matches v5e's MXU; >=256 multiples fill v6e/v7x.
    if Cout <= LANES:
        Cp = LANES
    else:
        Cp = ((Cout + 255) // 256) * 256

    # ---- layout plumbing (wrapper side): NCHW -> NHWC -> channel-pad -> flat.
    x_nhwc = jnp.transpose(x_nchw, (0, 2, 3, 1))
    x_flat = jnp.pad(x_nhwc, ((0, 0), (0, 0), (0, 0), (0, Cp - Cin)))
    x_flat = x_flat.reshape(N, HW, Cp).astype(jnp.float32)

    # OIHW -> HWIO -> (tap, Cin, Cout), zero-padded to (9, Cp, Cp), bf16 (MXU).
    def prep_w(w):
        w_tap = jnp.transpose(w, (2, 3, 1, 0)).reshape(9, Cin, Cout)
        return jnp.pad(w_tap, ((0, 0), (0, Cp - Cin), (0, Cp - Cout))
                       ).astype(jnp.bfloat16)

    w1p, w2p = prep_w(w1_oihw), prep_w(w2_oihw)

    # Fold BatchNorm (inference): y = x * scale + bias ; pad channels with 0.
    def fold_bn(bn):
        g, b, m, v = bn
        s = g / jnp.sqrt(v + eps)
        return s, b - m * s

    s1, b1 = fold_bn(bn1)
    s2, b2 = fold_bn(bn2)
    bn_params = jnp.stack([
        jnp.pad(s1, (0, Cp - Cout)), jnp.pad(b1, (0, Cp - Cout)),
        jnp.pad(s2, (0, Cp - Cout)), jnp.pad(b2, (0, Cp - Cout)),
    ]).astype(jnp.float32)

    kernel = make_basic_block_kernel(H, W, Cp, TR)
    R = HW + 4 * W

    out_flat = pl.pallas_call(
        kernel,
        out_shape=jax.ShapeDtypeStruct((N, HW, Cp), jnp.float32),
        grid_spec=pltpu.PrefetchScalarGridSpec(
            num_scalar_prefetch=0,
            grid=(N,),
            in_specs=[
                pl.BlockSpec((1, HW, Cp), lambda n: (n, 0, 0)),   # x (read once)
                pl.BlockSpec((9, Cp, Cp), lambda n: (0, 0, 0)),   # conv1 taps
                pl.BlockSpec((9, Cp, Cp), lambda n: (0, 0, 0)),   # conv2 taps
                pl.BlockSpec((4, Cp), lambda n: (0, 0)),          # folded BN
            ],
            out_specs=pl.BlockSpec((1, HW, Cp), lambda n: (n, 0, 0)),
            scratch_shapes=[
                pltpu.VMEM((R, Cp), jnp.float32),   # flat padded conv1 input
                pltpu.VMEM((R, Cp), jnp.float32),   # flat padded conv2 input
            ],
        ),
        # x block n is fully consumed before out block n is written, and the
        # shapes match, so reuse the same HBM allocation for input and output.
        input_output_aliases={0: 0},
        # Batch images are independent: parallel lets v7x shard across 2 TCs.
        compiler_params=pltpu.CompilerParams(
            dimension_semantics=("parallel",),
            vmem_limit_bytes=32 * 1024 * 1024),
    )(x_flat, w1p, w2p, bn_params)

    # Drop the channel padding and return NCHW like the PyTorch module.
    out_nhwc = out_flat[:, :, :Cout].reshape(N, H, W, Cout)
    return jnp.transpose(out_nhwc, (0, 3, 1, 2))


def reference_forward(x_nchw, w1_oihw, bn1, w2_oihw, bn2, eps=1e-5):
    """Pure-JAX reference (inference-mode BN), PyTorch NCHW / OIHW layouts."""
    conv = lambda a, w: jax.lax.conv_general_dilated(
        a, w, window_strides=(1, 1), padding="SAME",
        dimension_numbers=("NCHW", "OIHW", "NCHW"),
        precision=jax.lax.Precision.HIGHEST)

    def bn(h, p):
        g, b, m, v = (t.reshape(1, -1, 1, 1) for t in p)
        return (h - m) / jnp.sqrt(v + eps) * g + b

    h = jnp.maximum(bn(conv(x_nchw, w1_oihw), bn1), 0.0)
    h = bn(conv(h, w2_oihw), bn2)
    return jnp.maximum(h + x_nchw, 0.0)


if __name__ == "__main__":
    N, C, H, W = 2, 4, 16, 16   # BasicBlock(in_channel=4, out_channel=4), x: (2,4,16,16)
    key = jax.random.PRNGKey(0)
    ks = jax.random.split(key, 9)

    x = jax.random.normal(ks[0], (N, C, H, W), dtype=jnp.float32)

    # Deterministic synthetic parameters (shapes from BasicBlock.__init__).
    w1 = 0.1 * jax.random.normal(ks[1], (C, C, 3, 3), dtype=jnp.float32)   # OIHW
    w2 = 0.1 * jax.random.normal(ks[2], (C, C, 3, 3), dtype=jnp.float32)   # OIHW
    bn1 = (1.0 + 0.1 * jax.random.normal(ks[3], (C,), jnp.float32),        # gamma
           0.1 * jax.random.normal(ks[4], (C,), jnp.float32),              # beta
           0.1 * jax.random.normal(ks[5], (C,), jnp.float32),              # running_mean
           1.0 + 0.1 * jax.random.uniform(ks[6], (C,), jnp.float32))       # running_var
    bn2 = (1.0 + 0.1 * jax.random.normal(ks[7], (C,), jnp.float32),
           0.1 * jax.random.normal(ks[8], (C,), jnp.float32),
           jnp.zeros((C,), jnp.float32),
           jnp.ones((C,), jnp.float32))

    out = jax.block_until_ready(basic_block_pallas(x, w1, bn1, w2, bn2))
    ref = jax.block_until_ready(reference_forward(x, w1, bn1, w2, bn2))

    # Kernel uses single-pass bf16 MXU matmuls (f32 accumulation), so compare
    # with a correspondingly looser tolerance than a full-f32 implementation.
    np.testing.assert_allclose(np.asarray(out), np.asarray(ref),
                               rtol=5e-2, atol=5e-2)

    print("KERNEL_OK")
</pallas_src>

<mosaic_0001>
module attributes {stable_mosaic.version = 11 : i64} {
  func.func @kernel(%arg0: i32, %arg1: memref<1x256x128xf32, #tpu.memory_space<vmem>>, %arg2: memref<9x128x128xbf16, #tpu.memory_space<vmem>>, %arg3: memref<9x128x128xbf16, #tpu.memory_space<vmem>>, %arg4: memref<4x128xf32, #tpu.memory_space<vmem>>, %arg5: memref<1x256x128xf32, #tpu.memory_space<vmem>>, %arg6: memref<320x128xf32, #tpu.memory_space<vmem>>, %arg7: memref<320x128xf32, #tpu.memory_space<vmem>>) attributes {dimension_semantics = [#tpu.dimension_semantics<parallel>], iteration_bounds = array<i64: 2>, scalar_prefetch = 0 : i64, scratch_operands = 2 : i64, tpu.core_type = #tpu.core_type<tc>, window_params = [{transform_indices = @transform_0, window_bounds = array<i64: 1, 256, 128>}, {pipeline_mode = #tpu.pipeline_mode<synchronous>, transform_indices = @transform_1, window_bounds = array<i64: 9, 128, 128>}, {pipeline_mode = #tpu.pipeline_mode<synchronous>, transform_indices = @transform_2, window_bounds = array<i64: 9, 128, 128>}, {pipeline_mode = #tpu.pipeline_mode<synchronous>, transform_indices = @transform_3, window_bounds = array<i64: 4, 128>}, {transform_indices = @transform_4, window_bounds = array<i64: 1, 256, 128>}]} {
    %cst = arith.constant 0.000000e+00 : f32
    %0 = vector.broadcast %cst : f32 to vector<32x128xf32>
    %c0 = arith.constant 0 : index
    %c0_0 = arith.constant 0 : index
    %1 = vector.load %arg6[%c0, %c0_0] : memref<320x128xf32, #tpu.memory_space<vmem>>, vector<32x128xf32>
    tpu.vector_store %arg6[%c0, %c0_0], %0 {strides = array<i32>} : memref<320x128xf32, #tpu.memory_space<vmem>>, vector<32x128xf32>,
    %c288 = arith.constant 288 : index
    %c0_1 = arith.constant 0 : index
    %2 = vector.load %arg6[%c288, %c0_1] : memref<320x128xf32, #tpu.memory_space<vmem>>, vector<32x128xf32>
    tpu.vector_store %arg6[%c288, %c0_1], %0 {strides = array<i32>} : memref<320x128xf32, #tpu.memory_space<vmem>>, vector<32x128xf32>,
    %c0_2 = arith.constant 0 : index
    %c0_3 = arith.constant 0 : index
    %3 = vector.load %arg7[%c0_2, %c0_3] : memref<320x128xf32, #tpu.memory_space<vmem>>, vector<32x128xf32>
    tpu.vector_store %arg7[%c0_2, %c0_3], %0 {strides = array<i32>} : memref<320x128xf32, #tpu.memory_space<vmem>>, vector<32x128xf32>,
    %c288_4 = arith.constant 288 : index
    %c0_5 = arith.constant 0 : index
    %4 = vector.load %arg7[%c288_4, %c0_5] : memref<320x128xf32, #tpu.memory_space<vmem>>, vector<32x128xf32>
    tpu.vector_store %arg7[%c288_4, %c0_5], %0 {strides = array<i32>} : memref<320x128xf32, #tpu.memory_space<vmem>>, vector<32x128xf32>,
    %c0_6 = arith.constant 0 : index
    %c0_7 = arith.constant 0 : index
    %c0_8 = arith.constant 0 : index
    %5 = vector.load %arg1[%c0_6, %c0_7, %c0_8] : memref<1x256x128xf32, #tpu.memory_space<vmem>>, vector<1x256x128xf32>
    %6 = vector.shape_cast %5 : vector<1x256x128xf32> to vector<256x128xf32>
    %c32 = arith.constant 32 : index
    %c0_9 = arith.constant 0 : index
    %7 = vector.load %arg6[%c32, %c0_9] : memref<320x128xf32, #tpu.memory_space<vmem>>, vector<256x128xf32>
    tpu.vector_store %arg6[%c32, %c0_9], %6 {strides = array<i32>} : memref<320x128xf32, #tpu.memory_space<vmem>>, vector<256x128xf32>,
    %c0_10 = arith.constant 0 : index
    %c0_11 = arith.constant 0 : index
    %8 = vector.load %arg4[%c0_10, %c0_11] : memref<4x128xf32, #tpu.memory_space<vmem>>, vector<1x128xf32>
    %c1 = arith.constant 1 : index
    %c0_12 = arith.constant 0 : index
    %9 = vector.load %arg4[%c1, %c0_12] : memref<4x128xf32, #tpu.memory_space<vmem>>, vector<1x128xf32>
    %c2 = arith.constant 2 : index
    %c0_13 = arith.constant 0 : index
    %10 = vector.load %arg4[%c2, %c0_13] : memref<4x128xf32, #tpu.memory_space<vmem>>, vector<1x128xf32>
    %c3 = arith.constant 3 : index
    %c0_14 = arith.constant 0 : index
    %11 = vector.load %arg4[%c3, %c0_14] : memref<4x128xf32, #tpu.memory_space<vmem>>, vector<1x128xf32>
    %c15 = arith.constant 15 : index
    %c0_15 = arith.constant 0 : index
    %12 = vector.load %arg6[%c15, %c0_15] : memref<320x128xf32, #tpu.memory_space<vmem>>, vector<160x128xf32>
    %13 = arith.truncf %12 : vector<160x128xf32> to vector<160x128xbf16>
    %14 = tpu.iota {dimensions = array<i32: 0>} : vector<160x128xi32>
    %c16_i32 = arith.constant 16 : i32
    %c0_i32 = arith.constant 0 : i32
    %15 = arith.cmpi eq, %c16_i32, %c0_i32 : i32
    %c1_i32 = arith.constant 1 : i32
    %16 = arith.select %15, %c1_i32, %c16_i32 : i32
    %17 = vector.broadcast %16 : i32 to vector<160x128xi32>
    %18 = arith.remsi %14, %17 : vector<160x128xi32>
    %c0_i32_16 = arith.constant 0 : i32
    %19 = vector.broadcast %c0_i32_16 : i32 to vector<160x128xi32>
    %20 = arith.cmpi ne, %18, %19 : vector<160x128xi32>
    %c0_i32_17 = arith.constant 0 : i32
    %21 = vector.broadcast %c0_i32_17 : i32 to vector<160x128xi32>
    %22 = arith.cmpi slt, %18, %21 : vector<160x128xi32>
    %c0_i32_18 = arith.constant 0 : i32
    %23 = arith.cmpi slt, %16, %c0_i32_18 : i32
    %24 = vector.broadcast %23 : i1 to vector<160x128xi1>
    %25 = vector.broadcast %24 : vector<160x128xi1> to vector<160x128xi1>
    %26 = arith.xori %22, %25 : vector<160x128xi1>
    %27 = arith.andi %26, %20 : vector<160x128xi1>
    %28 = vector.broadcast %16 : i32 to vector<160x128xi32>
    %29 = arith.addi %18, %28 : vector<160x128xi32>
    %30 = arith.select %27, %29, %18 : vector<160x128xi1>, vector<160x128xi32>
    %c0_i32_19 = arith.constant 0 : i32
    %31 = vector.broadcast %c0_i32_19 : i32 to vector<160x128xi32>
    %32 = arith.cmpi eq, %30, %31 : vector<160x128xi32>
    %cst_20 = arith.constant 0.000000e+00 : bf16
    %33 = vector.broadcast %cst_20 : bf16 to vector<160x128xbf16>
    %34 = arith.select %32, %33, %13 : vector<160x128xi1>, vector<160x128xbf16>
    %35 = vector.extract_strided_slice %34 {offsets = [0, 0], sizes = [128, 128], strides = [1, 1]} : vector<160x128xbf16> to vector<128x128xbf16>
    %c0_21 = arith.constant 0 : index
    %c0_22 = arith.constant 0 : index
    %c0_23 = arith.constant 0 : index
    %36 = vector.load %arg2[%c0_21, %c0_22, %c0_23] : memref<9x128x128xbf16, #tpu.memory_space<vmem>>, vector<1x128x128xbf16>
    %37 = vector.shape_cast %36 : vector<1x128x128xbf16> to vector<128x128xbf16>
    %cst_24 = arith.constant dense<0.000000e+00> : vector<128x128xf32>
    %38 = tpu.matmul %35, %37, %cst_24 {dimension_numbers = #tpu.dot_dimension_numbers<[1], [0], [0], [1], [0, 0, 1, 1], [], []>} : vector<128x128xbf16>, vector<128x128xbf16>, vector<128x128xf32> -> vector<128x128xf32>
    %39 = vector.extract_strided_slice %34 {offsets = [16, 0], sizes = [128, 128], strides = [1, 1]} : vector<160x128xbf16> to vector<128x128xbf16>
    %c3_25 = arith.constant 3 : index
    %c0_26 = arith.constant 0 : index
    %c0_27 = arith.constant 0 : index
    %40 = vector.load %arg2[%c3_25, %c0_26, %c0_27] : memref<9x128x128xbf16, #tpu.memory_space<vmem>>, vector<1x128x128xbf16>
    %41 = vector.shape_cast %40 : vector<1x128x128xbf16> to vector<128x128xbf16>
    %cst_28 = arith.constant dense<0.000000e+00> : vector<128x128xf32>
    %42 = tpu.matmul %39, %41, %cst_28 {dimension_numbers = #tpu.dot_dimension_numbers<[1], [0], [0], [1], [0, 0, 1, 1], [], []>} : vector<128x128xbf16>, vector<128x128xbf16>, vector<128x128xf32> -> vector<128x128xf32>
    %43 = arith.addf %38, %42 : vector<128x128xf32>
    %44 = vector.extract_strided_slice %34 {offsets = [32, 0], sizes = [128, 128], strides = [1, 1]} : vector<160x128xbf16> to vector<128x128xbf16>
    %c6 = arith.constant 6 : index
    %c0_29 = arith.constant 0 : index
    %c0_30 = arith.constant 0 : index
    %45 = vector.load %arg2[%c6, %c0_29, %c0_30] : memref<9x128x128xbf16, #tpu.memory_space<vmem>>, vector<1x128x128xbf16>
    %46 = vector.shape_cast %45 : vector<1x128x128xbf16> to vector<128x128xbf16>
    %cst_31 = arith.constant dense<0.000000e+00> : vector<128x128xf32>
    %47 = tpu.matmul %44, %46, %cst_31 {dimension_numbers = #tpu.dot_dimension_numbers<[1], [0], [0], [1], [0, 0, 1, 1], [], []>} : vector<128x128xbf16>, vector<128x128xbf16>, vector<128x128xf32> -> vector<128x128xf32>
    %48 = arith.addf %43, %47 : vector<128x128xf32>
    %c16 = arith.constant 16 : index
    %c0_32 = arith.constant 0 : index
    %49 = vector.load %arg6[%c16, %c0_32] : memref<320x128xf32, #tpu.memory_space<vmem>>, vector<160x128xf32>
    %50 = arith.truncf %49 : vector<160x128xf32> to vector<160x128xbf16>
    %51 = vector.extract_strided_slice %50 {offsets = [0, 0], sizes = [128, 128], strides = [1, 1]} : vector<160x128xbf16> to vector<128x128xbf16>
    %c1_33 = arith.constant 1 : index
    %c0_34 = arith.constant 0 : index
    %c0_35 = arith.constant 0 : index
    %52 = vector.load %arg2[%c1_33, %c0_34, %c0_35] : memref<9x128x128xbf16, #tpu.memory_space<vmem>>, vector<1x128x128xbf16>
    %53 = vector.shape_cast %52 : vector<1x128x128xbf16> to vector<128x128xbf16>
    %cst_36 = arith.constant dense<0.000000e+00> : vector<128x128xf32>
    %54 = tpu.matmul %51, %53, %cst_36 {dimension_numbers = #tpu.dot_dimension_numbers<[1], [0], [0], [1], [0, 0, 1, 1], [], []>} : vector<128x128xbf16>, vector<128x128xbf16>, vector<128x128xf32> -> vector<128x128xf32>
    %55 = arith.addf %48, %54 : vector<128x128xf32>
    %56 = vector.extract_strided_slice %50 {offsets = [16, 0], sizes = [128, 128], strides = [1, 1]} : vector<160x128xbf16> to vector<128x128xbf16>
    %c4 = arith.constant 4 : index
    %c0_37 = arith.constant 0 : index
    %c0_38 = arith.constant 0 : index
    %57 = vector.load %arg2[%c4, %c0_37, %c0_38] : memref<9x128x128xbf16, #tpu.memory_space<vmem>>, vector<1x128x128xbf16>
    %58 = vector.shape_cast %57 : vector<1x128x128xbf16> to vector<128x128xbf16>
    %cst_39 = arith.constant dense<0.000000e+00> : vector<128x128xf32>
    %59 = tpu.matmul %56, %58, %cst_39 {dimension_numbers = #tpu.dot_dimension_numbers<[1], [0], [0], [1], [0, 0, 1, 1], [], []>} : vector<128x128xbf16>, vector<128x128xbf16>, vector<128x128xf32> -> vector<128x128xf32>
    %60 = arith.addf %55, %59 : vector<128x128xf32>
    %61 = vector.extract_strided_slice %50 {offsets = [32, 0], sizes = [128, 128], strides = [1, 1]} : vector<160x128xbf16> to vector<128x128xbf16>
    %c7 = arith.constant 7 : index
    %c0_40 = arith.constant 0 : index
    %c0_41 = arith.constant 0 : index
    %62 = vector.load %arg2[%c7, %c0_40, %c0_41] : memref<9x128x128xbf16, #tpu.memory_space<vmem>>, vector<1x128x128xbf16>
    %63 = vector.shape_cast %62 : vector<1x128x128xbf16> to vector<128x128xbf16>
    %cst_42 = arith.constant dense<0.000000e+00> : vector<128x128xf32>
    %64 = tpu.matmul %61, %63, %cst_42 {dimension_numbers = #tpu.dot_dimension_numbers<[1], [0], [0], [1], [0, 0, 1, 1], [], []>} : vector<128x128xbf16>, vector<128x128xbf16>, vector<128x128xf32> -> vector<128x128xf32>
    %65 = arith.addf %60, %64 : vector<128x128xf32>
    %c17 = arith.constant 17 : index
    %c0_43 = arith.constant 0 : index
    %66 = vector.load %arg6[%c17, %c0_43] : memref<320x128xf32, #tpu.memory_space<vmem>>, vector<160x128xf32>
    %67 = arith.truncf %66 : vector<160x128xf32> to vector<160x128xbf16>
    %68 = tpu.iota {dimensions = array<i32: 0>} : vector<160x128xi32>
    %c16_i32_44 = arith.constant 16 : i32
    %c0_i32_45 = arith.constant 0 : i32
    %69 = arith.cmpi eq, %c16_i32_44, %c0_i32_45 : i32
    %c1_i32_46 = arith.constant 1 : i32
    %70 = arith.select %69, %c1_i32_46, %c16_i32_44 : i32
    %71 = vector.broadcast %70 : i32 to vector<160x128xi32>
    %72 = arith.remsi %68, %71 : vector<160x128xi32>
    %c0_i32_47 = arith.constant 0 : i32
    %73 = vector.broadcast %c0_i32_47 : i32 to vector<160x128xi32>
    %74 = arith.cmpi ne, %72, %73 : vector<160x128xi32>
    %c0_i32_48 = arith.constant 0 : i32
    %75 = vector.broadcast %c0_i32_48 : i32 to vector<160x128xi32>
    %76 = arith.cmpi slt, %72, %75 : vector<160x128xi32>
    %c0_i32_49 = arith.constant 0 : i32
    %77 = arith.cmpi slt, %70, %c0_i32_49 : i32
    %78 = vector.broadcast %77 : i1 to vector<160x128xi1>
    %79 = vector.broadcast %78 : vector<160x128xi1> to vector<160x128xi1>
    %80 = arith.xori %76, %79 : vector<160x128xi1>
    %81 = arith.andi %80, %74 : vector<160x128xi1>
    %82 = vector.broadcast %70 : i32 to vector<160x128xi32>
    %83 = arith.addi %72, %82 : vector<160x128xi32>
    %84 = arith.select %81, %83, %72 : vector<160x128xi1>, vector<160x128xi32>
    %c15_i32 = arith.constant 15 : i32
    %85 = vector.broadcast %c15_i32 : i32 to vector<160x128xi32>
    %86 = arith.cmpi eq, %84, %85 : vector<160x128xi32>
    %cst_50 = arith.constant 0.000000e+00 : bf16
    %87 = vector.broadcast %cst_50 : bf16 to vector<160x128xbf16>
    %88 = arith.select %86, %87, %67 : vector<160x128xi1>, vector<160x128xbf16>
    %89 = vector.extract_strided_slice %88 {offsets = [0, 0], sizes = [128, 128], strides = [1, 1]} : vector<160x128xbf16> to vector<128x128xbf16>
    %c2_51 = arith.constant 2 : index
    %c0_52 = arith.constant 0 : index
    %c0_53 = arith.constant 0 : index
    %90 = vector.load %arg2[%c2_51, %c0_52, %c0_53] : memref<9x128x128xbf16, #tpu.memory_space<vmem>>, vector<1x128x128xbf16>
    %91 = vector.shape_cast %90 : vector<1x128x128xbf16> to vector<128x128xbf16>
    %cst_54 = arith.constant dense<0.000000e+00> : vector<128x128xf32>
    %92 = tpu.matmul %89, %91, %cst_54 {dimension_numbers = #tpu.dot_dimension_numbers<[1], [0], [0], [1], [0, 0, 1, 1], [], []>} : vector<128x128xbf16>, vector<128x128xbf16>, vector<128x128xf32> -> vector<128x128xf32>
    %93 = arith.addf %65, %92 : vector<128x128xf32>
    %94 = vector.extract_strided_slice %88 {offsets = [16, 0], sizes = [128, 128], strides = [1, 1]} : vector<160x128xbf16> to vector<128x128xbf16>
    %c5 = arith.constant 5 : index
    %c0_55 = arith.constant 0 : index
    %c0_56 = arith.constant 0 : index
    %95 = vector.load %arg2[%c5, %c0_55, %c0_56] : memref<9x128x128xbf16, #tpu.memory_space<vmem>>, vector<1x128x128xbf16>
    %96 = vector.shape_cast %95 : vector<1x128x128xbf16> to vector<128x128xbf16>
    %cst_57 = arith.constant dense<0.000000e+00> : vector<128x128xf32>
    %97 = tpu.matmul %94, %96, %cst_57 {dimension_numbers = #tpu.dot_dimension_numbers<[1], [0], [0], [1], [0, 0, 1, 1], [], []>} : vector<128x128xbf16>, vector<128x128xbf16>, vector<128x128xf32> -> vector<128x128xf32>
    %98 = arith.addf %93, %97 : vector<128x128xf32>
    %99 = vector.extract_strided_slice %88 {offsets = [32, 0], sizes = [128, 128], strides = [1, 1]} : vector<160x128xbf16> to vector<128x128xbf16>
    %c8 = arith.constant 8 : index
    %c0_58 = arith.constant 0 : index
    %c0_59 = arith.constant 0 : index
    %100 = vector.load %arg2[%c8, %c0_58, %c0_59] : memref<9x128x128xbf16, #tpu.memory_space<vmem>>, vector<1x128x128xbf16>
    %101 = vector.shape_cast %100 : vector<1x128x128xbf16> to vector<128x128xbf16>
    %cst_60 = arith.constant dense<0.000000e+00> : vector<128x128xf32>
    %102 = tpu.matmul %99, %101, %cst_60 {dimension_numbers = #tpu.dot_dimension_numbers<[1], [0], [0], [1], [0, 0, 1, 1], [], []>} : vector<128x128xbf16>, vector<128x128xbf16>, vector<128x128xf32> -> vector<128x128xf32>
    %103 = arith.addf %98, %102 : vector<128x128xf32>
    %104 = vector.broadcast %8 : vector<1x128xf32> to vector<128x128xf32>
    %105 = arith.mulf %103, %104 : vector<128x128xf32>
    %106 = vector.broadcast %9 : vector<1x128xf32> to vector<128x128xf32>
    %107 = arith.addf %105, %106 : vector<128x128xf32>
    %cst_61 = arith.constant 0.000000e+00 : f32
    %108 = vector.broadcast %cst_61 : f32 to vector<128x128xf32>
    %109 = arith.maximumf %107, %108 : vector<128x128xf32>
    %c32_62 = arith.constant 32 : index
    %c0_63 = arith.constant 0 : index
    %110 = vector.load %arg7[%c32_62, %c0_63] : memref<320x128xf32, #tpu.memory_space<vmem>>, vector<128x128xf32>
    tpu.vector_store %arg7[%c32_62, %c0_63], %109 {strides = array<i32>} : memref<320x128xf32, #tpu.memory_space<vmem>>, vector<128x128xf32>,
    %c143 = arith.constant 143 : index
    %c0_64 = arith.constant 0 : index
    %111 = vector.load %arg6[%c143, %c0_64] : memref<320x128xf32, #tpu.memory_space<vmem>>, vector<160x128xf32>
    %112 = arith.truncf %111 : vector<160x128xf32> to vector<160x128xbf16>
    %113 = tpu.iota {dimensions = array<i32: 0>} : vector<160x128xi32>
    %c16_i32_65 = arith.constant 16 : i32
    %c0_i32_66 = arith.constant 0 : i32
    %114 = arith.cmpi eq, %c16_i32_65, %c0_i32_66 : i32
    %c1_i32_67 = arith.constant 1 : i32
    %115 = arith.select %114, %c1_i32_67, %c16_i32_65 : i32
    %116 = vector.broadcast %115 : i32 to vector<160x128xi32>
    %117 = arith.remsi %113, %116 : vector<160x128xi32>
    %c0_i32_68 = arith.constant 0 : i32
    %118 = vector.broadcast %c0_i32_68 : i32 to vector<160x128xi32>
    %119 = arith.cmpi ne, %117, %118 : vector<160x128xi32>
    %c0_i32_69 = arith.constant 0 : i32
    %120 = vector.broadcast %c0_i32_69 : i32 to vector<160x128xi32>
    %121 = arith.cmpi slt, %117, %120 : vector<160x128xi32>
    %c0_i32_70 = arith.constant 0 : i32
    %122 = arith.cmpi slt, %115, %c0_i32_70 : i32
    %123 = vector.broadcast %122 : i1 to vector<160x128xi1>
    %124 = vector.broadcast %123 : vector<160x128xi1> to vector<160x128xi1>
    %125 = arith.xori %121, %124 : vector<160x128xi1>
    %126 = arith.andi %125, %119 : vector<160x128xi1>
    %127 = vector.broadcast %115 : i32 to vector<160x128xi32>
    %128 = arith.addi %117, %127 : vector<160x128xi32>
    %129 = arith.select %126, %128, %117 : vector<160x128xi1>, vector<160x128xi32>
    %c0_i32_71 = arith.constant 0 : i32
    %130 = vector.broadcast %c0_i32_71 : i32 to vector<160x128xi32>
    %131 = arith.cmpi eq, %129, %130 : vector<160x128xi32>
    %cst_72 = arith.constant 0.000000e+00 : bf16
    %132 = vector.broadcast %cst_72 : bf16 to vector<160x128xbf16>
    %133 = arith.select %131, %132, %112 : vector<160x128xi1>, vector<160x128xbf16>
    %134 = vector.extract_strided_slice %133 {offsets = [0, 0], sizes = [128, 128], strides = [1, 1]} : vector<160x128xbf16> to vector<128x128xbf16>
    %c0_73 = arith.constant 0 : index
    %c0_74 = arith.constant 0 : index
    %c0_75 = arith.constant 0 : index
    %135 = vector.load %arg2[%c0_73, %c0_74, %c0_75] : memref<9x128x128xbf16, #tpu.memory_space<vmem>>, vector<1x128x128xbf16>
    %136 = vector.shape_cast %135 : vector<1x128x128xbf16> to vector<128x128xbf16>
    %cst_76 = arith.constant dense<0.000000e+00> : vector<128x128xf32>
    %137 = tpu.matmul %134, %136, %cst_76 {dimension_numbers = #tpu.dot_dimension_numbers<[1], [0], [0], [1], [0, 0, 1, 1], [], []>} : vector<128x128xbf16>, vector<128x128xbf16>, vector<128x128xf32> -> vector<128x128xf32>
    %138 = vector.extract_strided_slice %133 {offsets = [16, 0], sizes = [128, 128], strides = [1, 1]} : vector<160x128xbf16> to vector<128x128xbf16>
    %c3_77 = arith.constant 3 : index
    %c0_78 = arith.constant 0 : index
    %c0_79 = arith.constant 0 : index
    %139 = vector.load %arg2[%c3_77, %c0_78, %c0_79] : memref<9x128x128xbf16, #tpu.memory_space<vmem>>, vector<1x128x128xbf16>
    %140 = vector.shape_cast %139 : vector<1x128x128xbf16> to vector<128x128xbf16>
    %cst_80 = arith.constant dense<0.000000e+00> : vector<128x128xf32>
    %141 = tpu.matmul %138, %140, %cst_80 {dimension_numbers = #tpu.dot_dimension_numbers<[1], [0], [0], [1], [0, 0, 1, 1], [], []>} : vector<128x128xbf16>, vector<128x128xbf16>, vector<128x128xf32> -> vector<128x128xf32>
    %142 = arith.addf %137, %141 : vector<128x128xf32>
    %143 = vector.extract_strided_slice %133 {offsets = [32, 0], sizes = [128, 128], strides = [1, 1]} : vector<160x128xbf16> to vector<128x128xbf16>
    %c6_81 = arith.constant 6 : index
    %c0_82 = arith.constant 0 : index
    %c0_83 = arith.constant 0 : index
    %144 = vector.load %arg2[%c6_81, %c0_82, %c0_83] : memref<9x128x128xbf16, #tpu.memory_space<vmem>>, vector<1x128x128xbf16>
    %145 = vector.shape_cast %144 : vector<1x128x128xbf16> to vector<128x128xbf16>
    %cst_84 = arith.constant dense<0.000000e+00> : vector<128x128xf32>
    %146 = tpu.matmul %143, %145, %cst_84 {dimension_numbers = #tpu.dot_dimension_numbers<[1], [0], [0], [1], [0, 0, 1, 1], [], []>} : vector<128x128xbf16>, vector<128x128xbf16>, vector<128x128xf32> -> vector<128x128xf32>
    %147 = arith.addf %142, %146 : vector<128x128xf32>
    %c144 = arith.constant 144 : index
    %c0_85 = arith.constant 0 : index
    %148 = vector.load %arg6[%c144, %c0_85] : memref<320x128xf32, #tpu.memory_space<vmem>>, vector<160x128xf32>
    %149 = arith.truncf %148 : vector<160x128xf32> to vector<160x128xbf16>
    %150 = vector.extract_strided_slice %149 {offsets = [0, 0], sizes = [128, 128], strides = [1, 1]} : vector<160x128xbf16> to vector<128x128xbf16>
    %c1_86 = arith.constant 1 : index
    %c0_87 = arith.constant 0 : index
    %c0_88 = arith.constant 0 : index
    %151 = vector.load %arg2[%c1_86, %c0_87, %c0_88] : memref<9x128x128xbf16, #tpu.memory_space<vmem>>, vector<1x128x128xbf16>
    %152 = vector.shape_cast %151 : vector<1x128x128xbf16> to vector<128x128xbf16>
    %cst_89 = arith.constant dense<0.000000e+00> : vector<128x128xf32>
    %153 = tpu.matmul %150, %152, %cst_89 {dimension_numbers = #tpu.dot_dimension_numbers<[1], [0], [0], [1], [0, 0, 1, 1], [], []>} : vector<128x128xbf16>, vector<128x128xbf16>, vector<128x128xf32> -> vector<128x128xf32>
    %154 = arith.addf %147, %153 : vector<128x128xf32>
    %155 = vector.extract_strided_slice %149 {offsets = [16, 0], sizes = [128, 128], strides = [1, 1]} : vector<160x128xbf16> to vector<128x128xbf16>
    %c4_90 = arith.constant 4 : index
    %c0_91 = arith.constant 0 : index
    %c0_92 = arith.constant 0 : index
    %156 = vector.load %arg2[%c4_90, %c0_91, %c0_92] : memref<9x128x128xbf16, #tpu.memory_space<vmem>>, vector<1x128x128xbf16>
    %157 = vector.shape_cast %156 : vector<1x128x128xbf16> to vector<128x128xbf16>
    %cst_93 = arith.constant dense<0.000000e+00> : vector<128x128xf32>
    %158 = tpu.matmul %155, %157, %cst_93 {dimension_numbers = #tpu.dot_dimension_numbers<[1], [0], [0], [1], [0, 0, 1, 1], [], []>} : vector<128x128xbf16>, vector<128x128xbf16>, vector<128x128xf32> -> vector<128x128xf32>
    %159 = arith.addf %154, %158 : vector<128x128xf32>
    %160 = vector.extract_strided_slice %149 {offsets = [32, 0], sizes = [128, 128], strides = [1, 1]} : vector<160x128xbf16> to vector<128x128xbf16>
    %c7_94 = arith.constant 7 : index
    %c0_95 = arith.constant 0 : index
    %c0_96 = arith.constant 0 : index
    %161 = vector.load %arg2[%c7_94, %c0_95, %c0_96] : memref<9x128x128xbf16, #tpu.memory_space<vmem>>, vector<1x128x128xbf16>
    %162 = vector.shape_cast %161 : vector<1x128x128xbf16> to vector<128x128xbf16>
    %cst_97 = arith.constant dense<0.000000e+00> : vector<128x128xf32>
    %163 = tpu.matmul %160, %162, %cst_97 {dimension_numbers = #tpu.dot_dimension_numbers<[1], [0], [0], [1], [0, 0, 1, 1], [], []>} : vector<128x128xbf16>, vector<128x128xbf16>, vector<128x128xf32> -> vector<128x128xf32>
    %164 = arith.addf %159, %163 : vector<128x128xf32>
    %c145 = arith.constant 145 : index
    %c0_98 = arith.constant 0 : index
    %165 = vector.load %arg6[%c145, %c0_98] : memref<320x128xf32, #tpu.memory_space<vmem>>, vector<160x128xf32>
    %166 = arith.truncf %165 : vector<160x128xf32> to vector<160x128xbf16>
    %167 = tpu.iota {dimensions = array<i32: 0>} : vector<160x128xi32>
    %c16_i32_99 = arith.constant 16 : i32
    %c0_i32_100 = arith.constant 0 : i32
    %168 = arith.cmpi eq, %c16_i32_99, %c0_i32_100 : i32
    %c1_i32_101 = arith.constant 1 : i32
    %169 = arith.select %168, %c1_i32_101, %c16_i32_99 : i32
    %170 = vector.broadcast %169 : i32 to vector<160x128xi32>
    %171 = arith.remsi %167, %170 : vector<160x128xi32>
    %c0_i32_102 = arith.constant 0 : i32
    %172 = vector.broadcast %c0_i32_102 : i32 to vector<160x128xi32>
    %173 = arith.cmpi ne, %171, %172 : vector<160x128xi32>
    %c0_i32_103 = arith.constant 0 : i32
    %174 = vector.broadcast %c0_i32_103 : i32 to vector<160x128xi32>
    %175 = arith.cmpi slt, %171, %174 : vector<160x128xi32>
    %c0_i32_104 = arith.constant 0 : i32
    %176 = arith.cmpi slt, %169, %c0_i32_104 : i32
    %177 = vector.broadcast %176 : i1 to vector<160x128xi1>
    %178 = vector.broadcast %177 : vector<160x128xi1> to vector<160x128xi1>
    %179 = arith.xori %175, %178 : vector<160x128xi1>
    %180 = arith.andi %179, %173 : vector<160x128xi1>
    %181 = vector.broadcast %169 : i32 to vector<160x128xi32>
    %182 = arith.addi %171, %181 : vector<160x128xi32>
    %183 = arith.select %180, %182, %171 : vector<160x128xi1>, vector<160x128xi32>
    %c15_i32_105 = arith.constant 15 : i32
    %184 = vector.broadcast %c15_i32_105 : i32 to vector<160x128xi32>
    %185 = arith.cmpi eq, %183, %184 : vector<160x128xi32>
    %cst_106 = arith.constant 0.000000e+00 : bf16
    %186 = vector.broadcast %cst_106 : bf16 to vector<160x128xbf16>
    %187 = arith.select %185, %186, %166 : vector<160x128xi1>, vector<160x128xbf16>
    %188 = vector.extract_strided_slice %187 {offsets = [0, 0], sizes = [128, 128], strides = [1, 1]} : vector<160x128xbf16> to vector<128x128xbf16>
    %c2_107 = arith.constant 2 : index
    %c0_108 = arith.constant 0 : index
    %c0_109 = arith.constant 0 : index
    %189 = vector.load %arg2[%c2_107, %c0_108, %c0_109] : memref<9x128x128xbf16, #tpu.memory_space<vmem>>, vector<1x128x128xbf16>
    %190 = vector.shape_cast %189 : vector<1x128x128xbf16> to vector<128x128xbf16>
    %cst_110 = arith.constant dense<0.000000e+00> : vector<128x128xf32>
    %191 = tpu.matmul %188, %190, %cst_110 {dimension_numbers = #tpu.dot_dimension_numbers<[1], [0], [0], [1], [0, 0, 1, 1], [], []>} : vector<128x128xbf16>, vector<128x128xbf16>, vector<128x128xf32> -> vector<128x128xf32>
    %192 = arith.addf %164, %191 : vector<128x128xf32>
    %193 = vector.extract_strided_slice %187 {offsets = [16, 0], sizes = [128, 128], strides = [1, 1]} : vector<160x128xbf16> to vector<128x128xbf16>
    %c5_111 = arith.constant 5 : index
    %c0_112 = arith.constant 0 : index
    %c0_113 = arith.constant 0 : index
    %194 = vector.load %arg2[%c5_111, %c0_112, %c0_113] : memref<9x128x128xbf16, #tpu.memory_space<vmem>>, vector<1x128x128xbf16>
    %195 = vector.shape_cast %194 : vector<1x128x128xbf16> to vector<128x128xbf16>
    %cst_114 = arith.constant dense<0.000000e+00> : vector<128x128xf32>
    %196 = tpu.matmul %193, %195, %cst_114 {dimension_numbers = #tpu.dot_dimension_numbers<[1], [0], [0], [1], [0, 0, 1, 1], [], []>} : vector<128x128xbf16>, vector<128x128xbf16>, vector<128x128xf32> -> vector<128x128xf32>
    %197 = arith.addf %192, %196 : vector<128x128xf32>
    %198 = vector.extract_strided_slice %187 {offsets = [32, 0], sizes = [128, 128], strides = [1, 1]} : vector<160x128xbf16> to vector<128x128xbf16>
    %c8_115 = arith.constant 8 : index
    %c0_116 = arith.constant 0 : index
    %c0_117 = arith.constant 0 : index
    %199 = vector.load %arg2[%c8_115, %c0_116, %c0_117] : memref<9x128x128xbf16, #tpu.memory_space<vmem>>, vector<1x128x128xbf16>
    %200 = vector.shape_cast %199 : vector<1x128x128xbf16> to vector<128x128xbf16>
    %cst_118 = arith.constant dense<0.000000e+00> : vector<128x128xf32>
    %201 = tpu.matmul %198, %200, %cst_118 {dimension_numbers = #tpu.dot_dimension_numbers<[1], [0], [0], [1], [0, 0, 1, 1], [], []>} : vector<128x128xbf16>, vector<128x128xbf16>, vector<128x128xf32> -> vector<128x128xf32>
    %202 = arith.addf %197, %201 : vector<128x128xf32>
    %203 = vector.broadcast %8 : vector<1x128xf32> to vector<128x128xf32>
    %204 = arith.mulf %202, %203 : vector<128x128xf32>
    %205 = vector.broadcast %9 : vector<1x128xf32> to vector<128x128xf32>
    %206 = arith.addf %204, %205 : vector<128x128xf32>
    %cst_119 = arith.constant 0.000000e+00 : f32
    %207 = vector.broadcast %cst_119 : f32 to vector<128x128xf32>
    %208 = arith.maximumf %206, %207 : vector<128x128xf32>
    %c160 = arith.constant 160 : index
    %c0_120 = arith.constant 0 : index
    %209 = vector.load %arg7[%c160, %c0_120] : memref<320x128xf32, #tpu.memory_space<vmem>>, vector<128x128xf32>
    tpu.vector_store %arg7[%c160, %c0_120], %208 {strides = array<i32>} : memref<320x128xf32, #tpu.memory_space<vmem>>, vector<128x128xf32>,
    %c15_121 = arith.constant 15 : index
    %c0_122 = arith.constant 0 : index
    %210 = vector.load %arg7[%c15_121, %c0_122] : memref<320x128xf32, #tpu.memory_space<vmem>>, vector<160x128xf32>
    %211 = arith.truncf %210 : vector<160x128xf32> to vector<160x128xbf16>
    %212 = tpu.iota {dimensions = array<i32: 0>} : vector<160x128xi32>
    %c16_i32_123 = arith.constant 16 : i32
    %c0_i32_124 = arith.constant 0 : i32
    %213 = arith.cmpi eq, %c16_i32_123, %c0_i32_124 : i32
    %c1_i32_125 = arith.constant 1 : i32
    %214 = arith.select %213, %c1_i32_125, %c16_i32_123 : i32
    %215 = vector.broadcast %214 : i32 to vector<160x128xi32>
    %216 = arith.remsi %212, %215 : vector<160x128xi32>
    %c0_i32_126 = arith.constant 0 : i32
    %217 = vector.broadcast %c0_i32_126 : i32 to vector<160x128xi32>
    %218 = arith.cmpi ne, %216, %217 : vector<160x128xi32>
    %c0_i32_127 = arith.constant 0 : i32
    %219 = vector.broadcast %c0_i32_127 : i32 to vector<160x128xi32>
    %220 = arith.cmpi slt, %216, %219 : vector<160x128xi32>
    %c0_i32_128 = arith.constant 0 : i32
    %221 = arith.cmpi slt, %214, %c0_i32_128 : i32
    %222 = vector.broadcast %221 : i1 to vector<160x128xi1>
    %223 = vector.broadcast %222 : vector<160x128xi1> to vector<160x128xi1>
    %224 = arith.xori %220, %223 : vector<160x128xi1>
    %225 = arith.andi %224, %218 : vector<160x128xi1>
    %226 = vector.broadcast %214 : i32 to vector<160x128xi32>
    %227 = arith.addi %216, %226 : vector<160x128xi32>
    %228 = arith.select %225, %227, %216 : vector<160x128xi1>, vector<160x128xi32>
    %c0_i32_129 = arith.constant 0 : i32
    %229 = vector.broadcast %c0_i32_129 : i32 to vector<160x128xi32>
    %230 = arith.cmpi eq, %228, %229 : vector<160x128xi32>
    %cst_130 = arith.constant 0.000000e+00 : bf16
    %231 = vector.broadcast %cst_130 : bf16 to vector<160x128xbf16>
    %232 = arith.select %230, %231, %211 : vector<160x128xi1>, vector<160x128xbf16>
    %233 = vector.extract_strided_slice %232 {offsets = [0, 0], sizes = [128, 128], strides = [1, 1]} : vector<160x128xbf16> to vector<128x128xbf16>
    %c0_131 = arith.constant 0 : index
    %c0_132 = arith.constant 0 : index
    %c0_133 = arith.constant 0 : index
    %234 = vector.load %arg3[%c0_131, %c0_132, %c0_133] : memref<9x128x128xbf16, #tpu.memory_space<vmem>>, vector<1x128x128xbf16>
    %235 = vector.shape_cast %234 : vector<1x128x128xbf16> to vector<128x128xbf16>
    %cst_134 = arith.constant dense<0.000000e+00> : vector<128x128xf32>
    %236 = tpu.matmul %233, %235, %cst_134 {dimension_numbers = #tpu.dot_dimension_numbers<[1], [0], [0], [1], [0, 0, 1, 1], [], []>} : vector<128x128xbf16>, vector<128x128xbf16>, vector<128x128xf32> -> vector<128x128xf32>
    %237 = vector.extract_strided_slice %232 {offsets = [16, 0], sizes = [128, 128], strides = [1, 1]} : vector<160x128xbf16> to vector<128x128xbf16>
    %c3_135 = arith.constant 3 : index
    %c0_136 = arith.constant 0 : index
    %c0_137 = arith.constant 0 : index
    %238 = vector.load %arg3[%c3_135, %c0_136, %c0_137] : memref<9x128x128xbf16, #tpu.memory_space<vmem>>, vector<1x128x128xbf16>
    %239 = vector.shape_cast %238 : vector<1x128x128xbf16> to vector<128x128xbf16>
    %cst_138 = arith.constant dense<0.000000e+00> : vector<128x128xf32>
    %240 = tpu.matmul %237, %239, %cst_138 {dimension_numbers = #tpu.dot_dimension_numbers<[1], [0], [0], [1], [0, 0, 1, 1], [], []>} : vector<128x128xbf16>, vector<128x128xbf16>, vector<128x128xf32> -> vector<128x128xf32>
    %241 = arith.addf %236, %240 : vector<128x128xf32>
    %242 = vector.extract_strided_slice %232 {offsets = [32, 0], sizes = [128, 128], strides = [1, 1]} : vector<160x128xbf16> to vector<128x128xbf16>
    %c6_139 = arith.constant 6 : index
    %c0_140 = arith.constant 0 : index
    %c0_141 = arith.constant 0 : index
    %243 = vector.load %arg3[%c6_139, %c0_140, %c0_141] : memref<9x128x128xbf16, #tpu.memory_space<vmem>>, vector<1x128x128xbf16>
    %244 = vector.shape_cast %243 : vector<1x128x128xbf16> to vector<128x128xbf16>
    %cst_142 = arith.constant dense<0.000000e+00> : vector<128x128xf32>
    %245 = tpu.matmul %242, %244, %cst_142 {dimension_numbers = #tpu.dot_dimension_numbers<[1], [0], [0], [1], [0, 0, 1, 1], [], []>} : vector<128x128xbf16>, vector<128x128xbf16>, vector<128x128xf32> -> vector<128x128xf32>
    %246 = arith.addf %241, %245 : vector<128x128xf32>
    %c16_143 = arith.constant 16 : index
    %c0_144 = arith.constant 0 : index
    %247 = vector.load %arg7[%c16_143, %c0_144] : memref<320x128xf32, #tpu.memory_space<vmem>>, vector<160x128xf32>
    %248 = arith.truncf %247 : vector<160x128xf32> to vector<160x128xbf16>
    %249 = vector.extract_strided_slice %248 {offsets = [0, 0], sizes = [128, 128], strides = [1, 1]} : vector<160x128xbf16> to vector<128x128xbf16>
    %c1_145 = arith.constant 1 : index
    %c0_146 = arith.constant 0 : index
    %c0_147 = arith.constant 0 : index
    %250 = vector.load %arg3[%c1_145, %c0_146, %c0_147] : memref<9x128x128xbf16, #tpu.memory_space<vmem>>, vector<1x128x128xbf16>
    %251 = vector.shape_cast %250 : vector<1x128x128xbf16> to vector<128x128xbf16>
    %cst_148 = arith.constant dense<0.000000e+00> : vector<128x128xf32>
    %252 = tpu.matmul %249, %251, %cst_148 {dimension_numbers = #tpu.dot_dimension_numbers<[1], [0], [0], [1], [0, 0, 1, 1], [], []>} : vector<128x128xbf16>, vector<128x128xbf16>, vector<128x128xf32> -> vector<128x128xf32>
    %253 = arith.addf %246, %252 : vector<128x128xf32>
    %254 = vector.extract_strided_slice %248 {offsets = [16, 0], sizes = [128, 128], strides = [1, 1]} : vector<160x128xbf16> to vector<128x128xbf16>
    %c4_149 = arith.constant 4 : index
    %c0_150 = arith.constant 0 : index
    %c0_151 = arith.constant 0 : index
    %255 = vector.load %arg3[%c4_149, %c0_150, %c0_151] : memref<9x128x128xbf16, #tpu.memory_space<vmem>>, vector<1x128x128xbf16>
    %256 = vector.shape_cast %255 : vector<1x128x128xbf16> to vector<128x128xbf16>
    %cst_152 = arith.constant dense<0.000000e+00> : vector<128x128xf32>
    %257 = tpu.matmul %254, %256, %cst_152 {dimension_numbers = #tpu.dot_dimension_numbers<[1], [0], [0], [1], [0, 0, 1, 1], [], []>} : vector<128x128xbf16>, vector<128x128xbf16>, vector<128x128xf32> -> vector<128x128xf32>
    %258 = arith.addf %253, %257 : vector<128x128xf32>
    %259 = vector.extract_strided_slice %248 {offsets = [32, 0], sizes = [128, 128], strides = [1, 1]} : vector<160x128xbf16> to vector<128x128xbf16>
    %c7_153 = arith.constant 7 : index
    %c0_154 = arith.constant 0 : index
    %c0_155 = arith.constant 0 : index
    %260 = vector.load %arg3[%c7_153, %c0_154, %c0_155] : memref<9x128x128xbf16, #tpu.memory_space<vmem>>, vector<1x128x128xbf16>
    %261 = vector.shape_cast %260 : vector<1x128x128xbf16> to vector<128x128xbf16>
    %cst_156 = arith.constant dense<0.000000e+00> : vector<128x128xf32>
    %262 = tpu.matmul %259, %261, %cst_156 {dimension_numbers = #tpu.dot_dimension_numbers<[1], [0], [0], [1], [0, 0, 1, 1], [], []>} : vector<128x128xbf16>, vector<128x128xbf16>, vector<128x128xf32> -> vector<128x128xf32>
    %263 = arith.addf %258, %262 : vector<128x128xf32>
    %c17_157 = arith.constant 17 : index
    %c0_158 = arith.constant 0 : index
    %264 = vector.load %arg7[%c17_157, %c0_158] : memref<320x128xf32, #tpu.memory_space<vmem>>, vector<160x128xf32>
    %265 = arith.truncf %264 : vector<160x128xf32> to vector<160x128xbf16>
    %266 = tpu.iota {dimensions = array<i32: 0>} : vector<160x128xi32>
    %c16_i32_159 = arith.constant 16 : i32
    %c0_i32_160 = arith.constant 0 : i32
    %267 = arith.cmpi eq, %c16_i32_159, %c0_i32_160 : i32
    %c1_i32_161 = arith.constant 1 : i32
    %268 = arith.select %267, %c1_i32_161, %c16_i32_159 : i32
    %269 = vector.broadcast %268 : i32 to vector<160x128xi32>
    %270 = arith.remsi %266, %269 : vector<160x128xi32>
    %c0_i32_162 = arith.constant 0 : i32
    %271 = vector.broadcast %c0_i32_162 : i32 to vector<160x128xi32>
    %272 = arith.cmpi ne, %270, %271 : vector<160x128xi32>
    %c0_i32_163 = arith.constant 0 : i32
    %273 = vector.broadcast %c0_i32_163 : i32 to vector<160x128xi32>
    %274 = arith.cmpi slt, %270, %273 : vector<160x128xi32>
    %c0_i32_164 = arith.constant 0 : i32
    %275 = arith.cmpi slt, %268, %c0_i32_164 : i32
    %276 = vector.broadcast %275 : i1 to vector<160x128xi1>
    %277 = vector.broadcast %276 : vector<160x128xi1> to vector<160x128xi1>
    %278 = arith.xori %274, %277 : vector<160x128xi1>
    %279 = arith.andi %278, %272 : vector<160x128xi1>
    %280 = vector.broadcast %268 : i32 to vector<160x128xi32>
    %281 = arith.addi %270, %280 : vector<160x128xi32>
    %282 = arith.select %279, %281, %270 : vector<160x128xi1>, vector<160x128xi32>
    %c15_i32_165 = arith.constant 15 : i32
    %283 = vector.broadcast %c15_i32_165 : i32 to vector<160x128xi32>
    %284 = arith.cmpi eq, %282, %283 : vector<160x128xi32>
    %cst_166 = arith.constant 0.000000e+00 : bf16
    %285 = vector.broadcast %cst_166 : bf16 to vector<160x128xbf16>
    %286 = arith.select %284, %285, %265 : vector<160x128xi1>, vector<160x128xbf16>
    %287 = vector.extract_strided_slice %286 {offsets = [0, 0], sizes = [128, 128], strides = [1, 1]} : vector<160x128xbf16> to vector<128x128xbf16>
    %c2_167 = arith.constant 2 : index
    %c0_168 = arith.constant 0 : index
    %c0_169 = arith.constant 0 : index
    %288 = vector.load %arg3[%c2_167, %c0_168, %c0_169] : memref<9x128x128xbf16, #tpu.memory_space<vmem>>, vector<1x128x128xbf16>
    %289 = vector.shape_cast %288 : vector<1x128x128xbf16> to vector<128x128xbf16>
    %cst_170 = arith.constant dense<0.000000e+00> : vector<128x128xf32>
    %290 = tpu.matmul %287, %289, %cst_170 {dimension_numbers = #tpu.dot_dimension_numbers<[1], [0], [0], [1], [0, 0, 1, 1], [], []>} : vector<128x128xbf16>, vector<128x128xbf16>, vector<128x128xf32> -> vector<128x128xf32>
    %291 = arith.addf %263, %290 : vector<128x128xf32>
    %292 = vector.extract_strided_slice %286 {offsets = [16, 0], sizes = [128, 128], strides = [1, 1]} : vector<160x128xbf16> to vector<128x128xbf16>
    %c5_171 = arith.constant 5 : index
    %c0_172 = arith.constant 0 : index
    %c0_173 = arith.constant 0 : index
    %293 = vector.load %arg3[%c5_171, %c0_172, %c0_173] : memref<9x128x128xbf16, #tpu.memory_space<vmem>>, vector<1x128x128xbf16>
    %294 = vector.shape_cast %293 : vector<1x128x128xbf16> to vector<128x128xbf16>
    %cst_174 = arith.constant dense<0.000000e+00> : vector<128x128xf32>
    %295 = tpu.matmul %292, %294, %cst_174 {dimension_numbers = #tpu.dot_dimension_numbers<[1], [0], [0], [1], [0, 0, 1, 1], [], []>} : vector<128x128xbf16>, vector<128x128xbf16>, vector<128x128xf32> -> vector<128x128xf32>
    %296 = arith.addf %291, %295 : vector<128x128xf32>
    %297 = vector.extract_strided_slice %286 {offsets = [32, 0], sizes = [128, 128], strides = [1, 1]} : vector<160x128xbf16> to vector<128x128xbf16>
    %c8_175 = arith.constant 8 : index
    %c0_176 = arith.constant 0 : index
    %c0_177 = arith.constant 0 : index
    %298 = vector.load %arg3[%c8_175, %c0_176, %c0_177] : memref<9x128x128xbf16, #tpu.memory_space<vmem>>, vector<1x128x128xbf16>
    %299 = vector.shape_cast %298 : vector<1x128x128xbf16> to vector<128x128xbf16>
    %cst_178 = arith.constant dense<0.000000e+00> : vector<128x128xf32>
    %300 = tpu.matmul %297, %299, %cst_178 {dimension_numbers = #tpu.dot_dimension_numbers<[1], [0], [0], [1], [0, 0, 1, 1], [], []>} : vector<128x128xbf16>, vector<128x128xbf16>, vector<128x128xf32> -> vector<128x128xf32>
    %301 = arith.addf %296, %300 : vector<128x128xf32>
    %302 = vector.broadcast %10 : vector<1x128xf32> to vector<128x128xf32>
    %303 = arith.mulf %301, %302 : vector<128x128xf32>
    %304 = vector.broadcast %11 : vector<1x128xf32> to vector<128x128xf32>
    %305 = arith.addf %303, %304 : vector<128x128xf32>
    %c0_179 = arith.constant 0 : index
    %c0_180 = arith.constant 0 : index
    %c0_181 = arith.constant 0 : index
    %306 = vector.load %arg1[%c0_179, %c0_180, %c0_181] : memref<1x256x128xf32, #tpu.memory_space<vmem>>, vector<1x128x128xf32>
    %307 = vector.shape_cast %306 : vector<1x128x128xf32> to vector<128x128xf32>
    %308 = arith.addf %305, %307 : vector<128x128xf32>
    %cst_182 = arith.constant 0.000000e+00 : f32
    %309 = vector.broadcast %cst_182 : f32 to vector<128x128xf32>
    %310 = arith.maximumf %308, %309 : vector<128x128xf32>
    %c0_183 = arith.constant 0 : index
    %c0_184 = arith.constant 0 : index
    %c0_185 = arith.constant 0 : index
    %311 = vector.load %arg5[%c0_183, %c0_184, %c0_185] : memref<1x256x128xf32, #tpu.memory_space<vmem>>, vector<1x128x128xf32>
    %312 = vector.shape_cast %311 : vector<1x128x128xf32> to vector<128x128xf32>
    %313 = vector.shape_cast %310 : vector<128x128xf32> to vector<1x128x128xf32>
    tpu.vector_store %arg5[%c0_183, %c0_184, %c0_185], %313 {strides = array<i32>} : memref<1x256x128xf32, #tpu.memory_space<vmem>>, vector<1x128x128xf32>,
    %c143_186 = arith.constant 143 : index
    %c0_187 = arith.constant 0 : index
    %314 = vector.load %arg7[%c143_186, %c0_187] : memref<320x128xf32, #tpu.memory_space<vmem>>, vector<160x128xf32>
    %315 = arith.truncf %314 : vector<160x128xf32> to vector<160x128xbf16>
    %316 = tpu.iota {dimensions = array<i32: 0>} : vector<160x128xi32>
    %c16_i32_188 = arith.constant 16 : i32
    %c0_i32_189 = arith.constant 0 : i32
    %317 = arith.cmpi eq, %c16_i32_188, %c0_i32_189 : i32
    %c1_i32_190 = arith.constant 1 : i32
    %318 = arith.select %317, %c1_i32_190, %c16_i32_188 : i32
    %319 = vector.broadcast %318 : i32 to vector<160x128xi32>
    %320 = arith.remsi %316, %319 : vector<160x128xi32>
    %c0_i32_191 = arith.constant 0 : i32
    %321 = vector.broadcast %c0_i32_191 : i32 to vector<160x128xi32>
    %322 = arith.cmpi ne, %320, %321 : vector<160x128xi32>
    %c0_i32_192 = arith.constant 0 : i32
    %323 = vector.broadcast %c0_i32_192 : i32 to vector<160x128xi32>
    %324 = arith.cmpi slt, %320, %323 : vector<160x128xi32>
    %c0_i32_193 = arith.constant 0 : i32
    %325 = arith.cmpi slt, %318, %c0_i32_193 : i32
    %326 = vector.broadcast %325 : i1 to vector<160x128xi1>
    %327 = vector.broadcast %326 : vector<160x128xi1> to vector<160x128xi1>
    %328 = arith.xori %324, %327 : vector<160x128xi1>
    %329 = arith.andi %328, %322 : vector<160x128xi1>
    %330 = vector.broadcast %318 : i32 to vector<160x128xi32>
    %331 = arith.addi %320, %330 : vector<160x128xi32>
    %332 = arith.select %329, %331, %320 : vector<160x128xi1>, vector<160x128xi32>
    %c0_i32_194 = arith.constant 0 : i32
    %333 = vector.broadcast %c0_i32_194 : i32 to vector<160x128xi32>
    %334 = arith.cmpi eq, %332, %333 : vector<160x128xi32>
    %cst_195 = arith.constant 0.000000e+00 : bf16
    %335 = vector.broadcast %cst_195 : bf16 to vector<160x128xbf16>
    %336 = arith.select %334, %335, %315 : vector<160x128xi1>, vector<160x128xbf16>
    %337 = vector.extract_strided_slice %336 {offsets = [0, 0], sizes = [128, 128], strides = [1, 1]} : vector<160x128xbf16> to vector<128x128xbf16>
    %c0_196 = arith.constant 0 : index
    %c0_197 = arith.constant 0 : index
    %c0_198 = arith.constant 0 : index
    %338 = vector.load %arg3[%c0_196, %c0_197, %c0_198] : memref<9x128x128xbf16, #tpu.memory_space<vmem>>, vector<1x128x128xbf16>
    %339 = vector.shape_cast %338 : vector<1x128x128xbf16> to vector<128x128xbf16>
    %cst_199 = arith.constant dense<0.000000e+00> : vector<128x128xf32>
    %340 = tpu.matmul %337, %339, %cst_199 {dimension_numbers = #tpu.dot_dimension_numbers<[1], [0], [0], [1], [0, 0, 1, 1], [], []>} : vector<128x128xbf16>, vector<128x128xbf16>, vector<128x128xf32> -> vector<128x128xf32>
    %341 = vector.extract_strided_slice %336 {offsets = [16, 0], sizes = [128, 128], strides = [1, 1]} : vector<160x128xbf16> to vector<128x128xbf16>
    %c3_200 = arith.constant 3 : index
    %c0_201 = arith.constant 0 : index
    %c0_202 = arith.constant 0 : index
    %342 = vector.load %arg3[%c3_200, %c0_201, %c0_202] : memref<9x128x128xbf16, #tpu.memory_space<vmem>>, vector<1x128x128xbf16>
    %343 = vector.shape_cast %342 : vector<1x128x128xbf16> to vector<128x128xbf16>
    %cst_203 = arith.constant dense<0.000000e+00> : vector<128x128xf32>
    %344 = tpu.matmul %341, %343, %cst_203 {dimension_numbers = #tpu.dot_dimension_numbers<[1], [0], [0], [1], [0, 0, 1, 1], [], []>} : vector<128x128xbf16>, vector<128x128xbf16>, vector<128x128xf32> -> vector<128x128xf32>
    %345 = arith.addf %340, %344 : vector<128x128xf32>
    %346 = vector.extract_strided_slice %336 {offsets = [32, 0], sizes = [128, 128], strides = [1, 1]} : vector<160x128xbf16> to vector<128x128xbf16>
    %c6_204 = arith.constant 6 : index
    %c0_205 = arith.constant 0 : index
    %c0_206 = arith.constant 0 : index
    %347 = vector.load %arg3[%c6_204, %c0_205, %c0_206] : memref<9x128x128xbf16, #tpu.memory_space<vmem>>, vector<1x128x128xbf16>
    %348 = vector.shape_cast %347 : vector<1x128x128xbf16> to vector<128x128xbf16>
    %cst_207 = arith.constant dense<0.000000e+00> : vector<128x128xf32>
    %349 = tpu.matmul %346, %348, %cst_207 {dimension_numbers = #tpu.dot_dimension_numbers<[1], [0], [0], [1], [0, 0, 1, 1], [], []>} : vector<128x128xbf16>, vector<128x128xbf16>, vector<128x128xf32> -> vector<128x128xf32>
    %350 = arith.addf %345, %349 : vector<128x128xf32>
    %c144_208 = arith.constant 144 : index
    %c0_209 = arith.constant 0 : index
    %351 = vector.load %arg7[%c144_208, %c0_209] : memref<320x128xf32, #tpu.memory_space<vmem>>, vector<160x128xf32>
    %352 = arith.truncf %351 : vector<160x128xf32> to vector<160x128xbf16>
    %353 = vector.extract_strided_slice %352 {offsets = [0, 0], sizes = [128, 128], strides = [1, 1]} : vector<160x128xbf16> to vector<128x128xbf16>
    %c1_210 = arith.constant 1 : index
    %c0_211 = arith.constant 0 : index
    %c0_212 = arith.constant 0 : index
    %354 = vector.load %arg3[%c1_210, %c0_211, %c0_212] : memref<9x128x128xbf16, #tpu.memory_space<vmem>>, vector<1x128x128xbf16>
    %355 = vector.shape_cast %354 : vector<1x128x128xbf16> to vector<128x128xbf16>
    %cst_213 = arith.constant dense<0.000000e+00> : vector<128x128xf32>
    %356 = tpu.matmul %353, %355, %cst_213 {dimension_numbers = #tpu.dot_dimension_numbers<[1], [0], [0], [1], [0, 0, 1, 1], [], []>} : vector<128x128xbf16>, vector<128x128xbf16>, vector<128x128xf32> -> vector<128x128xf32>
    %357 = arith.addf %350, %356 : vector<128x128xf32>
    %358 = vector.extract_strided_slice %352 {offsets = [16, 0], sizes = [128, 128], strides = [1, 1]} : vector<160x128xbf16> to vector<128x128xbf16>
    %c4_214 = arith.constant 4 : index
    %c0_215 = arith.constant 0 : index
    %c0_216 = arith.constant 0 : index
    %359 = vector.load %arg3[%c4_214, %c0_215, %c0_216] : memref<9x128x128xbf16, #tpu.memory_space<vmem>>, vector<1x128x128xbf16>
    %360 = vector.shape_cast %359 : vector<1x128x128xbf16> to vector<128x128xbf16>
    %cst_217 = arith.constant dense<0.000000e+00> : vector<128x128xf32>
    %361 = tpu.matmul %358, %360, %cst_217 {dimension_numbers = #tpu.dot_dimension_numbers<[1], [0], [0], [1], [0, 0, 1, 1], [], []>} : vector<128x128xbf16>, vector<128x128xbf16>, vector<128x128xf32> -> vector<128x128xf32>
    %362 = arith.addf %357, %361 : vector<128x128xf32>
    %363 = vector.extract_strided_slice %352 {offsets = [32, 0], sizes = [128, 128], strides = [1, 1]} : vector<160x128xbf16> to vector<128x128xbf16>
    %c7_218 = arith.constant 7 : index
    %c0_219 = arith.constant 0 : index
    %c0_220 = arith.constant 0 : index
    %364 = vector.load %arg3[%c7_218, %c0_219, %c0_220] : memref<9x128x128xbf16, #tpu.memory_space<vmem>>, vector<1x128x128xbf16>
    %365 = vector.shape_cast %364 : vector<1x128x128xbf16> to vector<128x128xbf16>
    %cst_221 = arith.constant dense<0.000000e+00> : vector<128x128xf32>
    %366 = tpu.matmul %363, %365, %cst_221 {dimension_numbers = #tpu.dot_dimension_numbers<[1], [0], [0], [1], [0, 0, 1, 1], [], []>} : vector<128x128xbf16>, vector<128x128xbf16>, vector<128x128xf32> -> vector<128x128xf32>
    %367 = arith.addf %362, %366 : vector<128x128xf32>
    %c145_222 = arith.constant 145 : index
    %c0_223 = arith.constant 0 : index
    %368 = vector.load %arg7[%c145_222, %c0_223] : memref<320x128xf32, #tpu.memory_space<vmem>>, vector<160x128xf32>
    %369 = arith.truncf %368 : vector<160x128xf32> to vector<160x128xbf16>
    %370 = tpu.iota {dimensions = array<i32: 0>} : vector<160x128xi32>
    %c16_i32_224 = arith.constant 16 : i32
    %c0_i32_225 = arith.constant 0 : i32
    %371 = arith.cmpi eq, %c16_i32_224, %c0_i32_225 : i32
    %c1_i32_226 = arith.constant 1 : i32
    %372 = arith.select %371, %c1_i32_226, %c16_i32_224 : i32
    %373 = vector.broadcast %372 : i32 to vector<160x128xi32>
    %374 = arith.remsi %370, %373 : vector<160x128xi32>
    %c0_i32_227 = arith.constant 0 : i32
    %375 = vector.broadcast %c0_i32_227 : i32 to vector<160x128xi32>
    %376 = arith.cmpi ne, %374, %375 : vector<160x128xi32>
    %c0_i32_228 = arith.constant 0 : i32
    %377 = vector.broadcast %c0_i32_228 : i32 to vector<160x128xi32>
    %378 = arith.cmpi slt, %374, %377 : vector<160x128xi32>
    %c0_i32_229 = arith.constant 0 : i32
    %379 = arith.cmpi slt, %372, %c0_i32_229 : i32
    %380 = vector.broadcast %379 : i1 to vector<160x128xi1>
    %381 = vector.broadcast %380 : vector<160x128xi1> to vector<160x128xi1>
    %382 = arith.xori %378, %381 : vector<160x128xi1>
    %383 = arith.andi %382, %376 : vector<160x128xi1>
    %384 = vector.broadcast %372 : i32 to vector<160x128xi32>
    %385 = arith.addi %374, %384 : vector<160x128xi32>
    %386 = arith.select %383, %385, %374 : vector<160x128xi1>, vector<160x128xi32>
    %c15_i32_230 = arith.constant 15 : i32
    %387 = vector.broadcast %c15_i32_230 : i32 to vector<160x128xi32>
    %388 = arith.cmpi eq, %386, %387 : vector<160x128xi32>
    %cst_231 = arith.constant 0.000000e+00 : bf16
    %389 = vector.broadcast %cst_231 : bf16 to vector<160x128xbf16>
    %390 = arith.select %388, %389, %369 : vector<160x128xi1>, vector<160x128xbf16>
    %391 = vector.extract_strided_slice %390 {offsets = [0, 0], sizes = [128, 128], strides = [1, 1]} : vector<160x128xbf16> to vector<128x128xbf16>
    %c2_232 = arith.constant 2 : index
    %c0_233 = arith.constant 0 : index
    %c0_234 = arith.constant 0 : index
    %392 = vector.load %arg3[%c2_232, %c0_233, %c0_234] : memref<9x128x128xbf16, #tpu.memory_space<vmem>>, vector<1x128x128xbf16>
    %393 = vector.shape_cast %392 : vector<1x128x128xbf16> to vector<128x128xbf16>
    %cst_235 = arith.constant dense<0.000000e+00> : vector<128x128xf32>
    %394 = tpu.matmul %391, %393, %cst_235 {dimension_numbers = #tpu.dot_dimension_numbers<[1], [0], [0], [1], [0, 0, 1, 1], [], []>} : vector<128x128xbf16>, vector<128x128xbf16>, vector<128x128xf32> -> vector<128x128xf32>
    %395 = arith.addf %367, %394 : vector<128x128xf32>
    %396 = vector.extract_strided_slice %390 {offsets = [16, 0], sizes = [128, 128], strides = [1, 1]} : vector<160x128xbf16> to vector<128x128xbf16>
    %c5_236 = arith.constant 5 : index
    %c0_237 = arith.constant 0 : index
    %c0_238 = arith.constant 0 : index
    %397 = vector.load %arg3[%c5_236, %c0_237, %c0_238] : memref<9x128x128xbf16, #tpu.memory_space<vmem>>, vector<1x128x128xbf16>
    %398 = vector.shape_cast %397 : vector<1x128x128xbf16> to vector<128x128xbf16>
    %cst_239 = arith.constant dense<0.000000e+00> : vector<128x128xf32>
    %399 = tpu.matmul %396, %398, %cst_239 {dimension_numbers = #tpu.dot_dimension_numbers<[1], [0], [0], [1], [0, 0, 1, 1], [], []>} : vector<128x128xbf16>, vector<128x128xbf16>, vector<128x128xf32> -> vector<128x128xf32>
    %400 = arith.addf %395, %399 : vector<128x128xf32>
    %401 = vector.extract_strided_slice %390 {offsets = [32, 0], sizes = [128, 128], strides = [1, 1]} : vector<160x128xbf16> to vector<128x128xbf16>
    %c8_240 = arith.constant 8 : index
    %c0_241 = arith.constant 0 : index
    %c0_242 = arith.constant 0 : index
    %402 = vector.load %arg3[%c8_240, %c0_241, %c0_242] : memref<9x128x128xbf16, #tpu.memory_space<vmem>>, vector<1x128x128xbf16>
    %403 = vector.shape_cast %402 : vector<1x128x128xbf16> to vector<128x128xbf16>
    %cst_243 = arith.constant dense<0.000000e+00> : vector<128x128xf32>
    %404 = tpu.matmul %401, %403, %cst_243 {dimension_numbers = #tpu.dot_dimension_numbers<[1], [0], [0], [1], [0, 0, 1, 1], [], []>} : vector<128x128xbf16>, vector<128x128xbf16>, vector<128x128xf32> -> vector<128x128xf32>
    %405 = arith.addf %400, %404 : vector<128x128xf32>
    %406 = vector.broadcast %10 : vector<1x128xf32> to vector<128x128xf32>
    %407 = arith.mulf %405, %406 : vector<128x128xf32>
    %408 = vector.broadcast %11 : vector<1x128xf32> to vector<128x128xf32>
    %409 = arith.addf %407, %408 : vector<128x128xf32>
    %c0_244 = arith.constant 0 : index
    %c128 = arith.constant 128 : index
    %c0_245 = arith.constant 0 : index
    %410 = vector.load %arg1[%c0_244, %c128, %c0_245] : memref<1x256x128xf32, #tpu.memory_space<vmem>>, vector<1x128x128xf32>
    %411 = vector.shape_cast %410 : vector<1x128x128xf32> to vector<128x128xf32>
    %412 = arith.addf %409, %411 : vector<128x128xf32>
    %cst_246 = arith.constant 0.000000e+00 : f32
    %413 = vector.broadcast %cst_246 : f32 to vector<128x128xf32>
    %414 = arith.maximumf %412, %413 : vector<128x128xf32>
    %c0_247 = arith.constant 0 : index
    %c128_248 = arith.constant 128 : index
    %c0_249 = arith.constant 0 : index
    %415 = vector.load %arg5[%c0_247, %c128_248, %c0_249] : memref<1x256x128xf32, #tpu.memory_space<vmem>>, vector<1x128x128xf32>
    %416 = vector.shape_cast %415 : vector<1x128x128xf32> to vector<128x128xf32>
    %417 = vector.shape_cast %414 : vector<128x128xf32> to vector<1x128x128xf32>
    tpu.vector_store %arg5[%c0_247, %c128_248, %c0_249], %417 {strides = array<i32>} : memref<1x256x128xf32, #tpu.memory_space<vmem>>, vector<1x128x128xf32>,
    return
  }
  func.func @transform_0(%arg0: i32) -> (i32, i32, i32) {
    %c0_i32 = arith.constant 0 : i32
    %c0_i32_0 = arith.constant 0 : i32
    %c0_i32_1 = arith.constant 0 : i32
    return %arg0, %c0_i32, %c0_i32_0 : i32, i32, i32
  }
  func.func @transform_1(%arg0: i32) -> (i32, i32, i32) {
    %c0_i32 = arith.constant 0 : i32
    %c0_i32_0 = arith.constant 0 : i32
    %c0_i32_1 = arith.constant 0 : i32
    %c0_i32_2 = arith.constant 0 : i32
    return %c0_i32, %c0_i32_0, %c0_i32_1 : i32, i32, i32
  }
  func.func @transform_2(%arg0: i32) -> (i32, i32, i32) {
    %c0_i32 = arith.constant 0 : i32
    %c0_i32_0 = arith.constant 0 : i32
    %c0_i32_1 = arith.constant 0 : i32
    %c0_i32_2 = arith.constant 0 : i32
    return %c0_i32, %c0_i32_0, %c0_i32_1 : i32, i32, i32
  }
  func.func @transform_3(%arg0: i32) -> (i32, i32) {
    %c0_i32 = arith.constant 0 : i32
    %c0_i32_0 = arith.constant 0 : i32
    %c0_i32_1 = arith.constant 0 : i32
    return %c0_i32, %c0_i32_0 : i32, i32
  }
  func.func @transform_4(%arg0: i32) -> (i32, i32, i32) {
    %c0_i32 = arith.constant 0 : i32
    %c0_i32_0 = arith.constant 0 : i32
    %c0_i32_1 = arith.constant 0 : i32
    return %arg0, %c0_i32, %c0_i32_0 : i32, i32, i32
  }
}

</mosaic_0001>

<bundles_post_ra>
// kernel: tpu_custom_call.1
= control target key start
LH: loop header
LB: loop body
LE: loop exit
PB: predicated region body
PF: predicated region fallthrough
CT: control target
= control target key end

     0   :  { %9 = vsyncpa [#allocation5], 0  ;;  %s13802_s0 = inlined_call_operand.hbm [shape: f32[2,256,128], index: 0, kind: input, shape index: {}, may-alias: {0,4}]   ;;  %s13803_s1 = inlined_call_operand.vmem [shape: bf16[9,128,128], index: 1, kind: input, shape index: {}]   ;;  %s13804_s2 = inlined_call_operand.hbm [shape: bf16[9,128,128], index: 2, kind: input, shape index: {}]   ;;  %s13805_s3 = inlined_call_operand.vmem [shape: f32[4,128], index: 3, kind: input, shape index: {}]   ;;  %s13806_s4 = inlined_call_operand.hbm [shape: f32[2,256,128], index: 4, kind: output, shape index: {}, may-alias: {0,4}]  }
   0x1   :  { %11 = vsyncpa [#allocation5 + $0x1], 0 }
   0x2   :  { %12 = vsyncpa [#allocation8], 0 }
   0x3   :  { %13 = vsyncpa [#allocation6], 0 }
   0x4   :  { %15 = vsyncpa [#allocation6 + $0x1], 0  ;;  %s11667_s15 = smov 0   ;;  %s11669_s16 = smov 0  }
   0x5   :  { %s11671_s17 = smov 0   ;;  %s11673_s18 = smov 0  }
   0x6 LB: > { %s11688_s19 = sadd.s32 4294967295, %s11628_s18   ;;  %s7912_s20 = sadd.s32 4294967294, %s11628_s18   ;;  %s11628_s18 = sphi %s11673_s18, %s13941_s18   ;;  %s11624_s17 = sphi %s11671_s17, %s13940_s17   ;;  %s11620_s16 = sphi %s11669_s16, %s13939_s16   ;;  %s11616_s15 = sphi %s11667_s15, %s13938_s15  }
   0x7   : > { %p41_p0 = scmp.ne.s32.totalorder %s11620_s16, %s11616_s15  ;;  %p13807_p1 = scmp.eq.s32.totalorder %s11688_s19, 0 }
   0x8   : > { %p134_p3 = scmp.eq.s32.totalorder %s7912_s20, 1  ;;  %p7913_p5 = scmp.ge.s32.totalorder %s11628_s18, 1 }
   0x9   : > { %p11697_p4 = por %p13807_p1, %p41_p0  ;;  %p141_p7 = scmp.lt.s32.totalorder %s11628_s18, 3 }
   0xa   : > { %p11702_p6 = por %p134_p3, %p41_p0  ;;  %s11630_s24 = smov [#allocation7]  }
   0xb   : > { %s13828_s21 = scalar_select %p11697_p4, 1, 0 }
   0xc   : > { %s13829_s22 = scalar_select %p11702_p6, 1, 0 }
   0xd   : > { %p11707_p8 = pnand %p7913_p5, %p141_p7  ;;  %s156_s25 = sshll.u32 %s11630_s24, 4  ;;  %s11711_s25 = int_to_ptr.vmem [resolvable:$true] %s156_s25 }
   0xe   : > { %s11723_s27 = sadd.s32 1, %s11628_s18   ;;  %s28_s28 = sadd.s32 1, %s11624_s17 }
   0xf   : > { %s13830_s23 = scalar_select %p11707_p8, 1, 0 }
  0x10   : > { %p11150_p9 = pneg %p11707_p8  ;;  %s25_s29 = ssub.s32 %s11628_s18, %s11723_s27 }
  0x11   : > { %s11500_s6 = scalar_lea.hbm %s13804_s2, 9216 }
  0x12   : > { %p11718_p11 = pnand %p11150_p9, %p13807_p1  ;;  %p11501_p12 = scmp.ne.s32.totalorder %s13804_s2, %s11500_s6 }
  0x13   : > { %p11507_p5 = scmp.lt.u32.totalorder %s11500_s6, %s13804_s2 }
  0x14   : > { %p11502_p13 = pneg %p11718_p11 }
  0x16   : > { %p11503_p0 = pnand %p11502_p13, %p11501_p12 }
  0x18   : > { %p11504_p3 = pneg %p11503_p0 }
  0x1a   : > { %p11509_p7 = pnand %p11507_p5, %p11504_p3 }
  0x1c   : > { %11512 = shalt.err (!%p11509_p7)
}
  0x1d   : > { %s11513_s11 = scalar_lea.vmem %s11711_s25, 9216  ;;  %p11521_p2 = scmp.lt.s32.totalorder %s11711_s25, %s11711_s25 }
  0x1e   : > { %p11514_p9 = scmp.ne.s32.totalorder %s11711_s25, %s11513_s11  ;;  %p11522_p6 = scmp.lt.s32.totalorder %s11513_s11, %s11513_s11 }
  0x20   : > { %p11516_p10 = pnand %p11514_p9, %p11502_p13  ;;  %p11523_p4 = por %p11522_p6, %p11521_p2 }
  0x22   : > { %p11517_p1 = pneg %p11516_p10 }
  0x24   : > { %p11524_p8 = pnand %p11523_p4, %p11517_p1 }
  0x26   : > { %11527 = shalt.err (!%p11524_p8)
}
  0x27   : > { %s11631_s12 = smov 64   ;;  %s11632_s13 = smov 4  }
  0x28   : > { %11153 = dma.hbm_to_vmem [thread:$0]  (!%p11718_p11), %s13804_s2, 9216, %s11711_s25, [#allocation8], %s11631_s12, %s11631_s12, %s11632_s13  }
  0x29   : > { %p26_p2 = scmp.eq.s32.totalorder %s25_s29, 0  ;;  %p35_p1 = scmp.ne.s32.totalorder %s11624_s17, %s11620_s16 }
  0x2a   : > { %p36_p4 = scmp.eq.s32.totalorder %s11628_s18, 0  ;;  %p11163_p6 = scmp.lt.s32.totalorder %s11628_s18, 2 }
  0x2b   : > { %s11754_s24 = scalar_select %p26_p2, %s11624_s17, %s28_s28  }
  0x2c   : > { %p37_p8 = por %p36_p4, %p35_p1  ;;  %p13832_p10 = scmp.eq.s32.totalorder %s11688_s19, 1 }
  0x2d   : > { %s173_s5 = sand.u32 1, %s11624_s17   ;;  %s8880_s6 = sshll.u32 %s11628_s18, 12 }
  0x2e   : > { %p11758_p12 = por %p13832_p10, %p35_p1  ;;  %s7916_s7 = sshll.u32 %s173_s5, 8 }
  0x2f   : > { %s11767_s9 = scalar_lea.hbm %s13802_s0, %s8880_s6  ;;  %s177_s25 = scalar_lea.vmem [#allocation4], %s7916_s7 }
  0x30   : > { %s184_s28 = sshll.u32 %s177_s25, 4  ;;  %p11769_p11 = pnand %p11163_p6, %p37_p8  ;;  %s11773_s28 = int_to_ptr.vmem [resolvable:$true] %s184_s28 }
  0x31   : > { %s11775_s10 = scalar_lea.sflag [#allocation5], %s173_s5  ;;  %s11528_s11 = scalar_lea.hbm %s11767_s9, 4096 }
  0x32   : > { %p11529_p13 = scmp.ne.s32.totalorder %s11767_s9, %s11528_s11  ;;  %p11530_p0 = pneg %p11769_p11 }
  0x33   : > { %s11533_s14 = scalar_lea.hbm %s13802_s0, 8192  ;;  %p11534_p7 = scmp.lt.u32.totalorder %s11767_s9, %s13802_s0 }
  0x34   : > { %p11531_p3 = pnand %p11530_p0, %p11529_p13  ;;  %p11535_p9 = scmp.lt.u32.totalorder %s11533_s14, %s11528_s11 }
  0x35   : > { %p11537_p1 = scmp.lt.u32.totalorder %s11528_s11, %s11767_s9 }
  0x36   : > { %p11532_p5 = pneg %p11531_p3  ;;  %p11536_p2 = por %p11535_p9, %p11534_p7 }
  0x38   : > { %p11538_p4 = por %p11537_p1, %p11536_p2 }
  0x3a   : > { %p11539_p6 = pnand %p11538_p4, %p11532_p5 }
  0x3c   : > { %11542 = shalt.err (!%p11539_p6)
}
  0x3d   : > { %s11543_s5 = scalar_lea.vmem %s11773_s28, 4096  ;;  %s11633_s7 = smov [#allocation4]  }
  0x3e   : > { %p11544_p8 = scmp.ne.s32.totalorder %s11773_s28, %s11543_s5  ;;  %s11548_s26 = sshll.u32 %s11633_s7, 4  ;;  %s11549_s26 = int_to_ptr.vmem [resolvable:$false] %s11548_s26 }
  0x3f   : > { %s11550_s8 = scalar_lea.vmem %s11549_s26, 8192  ;;  %p11551_p3 = scmp.lt.s32.totalorder %s11773_s28, %s11549_s26 }
  0x40   : > { %p11546_p10 = pnand %p11544_p8, %p11530_p0  ;;  %p11552_p7 = scmp.lt.s32.totalorder %s11550_s8, %s11543_s5 }
  0x42   : > { %p11547_p13 = pneg %p11546_p10  ;;  %p11553_p9 = por %p11552_p7, %p11551_p3 }
  0x44   : > { %p11554_p2 = pnand %p11553_p9, %p11547_p13 }
  0x46   : > { %11557 = shalt.err (!%p11554_p2)
}
  0x47   : > { %s11634_s25 = smov 128   ;;  %s11635_s11 = smov 8  }
  0x48   : > { %11157 = dma.hbm_to_vmem [thread:$0]  (!%p11769_p11), %s11767_s9, 4096, %s11773_s28, %s11775_s10, %s11634_s25, %s11634_s25, %s11635_s11  }
  0x49   : > { %p13835_p0 = scmp.ne.s32.totalorder %s13830_s23, 0 }
  0x4a   : > { %s11806_s12 = sand.u32 (!%p13835_p0), 1, %s11620_s16   ;;  %p13836_p5 = scmp.ne.s32.totalorder (!%p13835_p0), %s13828_s21, 0 }
  0x4b   : > { %196 = sbr.rel (%p13835_p0) target bundleno = 1156 (0x484), region = 36  ;;  %s7920_s13 = sshll.u32 (!%p13835_p0), %s11806_s12, 8 }
  0x4c   : > { %s199_s14 = scalar_lea.sflag (!%p13835_p0), [#allocation5], %s11806_s12  ;;  %s11812_s20 = scalar_lea.vmem (!%p13835_p0), [#allocation4], %s7920_s13 }
  0x52   : > { %11603 = dma.done.wait (%p13836_p5), %s199_s14, 4096  }
  0x53   : > { %11605 = vsyncadd (%p13836_p5), %s199_s14, 4294963200  ;;  %p13837_p11 = scmp.eq.s32.totalorder %s11688_s19, 0 }
  0x55   : > { %11607 = dma.done.wait (%p13837_p11), [#allocation8], 9216   ;;  %p13838_p1 = pmov %p13837_p11 }
  0x56   : > { %v11636_v0 = vmov 0.0   ;;  %v348_v1 = vlaneseq  ;;  %v11208_v2 = vld [vmem:[%s13803_s1 + $0xc0] sm:$0xff]   ;;  %v11210_v5 = vld [vmem:[%s13803_s1 + $0xc8] sm:$0xff]   ;;  %v11212_v7 = vld [vmem:[%s13803_s1 + $0xd0] sm:$0xff]   ;;  %vm11637_vm0 = vmmov 0   ;;  %v11638_v24 = vmov 0  }
  0x57   : > { %11609 = vsyncadd (%p13838_p1), [#allocation8], 4294958080  ;;  %234 = vst [vmem:[#allocation2] sm:$0xff] %v11636_v0  ;;  %v11209_v3 = vld [vmem:[%s13803_s1 + $0xc0] sm:$0xff]   ;;  %9478 = vmatprep.subr.bf16.mxu0 %v11208_v2  ;;  %v11211_v6 = vld [vmem:[%s13803_s1 + $0xc8] sm:$0xff]   ;;  %s13633_s9 = scalar_lea.vmem [#allocation9], %s7920_s13 }
  0x58   : > { %237 = vst [vmem:[#allocation2 + $0x18] sm:$0xff] %v11636_v0  ;;  %235 = vst [vmem:[#allocation2 + $0x8] sm:$0xff] %v11636_v0  ;;  %v11828_v4 = vshrl.u32 %v348_v1, 7  ;;  %9766 = vmatprep.subr.bf16.mxu1 %v11209_v3  ;;  %9479 = vmatpush3.bf16.msra.mxu0 %v11208_v2  ;;  %v11213_v8 = vld [vmem:[%s13803_s1 + $0xd0] sm:$0xff]   ;;  %v11214_v10 = vld [vmem:[%s13803_s1 + $0xd8] sm:$0xff]   ;;  %s8881_s13 = sshll.u32 %s11688_s19, 12 }
  0x59   : > { %236 = vst [vmem:[#allocation2 + $0x10] sm:$0xff] %v11636_v0  ;;  %238 = vst [vmem:[#allocation2 + $0x120] sm:$0xff] %v11636_v0  ;;  %9767 = vmatpush3.bf16.msra.mxu1 %v11209_v3  ;;  %9480 = vmatprep.subr.bf16.mxu0 %v11210_v5  ;;  %v11215_v11 = vld [vmem:[%s13803_s1 + $0xd8] sm:$0xff]   ;;  %v11216_v15 = vld [vmem:[%s13803_s1 + $0xe0] sm:$0xff]   ;;  %s7829_s28 = sshll.u32 %s13633_s9, 4  ;;  %s13753_s6 = scalar_lea.hbm %s13806_s4, %s8881_s13  ;;  %s13755_s28 = int_to_ptr.vmem [resolvable:$true] %s7829_s28 }
  0x5a   : > { %239 = vst [vmem:[#allocation2 + $0x128] sm:$0xff] %v11636_v0  ;;  %240 = vst [vmem:[#allocation2 + $0x130] sm:$0xff] %v11636_v0  ;;  %9768 = vmatprep.subr.bf16.mxu1 %v11211_v6  ;;  %v351_v9 = vadd.s32 16, %v11828_v4  ;;  %v353_v13 = vadd.s32 32, %v11828_v4  ;;  %v355_v16 = vadd.s32 48, %v11828_v4  ;;  %v11217_v17 = vld [vmem:[%s13803_s1 + $0xe0] sm:$0xff]  }
  0x5b   : > { %243 = vst [vmem:[#allocation3 + $0x8] sm:$0xff] %v11636_v0  ;;  %244 = vst [vmem:[#allocation3 + $0x10] sm:$0xff] %v11636_v0  ;;  %v11218_v19 = vld [vmem:[%s13803_s1 + $0xe8] sm:$0xff]   ;;  %v250_v22 = vld [vmem:[%s11812_s20] sm:$0xff]  ;;  %v357_v30 = vadd.s32 64, %v11828_v4  ;;  %v359_v44 = vadd.s32 80, %v11828_v4 }
  0x5c   : > { %245 = vst [vmem:[#allocation3 + $0x18] sm:$0xff] %v11636_v0  ;;  %246 = vst [vmem:[#allocation3 + $0x120] sm:$0xff] %v11636_v0  ;;  %9481 = vmatpush3.bf16.msra.mxu0 %v11210_v5  ;;  %v387_v12 = vand.u32 15, %v351_v9  ;;  %v401_v20 = vand.u32 15, %v353_v13  ;;  %v11219_v21 = vld [vmem:[%s13803_s1 + $0xe8] sm:$0xff]   ;;  %v265_v27 = vld [vmem:[%s11812_s20 + $0x78] sm:$0xff] }
  0x5d   : > { %247 = vst [vmem:[#allocation3 + $0x128] sm:$0xff] %v11636_v0  ;;  %248 = vst [vmem:[#allocation3 + $0x130] sm:$0xff] %v11636_v0  ;;  %9769 = vmatpush3.bf16.msra.mxu1 %v11211_v6  ;;  %9482 = vmatprep.subr.bf16.mxu0 %v11212_v7  ;;  %v251_v23 = vld [vmem:[%s11812_s20 + $0x8] sm:$0xff]  ;;  %v266_v28 = vld [vmem:[%s11812_s20 + $0x80] sm:$0xff]  ;;  %v415_v36 = vand.u32 15, %v355_v16  ;;  %v429_v43 = vand.u32 15, %v357_v30 }
  0x5e   : > { %9770 = vmatprep.subr.bf16.mxu1 %v11213_v8  ;;  %vm11850_vm1 = vmpackc.low %vm11637_vm0, %vm11637_vm0  ;;  %vm11861_vm2 = vcmp.eq.s32.totalorder %v387_v12, 0  ;;  %282 = vst [vmem:[#allocation2 + $0x20] sm:$0xff] %v250_v22  ;;  %v267_v29 = vld [vmem:[%s11812_s20 + $0x88] sm:$0xff]  ;;  %v11886_v31 = vpack.c.bf16 %v251_v23, %v250_v22  ;;  %v11220_v32 = vld [vmem:[%s13803_s1 + $0xf0] sm:$0xff]   ;;  %vm11893_vm4 = vcmp.eq.s32.totalorder %v401_v20, 0  ;;  %v443_v1 = vand.u32 15, %v359_v44 }
  0x5f   : > { %vm631_vm3 = vmpackc.low %vm11861_vm2, %vm11861_vm2  ;;  %283 = vst [vmem:[#allocation2 + $0x28] sm:$0xff] %v251_v23  ;;  %v11879_v25 = vsel %vm11850_vm1, 65537, %v11638_v24  ;;  %v252_v33 = vld [vmem:[%s11812_s20 + $0x10] sm:$0xff]  ;;  %v253_v34 = vld [vmem:[%s11812_s20 + $0x18] sm:$0xff]  ;;  %v11897_v37 = vpack.c.bf16 %v267_v29, %v266_v28  ;;  %vm11916_vm6 = vcmp.eq.s32.totalorder %v415_v36, 0  ;;  %vm11948_vm9 = vcmp.eq.s32.totalorder %v429_v43, 0 }
  0x60   : > { %9483 = vmatpush3.bf16.msra.mxu0 %v11212_v7  ;;  %v651_v26 = vsel %vm631_vm3, 65537, %v11638_v24  ;;  %297 = vst [vmem:[#allocation2 + $0x98] sm:$0xff] %v265_v27  ;;  %298 = vst [vmem:[#allocation2 + $0xa0] sm:$0xff] %v266_v28  ;;  %v11221_v38 = vld [vmem:[%s13803_s1 + $0xf0] sm:$0xff]   ;;  %v11902_v39 = vpack.c.bf16 %v253_v34, %v252_v33  ;;  %v269_v42 = vld [vmem:[%s11812_s20 + $0x98] sm:$0xff]  ;;  %v361_v2 = vadd.s32 96, %v11828_v4 }
  0x61   : > { %9771 = vmatpush3.bf16.msra.mxu1 %v11213_v8  ;;  %9484 = vmatprep.subr.bf16.mxu0 %v11214_v10  ;;  %299 = vst [vmem:[#allocation2 + $0xa8] sm:$0xff] %v267_v29  ;;  %284 = vst [vmem:[#allocation2 + $0x30] sm:$0xff] %v252_v33  ;;  %v7924_v40 = vcombine.low %v651_v26, %v11879_v25  ;;  %v268_v41 = vld [vmem:[%s11812_s20 + $0x90] sm:$0xff]  ;;  %v11222_v46 = vld [vmem:[%s13803_s1 + $0xf8] sm:$0xff]   ;;  %vm11982_vm11 = vcmp.eq.s32.totalorder %v443_v1, 0  ;;  %v363_v35 = vadd.s32 112, %v11828_v4 }
  0x62   : > { %9772 = vmatprep.subr.bf16.mxu1 %v11215_v11  ;;  %285 = vst [vmem:[#allocation2 + $0x38] sm:$0xff] %v253_v34  ;;  %vm633_vm5 = vmpackc.low %vm11893_vm4, %vm11893_vm4  ;;  %v11911_v45 = vpack.c.bf16 %v269_v42, %v268_v41  ;;  %v11223_v48 = vld [vmem:[%s13803_s1 + $0xf8] sm:$0xff]   ;;  %v254_v49 = vld [vmem:[%s11812_s20 + $0x20] sm:$0xff]  ;;  %v457_v20 = vand.u32 15, %v361_v2  ;;  %s7816_s19 = scalar_lea.sflag [#allocation6], %s11806_s12  ;;  %s11639_s5 = smov [#allocation9]  }
  0x63   : > { %300 = vst [vmem:[#allocation2 + $0xb0] sm:$0xff] %v268_v41  ;;  %301 = vst [vmem:[#allocation2 + $0xb8] sm:$0xff] %v269_v42  ;;  %vm11924_vm7 = vcmp.eq.s16.totalorder %v7924_v40, 0  ;;  %v653_v53 = vsel %vm633_vm5, 65537, %v11638_v24  ;;  %v255_v54 = vld [vmem:[%s11812_s20 + $0x28] sm:$0xff]  ;;  %v11224_v62 = vld [vmem:[%s13803_s1] sm:$0xff]  }
  0x64   : > { %9485 = vmatpush3.bf16.msra.mxu0 %v11214_v10  ;;  %286 = vst [vmem:[#allocation2 + $0x40] sm:$0xff] %v254_v49  ;;  %287 = vst [vmem:[#allocation2 + $0x48] sm:$0xff] %v255_v54  ;;  %v11940_v58 = vpack.c.bf16 %v255_v54, %v254_v49  ;;  %v270_v63 = vld [vmem:[%s11812_s20 + $0xa0] sm:$0xff]  ;;  %v7925_v3 = vcombine.low %v653_v53, %v11879_v25  ;;  %v271_v6 = vld [vmem:[%s11812_s20 + $0xa8] sm:$0xff]  ;;  %vm12026_vm15 = vcmp.eq.s32.totalorder %v457_v20, 0  ;;  %v365_v49 = vadd.s32 128, %v11828_v4 }
  0x65   : > { %9773 = vmatpush3.bf16.msra.mxu1 %v11215_v11  ;;  %9486 = vmatprep.subr.bf16.mxu0 %v11216_v15  ;;  %v320_v50 = vld [vmem:[#allocation2 + $0x1f] sm:$0xff]  ;;  %vm635_vm8 = vmpackc.low %vm11916_vm6, %vm11916_vm6  ;;  %302 = vst [vmem:[#allocation2 + $0xc0] sm:$0xff] %v270_v63  ;;  %v256_v7 = vld [vmem:[%s11812_s20 + $0x30] sm:$0xff]  ;;  %v11964_v12 = vpack.c.bf16 %v271_v6, %v270_v63  ;;  %s11562_s7 = sshll.u32 %s11639_s5, 4  ;;  %s11563_s7 = int_to_ptr.vmem [resolvable:$false] %s11562_s7 }
  0x66   : > { %9774 = vmatprep.subr.bf16.mxu1 %v11217_v17  ;;  %v321_v51 = vld [vmem:[#allocation2 + $0x27] sm:$0xff]  ;;  %v655_v5 = vsel %vm635_vm8, 65537, %v11638_v24  ;;  %v257_v8 = vld [vmem:[%s11812_s20 + $0x38] sm:$0xff]  ;;  %303 = vst [vmem:[#allocation2 + $0xc8] sm:$0xff] %v271_v6  ;;  %288 = vst [vmem:[#allocation2 + $0x50] sm:$0xff] %v256_v7  ;;  %vm11986_vm12 = vcmp.eq.s16.totalorder %v7925_v3, 0  ;;  %p11565_p10 = scmp.lt.s32.totalorder %s13755_s28, %s11563_s7 }
  0x67   : > { %v11935_v55 = vpack.c.bf16 %v321_v51, %v320_v50  ;;  %v2532_v56 = vld [vmem:[#allocation2 + $0x9f] sm:$0xff]  ;;  %289 = vst [vmem:[#allocation2 + $0x58] sm:$0xff] %v257_v8  ;;  %v11966_v13 = vpack.c.bf16 %v257_v8, %v256_v7  ;;  %vm637_vm10 = vmpackc.low %vm11948_vm9, %vm11948_vm9  ;;  %v7926_v16 = vcombine.low %v655_v5, %v11879_v25  ;;  %v11227_v27 = vld [vmem:[%s13803_s1 + $0x8] sm:$0xff]   ;;  %s11564_s26 = scalar_lea.vmem %s11563_s7, 8192 }
  0x68   : > { %9487 = vmatpush3.bf16.msra.mxu0 %v11216_v15  ;;  %v2533_v57 = vld [vmem:[#allocation2 + $0xa7] sm:$0xff]  ;;  %v322_v60 = vld [vmem:[#allocation2 + $0x2f] sm:$0xff]  ;;  %v273_v18 = vld [vmem:[%s11812_s20 + $0xb8] sm:$0xff]  ;;  %v657_v29 = vsel %vm637_vm10, 65537, %v11638_v24 }
  0x69   : > { %9775 = vmatpush3.bf16.msra.mxu1 %v11217_v17  ;;  %9488 = vmatprep.subr.bf16.mxu0 %v11218_v19  ;;  %v11942_v59 = vpack.c.bf16 %v2533_v57, %v2532_v56  ;;  %v323_v61 = vld [vmem:[#allocation2 + $0x37] sm:$0xff]  ;;  %v11225_v11 = vld [vmem:[%s13803_s1] sm:$0xff]   ;;  %v11226_v15 = vld [vmem:[%s13803_s1 + $0x8] sm:$0xff]   ;;  %305 = vst [vmem:[#allocation2 + $0xd8] sm:$0xff] %v273_v18  ;;  %vm12011_vm14 = vcmp.eq.s16.totalorder %v7926_v16, 0  ;;  %v7927_v41 = vcombine.low %v657_v29, %v11879_v25 }
  0x6a   : > { %9776 = vmatprep.subr.bf16.mxu1 %v11219_v21  ;;  %9494 = vmatprep.mubr.msk.bf16.mxu0 %vm11924_vm7, %v11935_v55  ;;  %v2534_v9 = vld [vmem:[#allocation2 + $0xaf] sm:$0xff]  ;;  %v2535_v10 = vld [vmem:[#allocation2 + $0xb7] sm:$0xff]  ;;  %v11974_v14 = vpack.c.bf16 %v323_v61, %v322_v60  ;;  %vm639_vm13 = vmpackc.low %vm11982_vm11, %vm11982_vm11 }
  0x6b   : > { %9782 = vmatprep.mubr.msk.bf16.mxu1 %vm11924_vm7, %v11942_v59  ;;  %v272_v17 = vld [vmem:[%s11812_s20 + $0xb0] sm:$0xff]  ;;  %v11990_v22 = vpack.c.bf16 %v2535_v10, %v2534_v9  ;;  %v324_v23 = vld [vmem:[#allocation2 + $0x3f] sm:$0xff]  ;;  %v325_v28 = vld [vmem:[#allocation2 + $0x47] sm:$0xff]  ;;  %v659_v50 = vsel %vm639_vm13, 65537, %v11638_v24  ;;  %vm12062_vm1 = vcmp.eq.s16.totalorder %v7927_v41, 0  ;;  %v485_v9 = vand.u32 15, %v365_v49 }
  0x6c   : > { %9489 = vmatpush3.bf16.msra.mxu0 %v11218_v19  ;;  %304 = vst [vmem:[#allocation2 + $0xd0] sm:$0xff] %v272_v17  ;;  %v11992_v26 = vpack.c.bf16 %v273_v18, %v272_v17  ;;  %v12003_v30 = vpack.c.bf16 %v325_v28, %v324_v23  ;;  %v2536_v33 = vld [vmem:[#allocation2 + $0xbf] sm:$0xff]  ;;  %v11228_v34 = vld [vmem:[%s13803_s1 + $0x10] sm:$0xff]   ;;  %v259_v47 = vld [vmem:[%s11812_s20 + $0x48] sm:$0xff]  ;;  %v7928_v5 = vcombine.low %v659_v50, %v11879_v25 }
  0x6d   : > { %9777 = vmatpush3.bf16.msra.mxu1 %v11219_v21  ;;  %9490 = vmatprep.subr.bf16.mxu0 %v11220_v32  ;;  %v2537_v36 = vld [vmem:[#allocation2 + $0xc7] sm:$0xff]  ;;  %v11229_v42 = vld [vmem:[%s13803_s1 + $0x10] sm:$0xff]   ;;  %291 = vst [vmem:[#allocation2 + $0x68] sm:$0xff] %v259_v47  ;;  %v261_v54 = vld [vmem:[%s11812_s20 + $0x58] sm:$0xff]  ;;  %vm12102_vm4 = vcmp.eq.s32.totalorder %v485_v9, 0 }
  0x6e   : > { %9778 = vmatprep.subr.bf16.mxu1 %v11221_v38  ;;  %v327_v40 = vld [vmem:[#allocation2 + $0x57] sm:$0xff]  ;;  %v12030_v44 = vpack.c.bf16 %v2537_v36, %v2536_v33  ;;  %v275_v51 = vld [vmem:[%s11812_s20 + $0xc8] sm:$0xff]  ;;  %293 = vst [vmem:[#allocation2 + $0x78] sm:$0xff] %v261_v54  ;;  %vm641_vm0 = vmpackc.low %vm12026_vm15, %vm12026_vm15  ;;  %vm12098_vm3 = vcmp.eq.s16.totalorder %v7928_v5, 0  ;;  %v373_v5 = vand.u32 15, %v11828_v4 }
  0x6f   : > { %v260_v53 = vld [vmem:[%s11812_s20 + $0x50] sm:$0xff]  ;;  %307 = vst [vmem:[#allocation2 + $0xe8] sm:$0xff] %v275_v51  ;;  %v11230_v3 = vld [vmem:[%s13803_s1 + $0x18] sm:$0xff]   ;;  %v661_v6 = vsel %vm641_vm0, 65537, %v11638_v24  ;;  %v11232_v16 = vld [vmem:[%s13803_s1 + $0x20] sm:$0xff]  }
  0x70   : > { %9491 = vmatpush3.bf16.msra.mxu0 %v11220_v32  ;;  %292 = vst [vmem:[#allocation2 + $0x70] sm:$0xff] %v260_v53  ;;  %v12060_v0 = vpack.c.bf16 %v261_v54, %v260_v53  ;;  %v276_v7 = vld [vmem:[%s11812_s20 + $0xd0] sm:$0xff]  ;;  %v277_v8 = vld [vmem:[%s11812_s20 + $0xd8] sm:$0xff]  ;;  %v11233_v17 = vld [vmem:[%s13803_s1 + $0x20] sm:$0xff]   ;;  %vm12166_vm9 = vcmp.eq.s32.totalorder %v373_v5, 0 }
  0x71   : > { %9779 = vmatpush3.bf16.msra.mxu1 %v11221_v38  ;;  %9492 = vmatprep.subr.bf16.mxu0 %v11222_v46  ;;  %v326_v38 = vld [vmem:[#allocation2 + $0x4f] sm:$0xff]  ;;  %v11231_v10 = vld [vmem:[%s13803_s1 + $0x18] sm:$0xff]   ;;  %308 = vst [vmem:[#allocation2 + $0xf0] sm:$0xff] %v276_v7  ;;  %309 = vst [vmem:[#allocation2 + $0xf8] sm:$0xff] %v277_v8 }
  0x72   : > { %9780 = vmatprep.subr.bf16.mxu1 %v11223_v48  ;;  %v12053_v57 = vpack.c.bf16 %v327_v40, %v326_v38  ;;  %v262_v18 = vld [vmem:[%s11812_s20 + $0x60] sm:$0xff]  ;;  %v11234_v41 = vld [vmem:[%s13803_s1 + $0x28] sm:$0xff]   ;;  %v12130_v49 = vld [vmem:[%s11812_s20 + $0x70] sm:$0xff] }
  0x73   : > { %v2538_v60 = vld [vmem:[#allocation2 + $0xcf] sm:$0xff]  ;;  %v2539_v61 = vld [vmem:[#allocation2 + $0xd7] sm:$0xff]  ;;  %294 = vst [vmem:[#allocation2 + $0x80] sm:$0xff] %v262_v18  ;;  %v278_v43 = vld [vmem:[%s11812_s20 + $0xe0] sm:$0xff] }
  0x74   : > { %9493 = vmatpush3.bf16.msra.mxu0 %v11222_v46  ;;  %v258_v46 = vld [vmem:[%s11812_s20 + $0x40] sm:$0xff]  ;;  %v12066_v2 = vpack.c.bf16 %v2539_v61, %v2538_v60  ;;  %310 = vst [vmem:[#allocation2 + $0x100] sm:$0xff] %v278_v43  ;;  %vm645_vm8 = vmpackc.low %vm12102_vm4, %vm12102_vm4  ;;  %v11236_v9 = vld [vmem:[%s13803_s1 + $0x30] sm:$0xff]  }
  0x75   : > { %9781 = vmatpush3.bf16.msra.mxu1 %v11223_v48  ;;  %9510 = vmatprep.subr.bf16.mxu0 %v11224_v62  ;;  %v274_v48 = vld [vmem:[%s11812_s20 + $0xc0] sm:$0xff]  ;;  %290 = vst [vmem:[#allocation2 + $0x60] sm:$0xff] %v258_v46  ;;  %v12048_v56 = vpack.c.bf16 %v259_v47, %v258_v46  ;;  %v13867_v46 = vmov 0  ;;  %296 = vst [vmem:[#allocation2 + $0x90] sm:$0xff] %v12130_v49  ;;  %v665_v54 = vsel %vm645_vm8, 65537, %v11638_v24  ;;  %v11247_v19 = vld [vmem:[%s13803_s1 + $0x198] sm:$0xff]  }
  0x76   : > { %9798 = vmatprep.subr.bf16.mxu1 %v11225_v11  ;;  %306 = vst [vmem:[#allocation2 + $0xe0] sm:$0xff] %v274_v48  ;;  %v12058_v63 = vpack.c.bf16 %v275_v51, %v274_v48  ;;  %v279_v48 = vld [vmem:[%s11812_s20 + $0xe8] sm:$0xff]  ;;  %vm629_vm13 = vmpackc.low %vm12166_vm9, %vm12166_vm9  ;;  %v11396_v52 = vld [vmem:[#allocation7 + $0x198] sm:$0xff]  }
  0x77   : > { %9495 = vmatmul.mubr.msk.bf16.vlgmr.msra.gmra.mrb[0].mxu0 %vm11986_vm12, %v11974_v14  ;;  %v331_v36 = vld [vmem:[#allocation2 + $0x77] sm:$0xff]  ;;  %311 = vst [vmem:[#allocation2 + $0x108] sm:$0xff] %v279_v48  ;;  %v12142_v60 = vpack.c.bf16 %v279_v48, %v278_v43 }
  0x78   : > { %9783 = vmatmul.mubr.msk.bf16.vlgmr.msra.gmra.mrb[0].mxu1 %vm11986_vm12, %v11990_v22  ;;  %9511 = vmatpush3.bf16.msra.mxu0 %v11224_v62  ;;  %v471_v62 = vand.u32 15, %v363_v35  ;;  %v330_v35 = vld [vmem:[#allocation2 + $0x6f] sm:$0xff]  ;;  %v2543_v53 = vld [vmem:[#allocation2 + $0xf7] sm:$0xff] }
  0x79   : > { %9799 = vmatpush3.bf16.msra.mxu1 %v11225_v11  ;;  %9512 = vmatprep.subr.bf16.mxu0 %v11226_v15  ;;  %v12078_v11 = vpack.c.bf16 %v277_v8, %v276_v7  ;;  %v12110_v40 = vpack.c.bf16 %v331_v36, %v330_v35  ;;  %v2542_v51 = vld [vmem:[#allocation2 + $0xef] sm:$0xff]  ;;  %v281_v7 = vld [vmem:[%s11812_s20 + $0xf8] sm:$0xff]  ;;  %v7931_v8 = vcombine.low %v665_v54, %v11879_v25 }
  0x7a   : > { %9800 = vmatprep.subr.bf16.mxu1 %v11227_v27  ;;  %9498 = vmatprep.mubr.msk.bf16.mxu0 %vm12011_vm14, %v12003_v30  ;;  %vm12094_vm2 = vcmp.eq.s32.totalorder %v471_v62, 0  ;;  %v12144_v61 = vpack.c.bf16 %v2543_v53, %v2542_v51  ;;  %v11235_v62 = vld [vmem:[%s13803_s1 + $0x28] sm:$0xff]   ;;  %313 = vst [vmem:[#allocation2 + $0x118] sm:$0xff] %v281_v7  ;;  %v11239_v48 = vld [vmem:[%s13803_s1 + $0x38] sm:$0xff]   ;;  %v649_v51 = vsel %vm629_vm13, 65537, %v11638_v24  ;;  %v11410_v21 = vld [vmem:[#allocation7 + $0x50] sm:$0xff]  }
  0x7b   : > { %9786 = vmatprep.mubr.msk.bf16.mxu1 %vm12011_vm14, %v12030_v44  ;;  %vm643_vm5 = vmpackc.low %vm12094_vm2, %vm12094_vm2  ;;  %vm12179_vm11 = vcmp.eq.s16.totalorder %v7931_v8, 0  ;;  %v13875_v8 = vmov 0 }
  0x7c   : > { %9513 = vmatpush3.bf16.msra.mxu0 %v11226_v15  ;;  %v7929_v15 = vcombine.low %v661_v6, %v11879_v25  ;;  %v328_v20 = vld [vmem:[#allocation2 + $0x5f] sm:$0xff]  ;;  %v329_v23 = vld [vmem:[#allocation2 + $0x67] sm:$0xff]  ;;  %v663_v47 = vsel %vm643_vm5, 65537, %v11638_v24  ;;  %v335_v36 = vld [vmem:[#allocation2 + $0x97] sm:$0xff] }
  0x7d   : > { %9801 = vmatpush3.bf16.msra.mxu1 %v11227_v27  ;;  %9514 = vmatprep.subr.bf16.mxu0 %v11228_v34  ;;  %v13863_v27 = vmov 0  ;;  %v2540_v28 = vld [vmem:[#allocation2 + $0xdf] sm:$0xff]  ;;  %v12106_v33 = vpack.c.bf16 %v329_v23, %v328_v20  ;;  %v7930_v6 = vcombine.low %v663_v47, %v11879_v25  ;;  %v13871_v20 = vmov 0 }
  0x7e   : > { %9802 = vmatprep.subr.bf16.mxu1 %v11229_v42  ;;  %v13864_v27 = vsel %vm12098_vm3, 4294967295, %v13863_v27  ;;  %vm12123_vm6 = vcmp.eq.s16.totalorder %v7929_v15, 0  ;;  %v11237_v15 = vld [vmem:[%s13803_s1 + $0x30] sm:$0xff]   ;;  %v2544_v23 = vld [vmem:[#allocation2 + $0xff] sm:$0xff] }
  0x7f   : > { %9499 = vmatmul.mubr.msk.bf16.gmra.mrb[4].mxu0 %vm12062_vm1, %v12053_v57  ;;  %v13868_v46 = vsel %vm12123_vm6, 4294967295, %v13867_v46  ;;  %vm12170_vm10 = vcmp.eq.s16.totalorder %v7930_v6, 0 }
  0x80   : > { %9787 = vmatmul.mubr.msk.bf16.gmra.mrb[4].mxu1 %vm12062_vm1, %v12066_v2  ;;  %9515 = vmatpush3.bf16.msra.mxu0 %v11228_v34  ;;  %v2541_v34 = vld [vmem:[#allocation2 + $0xe7] sm:$0xff]  ;;  %v13872_v20 = vsel %vm12170_vm10, 4294967295, %v13871_v20 }
  0x81   : > { %9803 = vmatpush3.bf16.msra.mxu1 %v11229_v42  ;;  %9516 = vmatprep.subr.bf16.mxu0 %v11230_v3  ;;  %v12108_v38 = vpack.c.bf16 %v2541_v34, %v2540_v28  ;;  %v263_v42 = vld [vmem:[%s11812_s20 + $0x68] sm:$0xff]  ;;  %v319_v28 = vld [vmem:[#allocation2 + $0x17] sm:$0xff] }
  0x82   : > { %9804 = vmatprep.subr.bf16.mxu1 %v11231_v10  ;;  %9502 = vmatprep.mubr.msk.bf16.mxu0 %vm12098_vm3, %v12106_v33  ;;  %295 = vst [vmem:[#allocation2 + $0x88] sm:$0xff] %v263_v42  ;;  %v12135_v50 = vpack.c.bf16 %v263_v42, %v262_v18  ;;  %v318_v18 = vld [vmem:[#allocation2 + $0xf] sm:$0xff]  ;;  %v2545_v34 = vld [vmem:[#allocation2 + $0x107] sm:$0xff]  ;;  %v13873_v42 = vmov 0 }
  0x83   : > { %9790 = vmatprep.mubr.msk.bf16.mxu1 %vm12098_vm3, %v12108_v38  ;;  %v13874_v42 = vsel %vm12179_vm11, 4294967295, %v13873_v42  ;;  %v12183_v43 = vpack.c.bf16 %v2545_v34, %v2544_v23  ;;  %v338_v54 = vpack.c.bf16 %v319_v28, %v318_v18  ;;  %v11246_v18 = vld [vmem:[%s13803_s1 + $0x198] sm:$0xff]   ;;  %v11249_v23 = vld [vmem:[%s13803_s1 + $0x1a0] sm:$0xff]   ;;  %v11251_v28 = vld [vmem:[%s13803_s1 + $0x1a8] sm:$0xff]  }
  0x84   : > { %9517 = vmatpush3.bf16.msra.mxu0 %v11230_v3  ;;  %v280_v3 = vld [vmem:[%s11812_s20 + $0xf0] sm:$0xff] }
  0x85   : > { %9805 = vmatpush3.bf16.msra.mxu1 %v11231_v10  ;;  %9518 = vmatprep.subr.bf16.mxu0 %v11232_v16  ;;  %312 = vst [vmem:[#allocation2 + $0x110] sm:$0xff] %v280_v3  ;;  %v332_v10 = vld [vmem:[#allocation2 + $0x7f] sm:$0xff]  ;;  %v12204_v5 = vpack.c.bf16 %v281_v7, %v280_v3  ;;  %v11242_v7 = vld [vmem:[%s13803_s1 + $0x188] sm:$0xff]   ;;  %v11252_v34 = vld [vmem:[%s13803_s1 + $0x1b0] sm:$0xff]  }
  0x86   : > { %9806 = vmatprep.subr.bf16.mxu1 %v11233_v17  ;;  %v11241_v3 = vld [vmem:[%s13803_s1 + $0x180] sm:$0xff]  }
  0x87   : > { %9503 = vmatmul.mubr.msk.bf16.gmra.mrb[8].mxu0 %vm12123_vm6, %v12110_v40 }
  0x88   : > { %9791 = vmatmul.mubr.msk.bf16.gmra.mrb[8].mxu1 %vm12123_vm6, %v12144_v61  ;;  %9519 = vmatpush3.bf16.msra.mxu0 %v11232_v16 }
  0x89   : > { %9807 = vmatpush3.bf16.msra.mxu1 %v11233_v17  ;;  %9520 = vmatprep.subr.bf16.mxu0 %v11234_v41  ;;  %v333_v16 = vld [vmem:[#allocation2 + $0x87] sm:$0xff]  ;;  %v11238_v17 = vld [vmem:[%s13803_s1 + $0x38] sm:$0xff]   ;;  %v334_v35 = vld [vmem:[#allocation2 + $0x8f] sm:$0xff] }
  0x8a   : > { %9808 = vmatprep.subr.bf16.mxu1 %v11235_v62  ;;  %v12177_v29 = vpack.c.bf16 %v333_v16, %v332_v10  ;;  %v12185_v47 = vpack.c.bf16 %v335_v36, %v334_v35  ;;  %9794 = vmatprep.mubr.msk.bf16.mxu1 %vm12170_vm10, %v12183_v43  ;;  %v11240_v10 = vld [vmem:[%s13803_s1 + $0x180] sm:$0xff]   ;;  %v11253_v35 = vld [vmem:[%s13803_s1 + $0x1b0] sm:$0xff]   ;;  %v11254_v36 = vld [vmem:[%s13803_s1 + $0x1b8] sm:$0xff]  }
  0x8b   : > { %v11248_v16 = vld [vmem:[%s13803_s1 + $0x1a0] sm:$0xff]  }
  0x8c   : > { %9521 = vmatpush3.bf16.msra.mxu0 %v11234_v41  ;;  %9506 = vmatprep.mubr.msk.bf16.mxu0 %vm12170_vm10, %v12177_v29  ;;  %v2546_v41 = vld [vmem:[#allocation2 + $0x10f] sm:$0xff]  ;;  %v2547_v53 = vld [vmem:[#allocation2 + $0x117] sm:$0xff] }
  0x8d   : > { %9809 = vmatpush3.bf16.msra.mxu1 %v11235_v62  ;;  %9522 = vmatprep.subr.bf16.mxu0 %v11236_v9  ;;  %v7923_v62 = vcombine.low %v649_v51, %v11879_v25  ;;  %v12206_v6 = vpack.c.bf16 %v2547_v53, %v2546_v41  ;;  %v11255_v41 = vld [vmem:[%s13803_s1 + $0x1b8] sm:$0xff]   ;;  %v11257_v51 = vld [vmem:[%s13803_s1 + $0x40] sm:$0xff]   ;;  %v367_v53 = vadd.s32 144, %v11828_v4 }
  0x8e   : > { %9810 = vmatprep.subr.bf16.mxu1 %v11237_v15 }
  0x8f   : > { %9507 = vmatmul.mubr.msk.bf16.gmra.mrb[12].mxu0 %vm12179_vm11, %v12185_v47  ;;  %vm12208_vm15 = vcmp.eq.s16.totalorder %v7923_v62, 0  ;;  %v11262_v62 = vld [vmem:[%s13803_s1 + $0x58] sm:$0xff]  }
  0x90   : > { %9523 = vmatpush3.bf16.msra.mxu0 %v11236_v9  ;;  %v13876_v8 = vsel %vm12208_vm15, 4294967295, %v13875_v8  ;;  %9795 = vmatmul.mubr.msk.bf16.gmra.mrb[12].mxu1 %vm12179_vm11, %v12206_v6  ;;  %v11243_v9 = vld [vmem:[%s13803_s1 + $0x188] sm:$0xff]  }
  0x91   : > { %9811 = vmatpush3.bf16.msra.mxu1 %v11237_v15  ;;  %9524 = vmatprep.subr.bf16.mxu0 %v11238_v17  ;;  %v11244_v15 = vld [vmem:[%s13803_s1 + $0x190] sm:$0xff]  }
  0x92   : > { %9812 = vmatprep.subr.bf16.mxu1 %v11239_v48  ;;  %9526 = vmatprep.mubr.msk.bf16.mxu0 %vm12208_vm15, %v338_v54  ;;  %v11260_v54 = vld [vmem:[%s13803_s1 + $0x50] sm:$0xff]  }
  0x93   : > { %9814 = vmatprep.mubr.msk.bf16.mxu1 %vm12208_vm15, %v12185_v47 }
  0x94   : > { %9525 = vmatpush3.bf16.msra.mxu0 %v11238_v17  ;;  %v11250_v17 = vld [vmem:[%s13803_s1 + $0x1a8] sm:$0xff]  }
  0x95   : > { %9813 = vmatpush3.bf16.msra.mxu1 %v11239_v48  ;;  %9542 = vmatprep.subr.bf16.mxu0 %v11240_v10  ;;  %v11256_v48 = vld [vmem:[%s13803_s1 + $0x40] sm:$0xff]  }
  0x96   : > { %9830 = vmatprep.subr.bf16.mxu1 %v11241_v3 }
  0x97   : > { %9527 = vmatmul.mubr.msk.bf16.vlgmr.msra.gmra.mrb[0].mxu0 %vm11924_vm7, %v11935_v55  ;;  %v11245_v55 = vld [vmem:[%s13803_s1 + $0x190] sm:$0xff]  }
  0x98   : > { %9543 = vmatpush3.bf16.msra.mxu0 %v11240_v10  ;;  %9530 = vmatprep.mubr.msk.bf16.mxu0 %vm11986_vm12, %v11974_v14  ;;  %v11264_v10 = vld [vmem:[%s13803_s1 + $0x60] sm:$0xff]  }
  0x99   : > { %9544 = vmatprep.subr.bf16.mxu0 %v11242_v7  ;;  %9815 = vmatmul.mubr.msk.bf16.vlgmr.msra.gmra.mrb[0].mxu1 %vm11924_vm7, %v11942_v59 }
  0x9a   : > { %9831 = vmatpush3.bf16.msra.mxu1 %v11241_v3  ;;  %9818 = vmatprep.mubr.msk.bf16.mxu1 %vm11986_vm12, %v11990_v22 }
  0x9b   : > { %9832 = vmatprep.subr.bf16.mxu1 %v11243_v9 }
  0x9c   : > { %9545 = vmatpush3.bf16.msra.mxu0 %v11242_v7  ;;  %v11268_v7 = vld [vmem:[%s13803_s1 + $0x70] sm:$0xff]  }
  0x9d   : > { %9546 = vmatprep.subr.bf16.mxu0 %v11244_v15 }
  0x9e   : > { %9833 = vmatpush3.bf16.msra.mxu1 %v11243_v9  ;;  %v2549_v9 = vld [vmem:[#allocation2 + $0x127] sm:$0xff] }
  0x9f   : > { %9531 = vmatmul.mubr.msk.bf16.gmra.mrb[4].mxu0 %vm12011_vm14, %v12003_v30  ;;  %9834 = vmatprep.subr.bf16.mxu1 %v11245_v55 }
  0xa0   : > { %9547 = vmatpush3.bf16.msra.mxu0 %v11244_v15  ;;  %9534 = vmatprep.mubr.msk.bf16.mxu0 %vm12062_vm1, %v12053_v57  ;;  %v13879_v15 = vmov 0 }
  0xa1   : > { %9548 = vmatprep.subr.bf16.mxu0 %v11246_v18  ;;  %9819 = vmatmul.mubr.msk.bf16.gmra.mrb[4].mxu1 %vm12011_vm14, %v12030_v44 }
  0xa2   : > { %9835 = vmatpush3.bf16.msra.mxu1 %v11245_v55  ;;  %9822 = vmatprep.mubr.msk.bf16.mxu1 %vm12062_vm1, %v12066_v2  ;;  %v11496_v55 = vld [vmem:[#allocation2] sm:$0xff] }
  0xa3   : > { %9836 = vmatprep.subr.bf16.mxu1 %v11247_v19 }
  0xa4   : > { %9549 = vmatpush3.bf16.msra.mxu0 %v11246_v18  ;;  %v12411_v18 = vpack.c.bf16 %v11496_v55, %v11496_v55  ;;  %v358_v55 = vadd.s32 72, %v11828_v4 }
  0xa5   : > { %9550 = vmatprep.subr.bf16.mxu0 %v11248_v16 }
  0xa6   : > { %9837 = vmatpush3.bf16.msra.mxu1 %v11247_v19  ;;  %v11497_v19 = vld [vmem:[#allocation2 + $0x98] sm:$0xff] }
  0xa7   : > { %9535 = vmatmul.mubr.msk.bf16.gmra.mrb[8].mxu0 %vm12098_vm3, %v12106_v33  ;;  %9838 = vmatprep.subr.bf16.mxu1 %v11249_v23 }
  0xa8   : > { %9551 = vmatpush3.bf16.msra.mxu0 %v11248_v16  ;;  %9538 = vmatprep.mubr.msk.bf16.mxu0 %vm12123_vm6, %v12110_v40  ;;  %v3089_v16 = vpack.c.bf16 %v11497_v19, %v12130_v49  ;;  %v11274_v49 = vld [vmem:[%s13803_s1 + $0x108] sm:$0xff]  }
  0xa9   : > { %9552 = vmatprep.subr.bf16.mxu0 %v11250_v17  ;;  %9823 = vmatmul.mubr.msk.bf16.gmra.mrb[8].mxu1 %vm12098_vm3, %v12108_v38 }
  0xaa   : > { %9839 = vmatpush3.bf16.msra.mxu1 %v11249_v23  ;;  %9826 = vmatprep.mubr.msk.bf16.mxu1 %vm12123_vm6, %v12144_v61  ;;  %v11271_v23 = vld [vmem:[%s13803_s1 + $0x78] sm:$0xff]  }
  0xab   : > { %9840 = vmatprep.subr.bf16.mxu1 %v11251_v28 }
  0xac   : > { %9553 = vmatpush3.bf16.msra.mxu0 %v11250_v17  ;;  %v11272_v17 = vld [vmem:[%s13803_s1 + $0x100] sm:$0xff]  }
  0xad   : > { %9554 = vmatprep.subr.bf16.mxu0 %v11252_v34 }
  0xae   : > { %9841 = vmatpush3.bf16.msra.mxu1 %v11251_v28  ;;  %v11275_v28 = vld [vmem:[%s13803_s1 + $0x108] sm:$0xff]  }
  0xaf   : > { %9539 = vmatmul.mubr.msk.bf16.gmra.mrb[12].mxu0 %vm12170_vm10, %v12177_v29  ;;  %9842 = vmatprep.subr.bf16.mxu1 %v11253_v35 }
  0xb0   : > { %9555 = vmatpush3.bf16.msra.mxu0 %v11252_v34  ;;  %9558 = vmatprep.mubr.msk.bf16.mxu0 %vm11986_vm12, %v11974_v14  ;;  %v11258_v14 = vld [vmem:[%s13803_s1 + $0x48] sm:$0xff]   ;;  %v11276_v34 = vld [vmem:[%s13803_s1 + $0x110] sm:$0xff]  }
  0xb1   : > { %9556 = vmatprep.subr.bf16.mxu0 %v11254_v36  ;;  %9827 = vmatmul.mubr.msk.bf16.gmra.mrb[12].mxu1 %vm12170_vm10, %v12183_v43 }
  0xb2   : > { %9843 = vmatpush3.bf16.msra.mxu1 %v11253_v35  ;;  %9846 = vmatprep.mubr.msk.bf16.mxu1 %vm11986_vm12, %v11990_v22  ;;  %v11259_v22 = vld [vmem:[%s13803_s1 + $0x48] sm:$0xff]   ;;  %v11277_v35 = vld [vmem:[%s13803_s1 + $0x110] sm:$0xff]  }
  0xb3   : > { %9844 = vmatprep.subr.bf16.mxu1 %v11255_v41 }
  0xb4   : > { %9557 = vmatpush3.bf16.msra.mxu0 %v11254_v36  ;;  %v11278_v36 = vld [vmem:[%s13803_s1 + $0x118] sm:$0xff]  }
  0xb5   : > { %9574 = vmatprep.subr.bf16.mxu0 %v11256_v48 }
  0xb6   : > { %9845 = vmatpush3.bf16.msra.mxu1 %v11255_v41  ;;  %v11279_v41 = vld [vmem:[%s13803_s1 + $0x118] sm:$0xff]  }
  0xb7   : > { %9559 = vmatmul.mubr.msk.bf16.vlgmr.msra.gmra.mrb[0].mxu0 %vm12011_vm14, %v12003_v30  ;;  %9862 = vmatprep.subr.bf16.mxu1 %v11257_v51  ;;  %v499_v30 = vand.u32 15, %v367_v53  ;;  %v11283_v53 = vld [vmem:[%s13803_s1 + $0x128] sm:$0xff]  }
  0xb8   : > { %9575 = vmatpush3.bf16.msra.mxu0 %v11256_v48  ;;  %9562 = vmatprep.mubr.msk.bf16.mxu0 %vm12062_vm1, %v12053_v57  ;;  %v11261_v57 = vld [vmem:[%s13803_s1 + $0x50] sm:$0xff]   ;;  %v11280_v48 = vld [vmem:[%s13803_s1 + $0x120] sm:$0xff]  }
  0xb9   : > { %9576 = vmatprep.subr.bf16.mxu0 %v11258_v14  ;;  %9847 = vmatmul.mubr.msk.bf16.vlgmr.msra.gmra.mrb[0].mxu1 %vm12011_vm14, %v12030_v44  ;;  %vm12353_vm0 = vcmp.eq.s32.totalorder %v499_v30, 0  ;;  %v11286_v30 = vld [vmem:[%s13803_s1 + $0x138] sm:$0xff]   ;;  %v11289_v44 = vld [vmem:[%s13803_s1 + $0x1c0] sm:$0xff]  }
  0xba   : > { %9863 = vmatpush3.bf16.msra.mxu1 %v11257_v51  ;;  %9850 = vmatprep.mubr.msk.bf16.mxu1 %vm12062_vm1, %v12066_v2  ;;  %v11263_v2 = vld [vmem:[%s13803_s1 + $0x58] sm:$0xff]   ;;  %vm647_vm2 = vmpackc.low %vm12353_vm0, %vm12353_vm0  ;;  %v11281_v51 = vld [vmem:[%s13803_s1 + $0x120] sm:$0xff]  }
  0xbb   : > { %9864 = vmatprep.subr.bf16.mxu1 %v11259_v22 }
  0xbc   : > { %9577 = vmatpush3.bf16.msra.mxu0 %v11258_v14  ;;  %v11282_v14 = vld [vmem:[%s13803_s1 + $0x128] sm:$0xff]  }
  0xbd   : > { %9578 = vmatprep.subr.bf16.mxu0 %v11260_v54 }
  0xbe   : > { %9865 = vmatpush3.bf16.msra.mxu1 %v11259_v22  ;;  %v11284_v22 = vld [vmem:[%s13803_s1 + $0x130] sm:$0xff]  }
  0xbf   : > { %9563 = vmatmul.mubr.msk.bf16.gmra.mrb[4].mxu0 %vm12098_vm3, %v12106_v33  ;;  %9866 = vmatprep.subr.bf16.mxu1 %v11261_v57  ;;  %v11265_v33 = vld [vmem:[%s13803_s1 + $0x60] sm:$0xff]  }
  0xc0   : > { %9579 = vmatpush3.bf16.msra.mxu0 %v11260_v54  ;;  %9566 = vmatprep.mubr.msk.bf16.mxu0 %vm12123_vm6, %v12110_v40  ;;  %v667_v40 = vsel %vm647_vm2, 65537, %v11638_v24  ;;  %v11285_v54 = vld [vmem:[%s13803_s1 + $0x130] sm:$0xff]  }
  0xc1   : > { %9580 = vmatprep.subr.bf16.mxu0 %v11262_v62  ;;  %9851 = vmatmul.mubr.msk.bf16.gmra.mrb[4].mxu1 %vm12098_vm3, %v12108_v38  ;;  %v11266_v38 = vld [vmem:[%s13803_s1 + $0x68] sm:$0xff]   ;;  %v7932_v3 = vcombine.low %v667_v40, %v11879_v25  ;;  %v354_v40 = vadd.s32 40, %v11828_v4 }
  0xc2   : > { %9867 = vmatpush3.bf16.msra.mxu1 %v11261_v57  ;;  %9854 = vmatprep.mubr.msk.bf16.mxu1 %vm12123_vm6, %v12144_v61  ;;  %v11267_v61 = vld [vmem:[%s13803_s1 + $0x68] sm:$0xff]   ;;  %v11287_v57 = vld [vmem:[%s13803_s1 + $0x138] sm:$0xff]  }
  0xc3   : > { %9868 = vmatprep.subr.bf16.mxu1 %v11263_v2  ;;  %vm12401_vm4 = vcmp.eq.s16.totalorder %v7932_v3, 0  ;;  %v11293_v3 = vld [vmem:[%s13803_s1 + $0x1d0] sm:$0xff]  }
  0xc4   : > { %9581 = vmatpush3.bf16.msra.mxu0 %v11262_v62  ;;  %v13880_v15 = vsel %vm12401_vm4, 4294967295, %v13879_v15  ;;  %v11288_v62 = vld [vmem:[%s13803_s1 + $0x1c0] sm:$0xff]  }
  0xc5   : > { %9582 = vmatprep.subr.bf16.mxu0 %v11264_v10 }
  0xc6   : > { %9869 = vmatpush3.bf16.msra.mxu1 %v11263_v2  ;;  %v350_v2 = vadd.s32 8, %v11828_v4 }
  0xc7   : > { %9567 = vmatmul.mubr.msk.bf16.gmra.mrb[8].mxu0 %vm12170_vm10, %v12177_v29  ;;  %9870 = vmatprep.subr.bf16.mxu1 %v11265_v33  ;;  %v2548_v29 = vld [vmem:[#allocation2 + $0x11f] sm:$0xff] }
  0xc8   : > { %9583 = vmatpush3.bf16.msra.mxu0 %v11264_v10  ;;  %9570 = vmatprep.mubr.msk.bf16.mxu0 %vm12179_vm11, %v12185_v47  ;;  %v11269_v47 = vld [vmem:[%s13803_s1 + $0x70] sm:$0xff]   ;;  %v352_v10 = vadd.s32 24, %v11828_v4 }
  0xc9   : > { %9584 = vmatprep.subr.bf16.mxu0 %v11266_v38  ;;  %9855 = vmatmul.mubr.msk.bf16.gmra.mrb[8].mxu1 %vm12170_vm10, %v12183_v43  ;;  %v11270_v43 = vld [vmem:[%s13803_s1 + $0x78] sm:$0xff]  }
  0xca   : > { %9871 = vmatpush3.bf16.msra.mxu1 %v11265_v33  ;;  %9858 = vmatprep.mubr.msk.bf16.mxu1 %vm12179_vm11, %v12206_v6  ;;  %v2559_v6 = vpack.c.bf16 %v2549_v9, %v2548_v29  ;;  %v11292_v33 = vld [vmem:[%s13803_s1 + $0x1d0] sm:$0xff]   ;;  %v11294_v29 = vld [vmem:[%s13803_s1 + $0x1d8] sm:$0xff]  }
  0xcb   : > { %9872 = vmatprep.subr.bf16.mxu1 %v11267_v61 }
  0xcc   : > { %9585 = vmatpush3.bf16.msra.mxu0 %v11266_v38  ;;  %v380_v38 = vand.u32 15, %v350_v2  ;;  %v11498_v2 = vld [vmem:[#allocation2 + $0x90] sm:$0xff] }
  0xcd   : > { %9586 = vmatprep.subr.bf16.mxu0 %v11268_v7 }
  0xce   : > { %9873 = vmatpush3.bf16.msra.mxu1 %v11267_v61  ;;  %v394_v61 = vand.u32 15, %v352_v10  ;;  %vm12516_vm5 = vcmp.eq.s32.totalorder %v380_v38, 15  ;;  %v11321_v38 = vld [vmem:[%s13803_s1 + $0x140] sm:$0xff]  }
  0xcf   : > { %9571 = vmatmul.mubr.msk.bf16.gmra.mrb[12].mxu0 %vm12401_vm4, %v11942_v59  ;;  %9874 = vmatprep.subr.bf16.mxu1 %v11269_v47  ;;  %v11273_v59 = vld [vmem:[%s13803_s1 + $0x100] sm:$0xff]   ;;  %vm13899_vm3 = vmpackc.low %vm12516_vm5, %vm12516_vm5 }
  0xd0   : > { %9587 = vmatpush3.bf16.msra.mxu0 %v11268_v7  ;;  %9590 = vmatprep.mubr.bf16.mxu0 %v12411_v18  ;;  %v356_v7 = vadd.s32 56, %v11828_v4  ;;  %vm12521_vm8 = vcmp.eq.s32.totalorder %v394_v61, 15  ;;  %v11304_v61 = vld [vmem:[%s13803_s1 + $0x80] sm:$0xff]  }
  0xd1   : > { %9588 = vmatprep.subr.bf16.mxu0 %v11270_v43  ;;  %9859 = vmatmul.mubr.msk.bf16.gmra.mrb[12].mxu1 %vm12401_vm4, %v2559_v6  ;;  %v11295_v6 = vld [vmem:[%s13803_s1 + $0x1d8] sm:$0xff]  }
  0xd2   : > { %9875 = vmatpush3.bf16.msra.mxu1 %v11269_v47  ;;  %9878 = vmatprep.mubr.bf16.mxu1 %v3089_v16  ;;  %v408_v47 = vand.u32 15, %v354_v40  ;;  %v422_v19 = vand.u32 15, %v356_v7  ;;  %v11296_v16 = vld [vmem:[%s13803_s1 + $0x1e0] sm:$0xff]   ;;  %v11303_v40 = vld [vmem:[%s13803_s1 + $0x1f8] sm:$0xff]  }
  0xd3   : > { %9876 = vmatprep.subr.bf16.mxu1 %v11271_v23  ;;  %v11305_v7 = vld [vmem:[%s13803_s1 + $0x80] sm:$0xff]  }
  0xd4   : > { %9589 = vmatpush3.bf16.msra.mxu0 %v11270_v43  ;;  %vm12535_vm9 = vcmp.eq.s32.totalorder %v408_v47, 15  ;;  %vm12556_vm0 = vcmp.eq.s32.totalorder %v422_v19, 15  ;;  %v11306_v43 = vld [vmem:[%s13803_s1 + $0x88] sm:$0xff]  }
  0xd5   : > { %9606 = vmatprep.subr.bf16.mxu0 %v11272_v17  ;;  %vm13901_vm5 = vmpackc.low %vm12535_vm9, %vm12535_vm9 }
  0xd6   : > { %9877 = vmatpush3.bf16.msra.mxu1 %v11271_v23  ;;  %v360_v23 = vadd.s32 88, %v11828_v4  ;;  %vm13902_vm2 = vmpackc.low %vm12556_vm0, %vm12556_vm0 }
  0xd7   : > { %9591 = vmatmul.mubr.bf16.vlgmr.msra.gmra.mrb[0].mxu0 %v11886_v31  ;;  %9894 = vmatprep.subr.bf16.mxu1 %v11273_v59  ;;  %v12658_v9 = vsel %vm13902_vm2, 65537, %v11638_v24 }
  0xd8   : > { %9607 = vmatpush3.bf16.msra.mxu0 %v11272_v17  ;;  %9594 = vmatprep.mubr.bf16.mxu0 %v11902_v39  ;;  %v11309_v17 = vld [vmem:[%s13803_s1 + $0x90] sm:$0xff]  }
  0xd9   : > { %9608 = vmatprep.subr.bf16.mxu0 %v11274_v49  ;;  %9879 = vmatmul.mubr.bf16.vlgmr.msra.gmra.mrb[0].mxu1 %v11897_v37 }
  0xda   : > { %9895 = vmatpush3.bf16.msra.mxu1 %v11273_v59  ;;  %9882 = vmatprep.mubr.bf16.mxu1 %v11911_v45  ;;  %v362_v59 = vadd.s32 104, %v11828_v4 }
  0xdb   : > { %9896 = vmatprep.subr.bf16.mxu1 %v11275_v28 }
  0xdc   : > { %9609 = vmatpush3.bf16.msra.mxu0 %v11274_v49  ;;  %v436_v49 = vand.u32 15, %v358_v55 }
  0xdd   : > { %9610 = vmatprep.subr.bf16.mxu0 %v11276_v34 }
  0xde   : > { %9897 = vmatpush3.bf16.msra.mxu1 %v11275_v28  ;;  %v364_v28 = vadd.s32 120, %v11828_v4  ;;  %vm12563_vm4 = vcmp.eq.s32.totalorder %v436_v49, 15  ;;  %v1239_v49 = vld [vmem:[#allocation2 + $0xa8] sm:$0xff] }
  0xdf   : > { %9595 = vmatmul.mubr.bf16.gmra.mrb[4].mxu0 %v11940_v58  ;;  %9898 = vmatprep.subr.bf16.mxu1 %v11277_v35 }
  0xe0   : > { %9611 = vmatpush3.bf16.msra.mxu0 %v11276_v34  ;;  %9598 = vmatprep.mubr.bf16.mxu0 %v11966_v13  ;;  %v11297_v34 = vld [vmem:[%s13803_s1 + $0x1e0] sm:$0xff]  }
  0xe1   : > { %9612 = vmatprep.subr.bf16.mxu0 %v11278_v36  ;;  %9883 = vmatmul.mubr.bf16.gmra.mrb[4].mxu1 %v11964_v12 }
  0xe2   : > { %9899 = vmatpush3.bf16.msra.mxu1 %v11277_v35  ;;  %9886 = vmatprep.mubr.bf16.mxu1 %v11992_v26  ;;  %v366_v35 = vadd.s32 136, %v11828_v4 }
  0xe3   : > { %9900 = vmatprep.subr.bf16.mxu1 %v11279_v41 }
  0xe4   : > { %9613 = vmatpush3.bf16.msra.mxu0 %v11278_v36  ;;  %v11298_v36 = vld [vmem:[%s13803_s1 + $0x1e8] sm:$0xff]  }
  0xe5   : > { %9614 = vmatprep.subr.bf16.mxu0 %v11280_v48 }
  0xe6   : > { %9901 = vmatpush3.bf16.msra.mxu1 %v11279_v41  ;;  %v450_v41 = vand.u32 15, %v360_v23  ;;  %v11308_v23 = vld [vmem:[%s13803_s1 + $0x90] sm:$0xff]  }
  0xe7   : > { %9599 = vmatmul.mubr.bf16.gmra.mrb[8].mxu0 %v12048_v56  ;;  %9902 = vmatprep.subr.bf16.mxu1 %v11281_v51 }
  0xe8   : > { %9615 = vmatpush3.bf16.msra.mxu0 %v11280_v48  ;;  %9602 = vmatprep.mubr.bf16.mxu0 %v12060_v0  ;;  %v11299_v48 = vld [vmem:[%s13803_s1 + $0x1e8] sm:$0xff]   ;;  %vm12574_vm15 = vcmp.eq.s32.totalorder %v450_v41, 15  ;;  %v3630_v41 = vld [vmem:[#allocation2 + $0x91] sm:$0xff] }
  0xe9   : > { %9616 = vmatprep.subr.bf16.mxu0 %v11282_v14  ;;  %9887 = vmatmul.mubr.bf16.gmra.mrb[8].mxu1 %v12058_v63  ;;  %vm13904_vm9 = vmpackc.low %vm12574_vm15, %vm12574_vm15 }
  0xea   : > { %9903 = vmatpush3.bf16.msra.mxu1 %v11281_v51  ;;  %9890 = vmatprep.mubr.bf16.mxu1 %v12078_v11  ;;  %v1237_v51 = vld [vmem:[#allocation2 + $0x98] sm:$0xff]  ;;  %v12678_v55 = vsel %vm13904_vm9, 65537, %v11638_v24 }
  0xeb   : > { %9904 = vmatprep.subr.bf16.mxu1 %v11283_v53  ;;  %v12590_v10 = vpack.c.bf16 %v1237_v51, %v11498_v2  ;;  %v1789_v2 = vld [vmem:[#allocation2 + $0x39] sm:$0xff] }
  0xec   : > { %9617 = vmatpush3.bf16.msra.mxu0 %v11282_v14  ;;  %v464_v14 = vand.u32 15, %v362_v59 }
  0xed   : > { %9618 = vmatprep.subr.bf16.mxu0 %v11284_v22 }
  0xee   : > { %9905 = vmatpush3.bf16.msra.mxu1 %v11283_v53  ;;  %vm12585_vm11 = vcmp.eq.s32.totalorder %v464_v14, 15  ;;  %v11318_v53 = vld [vmem:[%s13803_s1 + $0xb8] sm:$0xff]  }
  0xef   : > { %9603 = vmatmul.mubr.bf16.gmra.mrb[12].mxu0 %v12135_v50  ;;  %9906 = vmatprep.subr.bf16.mxu1 %v11285_v54 }
  0xf0   : > { %9619 = vmatpush3.bf16.msra.mxu0 %v11284_v22  ;;  %9622 = vmatprep.mubr.bf16.mxu0 %v11886_v31  ;;  %v11290_v31 = vld [vmem:[%s13803_s1 + $0x1c8] sm:$0xff]   ;;  %v478_v22 = vand.u32 15, %v364_v28 }
  0xf1   : > { %9620 = vmatprep.subr.bf16.mxu0 %v11286_v30  ;;  %9891 = vmatmul.mubr.bf16.gmra.mrb[12].mxu1 %v12142_v60 }
  0xf2   : > { %9907 = vmatpush3.bf16.msra.mxu1 %v11285_v54  ;;  %9910 = vmatprep.mubr.bf16.mxu1 %v11897_v37  ;;  %v11291_v37 = vld [vmem:[%s13803_s1 + $0x1c8] sm:$0xff]   ;;  %vm12598_vm10 = vcmp.eq.s32.totalorder %v478_v22, 15  ;;  %v11319_v54 = vld [vmem:[%s13803_s1 + $0xb8] sm:$0xff]  }
  0xf3   : > { %9908 = vmatprep.subr.bf16.mxu1 %v11287_v57  ;;  %vm1849_vm13 = vmpackc.low %vm12598_vm10, %vm12598_vm10 }
  0xf4   : > { %9621 = vmatpush3.bf16.msra.mxu0 %v11286_v30  ;;  %v492_v30 = vand.u32 15, %v366_v35  ;;  %v1785_v35 = vld [vmem:[#allocation2 + $0x19] sm:$0xff] }
  0xf5   : > { %9638 = vmatprep.subr.bf16.mxu0 %v11288_v62 }
  0xf6   : > { %9909 = vmatpush3.bf16.msra.mxu1 %v11287_v57  ;;  %v11300_v57 = vld [vmem:[%s13803_s1 + $0x1f0] sm:$0xff]   ;;  %vm12605_vm6 = vcmp.eq.s32.totalorder %v492_v30, 15  ;;  %v1786_v30 = vld [vmem:[#allocation2 + $0x21] sm:$0xff] }
  0xf7   : > { %9623 = vmatmul.mubr.bf16.vlgmr.msra.gmra.mrb[0].mxu0 %v11902_v39  ;;  %9926 = vmatprep.subr.bf16.mxu1 %v11289_v44  ;;  %vm13906_vm15 = vmpackc.low %vm12605_vm6, %vm12605_vm6 }
  0xf8   : > { %9639 = vmatpush3.bf16.msra.mxu0 %v11288_v62  ;;  %9626 = vmatprep.mubr.bf16.mxu0 %v11940_v58  ;;  %v12702_v19 = vsel %vm13906_vm15, 65537, %v11638_v24 }
  0xf9   : > { %9640 = vmatprep.subr.bf16.mxu0 %v11290_v31  ;;  %9911 = vmatmul.mubr.bf16.vlgmr.msra.gmra.mrb[0].mxu1 %v11911_v45 }
  0xfa   : > { %9927 = vmatpush3.bf16.msra.mxu1 %v11289_v44  ;;  %9914 = vmatprep.mubr.bf16.mxu1 %v11964_v12  ;;  %v11301_v44 = vld [vmem:[%s13803_s1 + $0x1f0] sm:$0xff]  }
  0xfb   : > { %9928 = vmatprep.subr.bf16.mxu1 %v11291_v37 }
  0xfc   : > { %9641 = vmatpush3.bf16.msra.mxu0 %v11290_v31  ;;  %v1788_v31 = vld [vmem:[#allocation2 + $0x31] sm:$0xff] }
  0xfd   : > { %9642 = vmatprep.subr.bf16.mxu0 %v11292_v33 }
  0xfe   : > { %9929 = vmatpush3.bf16.msra.mxu1 %v11291_v37  ;;  %v11302_v37 = vld [vmem:[%s13803_s1 + $0x1f8] sm:$0xff]  }
  0xff   : > { %9627 = vmatmul.mubr.bf16.gmra.mrb[4].mxu0 %v11966_v13  ;;  %9930 = vmatprep.subr.bf16.mxu1 %v11293_v3 }
 0x100   : > { %9643 = vmatpush3.bf16.msra.mxu0 %v11292_v33  ;;  %9630 = vmatprep.mubr.bf16.mxu0 %v12048_v56  ;;  %v3633_v33 = vld [vmem:[#allocation2 + $0xa9] sm:$0xff] }
 0x101   : > { %9644 = vmatprep.subr.bf16.mxu0 %v11294_v29  ;;  %9915 = vmatmul.mubr.bf16.gmra.mrb[4].mxu1 %v11992_v26 }
 0x102   : > { %9931 = vmatpush3.bf16.msra.mxu1 %v11293_v3  ;;  %9918 = vmatprep.mubr.bf16.mxu1 %v12058_v63  ;;  %v1855_v3 = vsel %vm13899_vm3, 65537, %v11638_v24  ;;  %vm13900_vm3 = vmpackc.low %vm12521_vm8, %vm12521_vm8 }
 0x103   : > { %9932 = vmatprep.subr.bf16.mxu1 %v11295_v6  ;;  %vm13903_vm8 = vmpackc.low %vm12563_vm4, %vm12563_vm4  ;;  %v8109_v59 = vcombine.low %v11879_v25, %v1855_v3 }
 0x104   : > { %9645 = vmatpush3.bf16.msra.mxu0 %v11294_v29  ;;  %v12642_v29 = vsel %vm13900_vm3, 65537, %v11638_v24  ;;  %v12666_v47 = vsel %vm13903_vm8, 65537, %v11638_v24  ;;  %vm13905_vm4 = vmpackc.low %vm12585_vm11, %vm12585_vm11 }
 0x105   : > { %9646 = vmatprep.subr.bf16.mxu0 %v11296_v16  ;;  %vm12740_vm6 = vcmp.eq.s16.totalorder %v8109_v59, 0  ;;  %v8113_v3 = vcombine.low %v11879_v25, %v12666_v47  ;;  %v11323_v47 = vld [vmem:[%s13803_s1 + $0x148] sm:$0xff]  }
 0x106   : > { %9933 = vmatpush3.bf16.msra.mxu1 %v11295_v6  ;;  %v12686_v6 = vsel %vm13905_vm4, 65537, %v11638_v24  ;;  %v3636_v59 = vld [vmem:[#allocation2 + $0xc1] sm:$0xff] }
 0x107   : > { %9631 = vmatmul.mubr.bf16.gmra.mrb[8].mxu0 %v12060_v0  ;;  %9934 = vmatprep.subr.bf16.mxu1 %v11297_v34  ;;  %vm12806_vm0 = vcmp.eq.s16.totalorder %v8113_v3, 0  ;;  %v1798_v3 = vld [vmem:[#allocation2 + $0x81] sm:$0xff] }
 0x108   : > { %9647 = vmatpush3.bf16.msra.mxu0 %v11296_v16  ;;  %9634 = vmatprep.mubr.bf16.mxu0 %v12135_v50  ;;  %v11307_v16 = vld [vmem:[%s13803_s1 + $0x88] sm:$0xff]  }
 0x109   : > { %9648 = vmatprep.subr.bf16.mxu0 %v11298_v36  ;;  %9919 = vmatmul.mubr.bf16.gmra.mrb[8].mxu1 %v12078_v11 }
 0x10a   : > { %9935 = vmatpush3.bf16.msra.mxu1 %v11297_v34  ;;  %9922 = vmatprep.mubr.bf16.mxu1 %v12142_v60  ;;  %v1784_v34 = vld [vmem:[#allocation2 + $0x11] sm:$0xff] }
 0x10b   : > { %9936 = vmatprep.subr.bf16.mxu1 %v11299_v48  ;;  %v1804_v22 = vpack.c.bf16 %v1785_v35, %v1784_v34  ;;  %v11326_v34 = vld [vmem:[%s13803_s1 + $0x158] sm:$0xff]   ;;  %v13612_v35 = vld [vmem:[%s13805_s3 + $0x2] ss:$0 sm:$0xff] }
 0x10c   : > { %9649 = vmatpush3.bf16.msra.mxu0 %v11298_v36  ;;  %v8110_v36 = vcombine.low %v11879_v25, %v12642_v29  ;;  %v7167_v29 = vld [vmem:[#allocation3 + $0x129] sm:$0xff] }
 0x10d   : > { %9650 = vmatprep.subr.bf16.mxu0 %v11300_v57 }
 0x10e   : > { %9937 = vmatpush3.bf16.msra.mxu1 %v11299_v48  ;;  %v3631_v48 = vld [vmem:[#allocation2 + $0x99] sm:$0xff]  ;;  %vm12761_vm10 = vcmp.eq.s16.totalorder %v8110_v36, 0 }
 0x10f   : > { %9635 = vmatmul.mubr.bf16.gmra.mrb[12].mxu0 %v12590_v10  ;;  %9938 = vmatprep.subr.bf16.mxu1 %v11301_v44  ;;  %v12772_v62 = vpack.c.bf16 %v3631_v48, %v3630_v41  ;;  %v1794_v41 = vld [vmem:[#allocation2 + $0x61] sm:$0xff]  ;;  %v1795_v48 = vld [vmem:[#allocation2 + $0x69] sm:$0xff] }
 0x110   : > { %9651 = vmatpush3.bf16.msra.mxu0 %v11300_v57  ;;  %9654 = vmatprep.mubr.bf16.mxu0 %v11902_v39  ;;  %v12650_v39 = vsel %vm13901_vm5, 65537, %v11638_v24  ;;  %v1787_v57 = vld [vmem:[#allocation2 + $0x29] sm:$0xff] }
 0x111   : > { %9652 = vmatprep.subr.bf16.mxu0 %v11302_v37  ;;  %9923 = vmatmul.mubr.bf16.gmra.mrb[12].mxu1 %v12204_v5  ;;  %v8111_v51 = vcombine.low %v11879_v25, %v12650_v39  ;;  %v12799_v39 = vpack.c.bf16 %v1789_v2, %v1788_v31  ;;  %v11329_v31 = vld [vmem:[%s13803_s1 + $0x160] sm:$0xff]   ;;  %v3642_v2 = vld [vmem:[#allocation2 + $0xf1] sm:$0xff] }
 0x112   : > { %9939 = vmatpush3.bf16.msra.mxu1 %v11301_v44  ;;  %9942 = vmatprep.mubr.bf16.mxu1 %v11911_v45  ;;  %v12694_v45 = vsel %vm1849_vm13, 65537, %v11638_v24  ;;  %v11320_v44 = vld [vmem:[%s13803_s1 + $0x140] sm:$0xff]  }
 0x113   : > { %9940 = vmatprep.subr.bf16.mxu1 %v11303_v40  ;;  %vm12768_vm11 = vcmp.eq.s16.totalorder %v8111_v51, 0  ;;  %v13617_v51 = vld [vmem:[%s13805_s3 + $0x3] ss:$0 sm:$0xff] }
 0x114   : > { %9653 = vmatpush3.bf16.msra.mxu0 %v11302_v37  ;;  %v3632_v37 = vld [vmem:[#allocation2 + $0xa1] sm:$0xff] }
 0x115   : > { %9670 = vmatprep.subr.bf16.mxu0 %v11304_v61 }
 0x116   : > { %9941 = vmatpush3.bf16.msra.mxu1 %v11303_v40  ;;  %v3634_v40 = vld [vmem:[#allocation2 + $0xb1] sm:$0xff] }
 0x117   : > { %9655 = vmatmul.mubr.bf16.vlgmr.msra.gmra.mrb[0].mxu0 %v11940_v58  ;;  %9958 = vmatprep.subr.bf16.mxu1 %v11305_v7  ;;  %v11310_v58 = vld [vmem:[%s13803_s1 + $0x98] sm:$0xff]  }
 0x118   : > { %9671 = vmatpush3.bf16.msra.mxu0 %v11304_v61  ;;  %9658 = vmatprep.mubr.bf16.mxu0 %v11966_v13  ;;  %v11311_v13 = vld [vmem:[%s13803_s1 + $0x98] sm:$0xff]  }
 0x119   : > { %9672 = vmatprep.subr.bf16.mxu0 %v11306_v43  ;;  %9943 = vmatmul.mubr.bf16.vlgmr.msra.gmra.mrb[0].mxu1 %v11964_v12  ;;  %v11312_v12 = vld [vmem:[%s13803_s1 + $0xa0] sm:$0xff]  }
 0x11a   : > { %9959 = vmatpush3.bf16.msra.mxu1 %v11305_v7  ;;  %9946 = vmatprep.mubr.bf16.mxu1 %v11992_v26  ;;  %v11313_v26 = vld [vmem:[%s13803_s1 + $0xa0] sm:$0xff]   ;;  %v12790_v7 = vpack.c.bf16 %v1787_v57, %v1786_v30  ;;  %v8116_v30 = vcombine.low %v11879_v25, %v12694_v45  ;;  %v12876_v45 = vpack.c.bf16 %v1795_v48, %v1794_v41  ;;  %v11343_v41 = vld [vmem:[%s13803_s1 + $0x218] sm:$0xff]  }
 0x11b   : > { %9960 = vmatprep.subr.bf16.mxu1 %v11307_v16  ;;  %v3635_v61 = vld [vmem:[#allocation2 + $0xb9] sm:$0xff]  ;;  %v3640_v57 = vld [vmem:[#allocation2 + $0xe1] sm:$0xff] }
 0x11c   : > { %9673 = vmatpush3.bf16.msra.mxu0 %v11306_v43  ;;  %v1790_v43 = vld [vmem:[#allocation2 + $0x41] sm:$0xff]  ;;  %vm12881_vm5 = vcmp.eq.s16.totalorder %v8116_v30, 0 }
 0x11d   : > { %9674 = vmatprep.subr.bf16.mxu0 %v11308_v23  ;;  %v11344_v48 = vld [vmem:[%s13803_s1 + $0x220] sm:$0xff]   ;;  %v11347_v30 = vld [vmem:[%s13803_s1 + $0x228] sm:$0xff]  }
 0x11e   : > { %9961 = vmatpush3.bf16.msra.mxu1 %v11307_v16  ;;  %v1791_v16 = vld [vmem:[#allocation2 + $0x49] sm:$0xff] }
 0x11f   : > { %9659 = vmatmul.mubr.bf16.gmra.mrb[4].mxu0 %v12048_v56  ;;  %9962 = vmatprep.subr.bf16.mxu1 %v11309_v17  ;;  %v11314_v56 = vld [vmem:[%s13803_s1 + $0xa8] sm:$0xff]  }
 0x120   : > { %9675 = vmatpush3.bf16.msra.mxu0 %v11308_v23  ;;  %9662 = vmatprep.mubr.bf16.mxu0 %v12060_v0  ;;  %v1238_v0 = vld [vmem:[#allocation2 + $0xa0] sm:$0xff] }
 0x121   : > { %9676 = vmatprep.subr.bf16.mxu0 %v11310_v58  ;;  %9947 = vmatmul.mubr.bf16.gmra.mrb[4].mxu1 %v12058_v63  ;;  %v11315_v63 = vld [vmem:[%s13803_s1 + $0xa8] sm:$0xff]   ;;  %v1249_v14 = vpack.c.bf16 %v1239_v49, %v1238_v0  ;;  %v3638_v0 = vld [vmem:[#allocation2 + $0xd1] sm:$0xff]  ;;  %v3639_v49 = vld [vmem:[#allocation2 + $0xd9] sm:$0xff] }
 0x122   : > { %9963 = vmatpush3.bf16.msra.mxu1 %v11309_v17  ;;  %9950 = vmatprep.mubr.bf16.mxu1 %v12078_v11  ;;  %v11316_v11 = vld [vmem:[%s13803_s1 + $0xb0] sm:$0xff]   ;;  %v12813_v17 = vpack.c.bf16 %v3635_v61, %v3634_v40  ;;  %v11331_v61 = vld [vmem:[%s13803_s1 + $0x168] sm:$0xff]  }
 0x123   : > { %9964 = vmatprep.subr.bf16.mxu1 %v11311_v13 }
 0x124   : > { %9677 = vmatpush3.bf16.msra.mxu0 %v11310_v58  ;;  %v11324_v58 = vld [vmem:[%s13803_s1 + $0x150] sm:$0xff]  }
 0x125   : > { %9678 = vmatprep.subr.bf16.mxu0 %v11312_v12 }
 0x126   : > { %9965 = vmatpush3.bf16.msra.mxu1 %v11311_v13  ;;  %v1792_v13 = vld [vmem:[#allocation2 + $0x51] sm:$0xff] }
 0x127   : > { %9663 = vmatmul.mubr.bf16.gmra.mrb[8].mxu0 %v12135_v50  ;;  %9966 = vmatprep.subr.bf16.mxu1 %v11313_v26  ;;  %v11317_v50 = vld [vmem:[%s13803_s1 + $0xb0] sm:$0xff]  }
 0x128   : > { %9679 = vmatpush3.bf16.msra.mxu0 %v11312_v12  ;;  %9666 = vmatprep.mubr.bf16.mxu0 %v12590_v10  ;;  %v8112_v10 = vcombine.low %v11879_v25, %v12658_v9  ;;  %v12801_v9 = vpack.c.bf16 %v3633_v33, %v3632_v37  ;;  %v1793_v12 = vld [vmem:[#allocation2 + $0x59] sm:$0xff]  ;;  %v11330_v37 = vld [vmem:[%s13803_s1 + $0x168] sm:$0xff]   ;;  %v13921_v33 = vmov 0 }
 0x129   : > { %9680 = vmatprep.subr.bf16.mxu0 %v11314_v56  ;;  %9951 = vmatmul.mubr.bf16.gmra.mrb[8].mxu1 %v12142_v60  ;;  %v12843_v36 = vpack.c.bf16 %v1793_v12, %v1792_v13  ;;  %v13922_v33 = vsel %vm12881_vm5, 4294967295, %v13921_v33  ;;  %v11333_v13 = vld [vmem:[%s13803_s1 + $0x170] sm:$0xff]  }
 0x12a   : > { %9967 = vmatpush3.bf16.msra.mxu1 %v11313_v26  ;;  %9954 = vmatprep.mubr.bf16.mxu1 %v12204_v5  ;;  %vm12795_vm13 = vcmp.eq.s16.totalorder %v8112_v10, 0  ;;  %v8114_v26 = vcombine.low %v11879_v25, %v12678_v55  ;;  %v8115_v55 = vcombine.low %v11879_v25, %v12686_v6  ;;  %v3643_v10 = vld [vmem:[#allocation2 + $0xf9] sm:$0xff]  ;;  %v11490_v60 = vld [vmem:[#allocation7 + $0x210] sm:$0xff]   ;;  %v7166_v5 = vld [vmem:[#allocation3 + $0x121] sm:$0xff] }
 0x12b   : > { %9968 = vmatprep.subr.bf16.mxu1 %v11315_v63  ;;  %v7177_v23 = vpack.c.bf16 %v7167_v29, %v7166_v5  ;;  %v5995_v5 = vld [vmem:[%s11812_s20 + $0x58] sm:$0xff] }
 0x12c   : > { %9681 = vmatpush3.bf16.msra.mxu0 %v11314_v56  ;;  %v3637_v56 = vld [vmem:[#allocation2 + $0xc9] sm:$0xff]  ;;  %vm12839_vm2 = vcmp.eq.s16.totalorder %v8114_v26, 0  ;;  %vm12850_vm3 = vcmp.eq.s16.totalorder %v8115_v55, 0  ;;  %v11334_v26 = vld [vmem:[%s13803_s1 + $0x178] sm:$0xff]  }
 0x12d   : > { %9682 = vmatprep.subr.bf16.mxu0 %v11316_v11  ;;  %v12845_v6 = vpack.c.bf16 %v3637_v56, %v3636_v59  ;;  %v11335_v56 = vld [vmem:[%s13803_s1 + $0x178] sm:$0xff]   ;;  %v11340_v55 = vld [vmem:[%s13803_s1 + $0x210] sm:$0xff]  }
 0x12e   : > { %9969 = vmatpush3.bf16.msra.mxu1 %v11315_v63  ;;  %v11325_v63 = vld [vmem:[%s13803_s1 + $0x150] sm:$0xff]  }
 0x12f   : > { %9667 = vmatmul.mubr.bf16.gmra.mrb[12].mxu0 %v1249_v14  ;;  %9970 = vmatprep.subr.bf16.mxu1 %v11317_v50  ;;  %v12857_v14 = vpack.c.bf16 %v3639_v49, %v3638_v0  ;;  %v11337_v0 = vld [vmem:[%s13803_s1 + $0x200] sm:$0xff]   ;;  %v11338_v49 = vld [vmem:[%s13803_s1 + $0x208] sm:$0xff]  }
 0x130   : > { %9683 = vmatpush3.bf16.msra.mxu0 %v11316_v11  ;;  %9686 = vmatprep.mubr.msk.bf16.mxu0 %vm12740_vm6, %v1804_v22  ;;  %v12834_v11 = vpack.c.bf16 %v1791_v16, %v1790_v43  ;;  %v1796_v22 = vld [vmem:[#allocation2 + $0x71] sm:$0xff]  ;;  %v3644_v16 = vld [vmem:[#allocation2 + $0x101] sm:$0xff] }
 0x131   : > { %9684 = vmatprep.subr.bf16.mxu0 %v11318_v53  ;;  %9955 = vmatmul.mubr.bf16.gmra.mrb[12].mxu1 %v12411_v18  ;;  %v11322_v18 = vld [vmem:[%s13803_s1 + $0x148] sm:$0xff]   ;;  %v11332_v43 = vld [vmem:[%s13803_s1 + $0x170] sm:$0xff]  }
 0x132   : > { %9971 = vmatpush3.bf16.msra.mxu1 %v11317_v50  ;;  %9974 = vmatprep.mubr.msk.bf16.mxu1 %vm12740_vm6, %v12772_v62  ;;  %v11327_v50 = vld [vmem:[%s13803_s1 + $0x158] sm:$0xff]  }
 0x133   : > { %9972 = vmatprep.subr.bf16.mxu1 %v11319_v54 }
 0x134   : > { %9685 = vmatpush3.bf16.msra.mxu0 %v11318_v53  ;;  %v11328_v53 = vld [vmem:[%s13803_s1 + $0x160] sm:$0xff]  }
 0x135   : > { %9702 = vmatprep.subr.bf16.mxu0 %v11320_v44 }
 0x136   : > { %9973 = vmatpush3.bf16.msra.mxu1 %v11319_v54  ;;  %v1797_v54 = vld [vmem:[#allocation2 + $0x79] sm:$0xff] }
 0x137   : > { %9687 = vmatmul.mubr.msk.bf16.vlgmr.msra.gmra.mrb[0].mxu0 %vm12761_vm10, %v12790_v7  ;;  %9990 = vmatprep.subr.bf16.mxu1 %v11321_v38 }
 0x138   : > { %9703 = vmatpush3.bf16.msra.mxu0 %v11320_v44  ;;  %9690 = vmatprep.mubr.msk.bf16.mxu0 %vm12768_vm11, %v12799_v39  ;;  %v3641_v44 = vld [vmem:[#allocation2 + $0xe9] sm:$0xff] }
 0x139   : > { %9704 = vmatprep.subr.bf16.mxu0 %v11322_v18  ;;  %9975 = vmatmul.mubr.msk.bf16.vlgmr.msra.gmra.mrb[0].mxu1 %vm12761_vm10, %v12801_v9  ;;  %v12887_v40 = vpack.c.bf16 %v3641_v44, %v3640_v57  ;;  %v11348_v57 = vld [vmem:[%s13803_s1 + $0x230] sm:$0xff]  }
 0x13a   : > { %9991 = vmatpush3.bf16.msra.mxu1 %v11321_v38  ;;  %9978 = vmatprep.mubr.msk.bf16.mxu1 %vm12768_vm11, %v12813_v17  ;;  %v12885_v38 = vpack.c.bf16 %v1797_v54, %v1796_v22  ;;  %v11345_v22 = vld [vmem:[%s13803_s1 + $0x220] sm:$0xff]   ;;  %v13923_v54 = vmov 0  ;;  %v3646_v44 = vld [vmem:[#allocation2 + $0x111] sm:$0xff] }
 0x13b   : > { %9992 = vmatprep.subr.bf16.mxu1 %v11323_v47 }
 0x13c   : > { %9705 = vmatpush3.bf16.msra.mxu0 %v11322_v18  ;;  %v1799_v18 = vld [vmem:[#allocation2 + $0x89] sm:$0xff] }
 0x13d   : > { %9706 = vmatprep.subr.bf16.mxu0 %v11324_v58  ;;  %v12912_v12 = vpack.c.bf16 %v1799_v18, %v1798_v3  ;;  %v11352_v3 = vld [vmem:[#allocation7 + $0xc0] sm:$0xff]   ;;  %v11353_v18 = vld [vmem:[#allocation7 + $0xc8] sm:$0xff]  }
 0x13e   : > { %9993 = vmatpush3.bf16.msra.mxu1 %v11323_v47  ;;  %v12895_v47 = vpack.c.bf16 %v3643_v10, %v3642_v2  ;;  %v11349_v2 = vld [vmem:[%s13803_s1 + $0x230] sm:$0xff]   ;;  %v11350_v10 = vld [vmem:[%s13803_s1 + $0x238] sm:$0xff]  }
 0x13f   : > { %9691 = vmatmul.mubr.msk.bf16.gmra.mrb[4].mxu0 %vm12795_vm13, %v12834_v11  ;;  %9994 = vmatprep.subr.bf16.mxu1 %v11325_v63 }
 0x140   : > { %9707 = vmatpush3.bf16.msra.mxu0 %v11324_v58  ;;  %9694 = vmatprep.mubr.msk.bf16.mxu0 %vm12806_vm0, %v12843_v36  ;;  %v3645_v58 = vld [vmem:[#allocation2 + $0x109] sm:$0xff] }
 0x141   : > { %9708 = vmatprep.subr.bf16.mxu0 %v11326_v34  ;;  %9979 = vmatmul.mubr.msk.bf16.gmra.mrb[4].mxu1 %vm12795_vm13, %v12845_v6  ;;  %v12917_v59 = vpack.c.bf16 %v3645_v58, %v3644_v16  ;;  %v11362_v16 = vld [vmem:[#allocation7 + $0xd0] sm:$0xff]   ;;  %v13082_v58 = vld [vmem:[#allocation7] sm:$0xff]  }
 0x142   : > { %9995 = vmatpush3.bf16.msra.mxu1 %v11325_v63  ;;  %9982 = vmatprep.mubr.msk.bf16.mxu1 %vm12806_vm0, %v12857_v14  ;;  %v11336_v63 = vld [vmem:[%s13803_s1 + $0x200] sm:$0xff]  }
 0x143   : > { %9996 = vmatprep.subr.bf16.mxu1 %v11327_v50 }
 0x144   : > { %9709 = vmatpush3.bf16.msra.mxu0 %v11326_v34  ;;  %v11341_v34 = vld [vmem:[%s13803_s1 + $0x210] sm:$0xff]  }
 0x145   : > { %9710 = vmatprep.subr.bf16.mxu0 %v11328_v53 }
 0x146   : > { %9997 = vmatpush3.bf16.msra.mxu1 %v11327_v50  ;;  %v11342_v50 = vld [vmem:[%s13803_s1 + $0x218] sm:$0xff]  }
 0x147   : > { %9695 = vmatmul.mubr.msk.bf16.gmra.mrb[8].mxu0 %vm12839_vm2, %v12876_v45  ;;  %9998 = vmatprep.subr.bf16.mxu1 %v11329_v31 }
 0x148   : > { %9711 = vmatpush3.bf16.msra.mxu0 %v11328_v53  ;;  %9698 = vmatprep.mubr.msk.bf16.mxu0 %vm12850_vm3, %v12885_v38  ;;  %v8117_v53 = vcombine.low %v11879_v25, %v12702_v19  ;;  %v11346_v19 = vld [vmem:[%s13803_s1 + $0x228] sm:$0xff]  }
 0x149   : > { %9712 = vmatprep.subr.bf16.mxu0 %v11330_v37  ;;  %9983 = vmatmul.mubr.msk.bf16.gmra.mrb[8].mxu1 %vm12839_vm2, %v12887_v40 }
 0x14a   : > { %9999 = vmatpush3.bf16.msra.mxu1 %v11329_v31  ;;  %9986 = vmatprep.mubr.msk.bf16.mxu1 %vm12850_vm3, %v12895_v47  ;;  %vm12993_vm8 = vcmp.eq.s16.totalorder %v8117_v53, 0  ;;  %v3647_v31 = vld [vmem:[#allocation2 + $0x119] sm:$0xff] }
 0x14b   : > { %10000 = vmatprep.subr.bf16.mxu1 %v11331_v61  ;;  %v13924_v54 = vsel %vm12993_vm8, 4294967295, %v13923_v54 }
 0x14c   : > { %9713 = vmatpush3.bf16.msra.mxu0 %v11330_v37  ;;  %v3658_v37 = vpack.c.bf16 %v3647_v31, %v3646_v44 }
 0x14d   : > { %9714 = vmatprep.subr.bf16.mxu0 %v11332_v43 }
 0x14e   : > { %10001 = vmatpush3.bf16.msra.mxu1 %v11331_v61  ;;  %v11351_v61 = vld [vmem:[%s13803_s1 + $0x238] sm:$0xff]  }
 0x14f   : > { %9699 = vmatmul.mubr.msk.bf16.gmra.mrb[12].mxu0 %vm12881_vm5, %v12912_v12  ;;  %10002 = vmatprep.subr.bf16.mxu1 %v11333_v13 }
 0x150   : > { %9715 = vmatpush3.bf16.msra.mxu0 %v11332_v43  ;;  %9718 = vmatprep.mubr.msk.bf16.mxu0 %vm12761_vm10, %v12790_v7  ;;  %v11339_v7 = vld [vmem:[%s13803_s1 + $0x208] sm:$0xff]   ;;  %v11354_v43 = vld [vmem:[#allocation7 + $0xd0] sm:$0xff]  }
 0x151   : > { %9716 = vmatprep.subr.bf16.mxu0 %v11334_v26  ;;  %9987 = vmatmul.mubr.msk.bf16.gmra.mrb[12].mxu1 %vm12881_vm5, %v12917_v59 }
 0x152   : > { %10003 = vmatpush3.bf16.msra.mxu1 %v11333_v13  ;;  %10006 = vmatprep.mubr.msk.bf16.mxu1 %vm12761_vm10, %v12801_v9  ;;  %v11364_v13 = vld [vmem:[#allocation7 + $0xd8] sm:$0xff]  }
 0x153   : > { %10004 = vmatprep.subr.bf16.mxu1 %v11335_v56 }
 0x154   : > { %9717 = vmatpush3.bf16.msra.mxu0 %v11334_v26  ;;  %v11368_v26 = vld [vmem:[#allocation7 + $0xe8] sm:$0xff]  }
 0x155   : > { %9734 = vmatprep.subr.bf16.mxu0 %v11336_v63 }
 0x156   : > { %10005 = vmatpush3.bf16.msra.mxu1 %v11335_v56  ;;  %v11372_v56 = vld [vmem:[#allocation7 + $0xf8] sm:$0xff]  }
 0x157   : > { %9719 = vmatmul.mubr.msk.bf16.vlgmr.msra.gmra.mrb[0].mxu0 %vm12768_vm11, %v12799_v39  ;;  %10022 = vmatprep.subr.bf16.mxu1 %v11337_v0 }
 0x158   : > { %9735 = vmatpush3.bf16.msra.mxu0 %v11336_v63  ;;  %9722 = vmatprep.mubr.msk.bf16.mxu0 %vm12795_vm13, %v12834_v11  ;;  %v13085_v63 = vld [vmem:[#allocation7] sm:$0xff]  }
 0x159   : > { %9736 = vmatprep.subr.bf16.mxu0 %v11338_v49  ;;  %10007 = vmatmul.mubr.msk.bf16.vlgmr.msra.gmra.mrb[0].mxu1 %vm12768_vm11, %v12813_v17 }
 0x15a   : > { %10023 = vmatpush3.bf16.msra.mxu1 %v11337_v0  ;;  %10010 = vmatprep.mubr.msk.bf16.mxu1 %vm12795_vm13, %v12845_v6  ;;  %v13091_v0 = vld [vmem:[%s13805_s3] ss:$0 sm:$0xff] }
 0x15b   : > { %10024 = vmatprep.subr.bf16.mxu1 %v11339_v7 }
 0x15c   : > { %9737 = vmatpush3.bf16.msra.mxu0 %v11338_v49  ;;  %v13096_v49 = vld [vmem:[%s13805_s3 + $0x1] ss:$0 sm:$0xff] }
 0x15d   : > { %9738 = vmatprep.subr.bf16.mxu0 %v11340_v55 }
 0x15e   : > { %10025 = vmatpush3.bf16.msra.mxu1 %v11339_v7 }
 0x15f   : > { %9723 = vmatmul.mubr.msk.bf16.gmra.mrb[4].mxu0 %vm12806_vm0, %v12843_v36  ;;  %10026 = vmatprep.subr.bf16.mxu1 %v11341_v34 }
 0x160   : > { %9739 = vmatpush3.bf16.msra.mxu0 %v11340_v55  ;;  %9726 = vmatprep.mubr.msk.bf16.mxu0 %vm12839_vm2, %v12876_v45 }
 0x161   : > { %9740 = vmatprep.subr.bf16.mxu0 %v11342_v50  ;;  %10011 = vmatmul.mubr.msk.bf16.gmra.mrb[4].mxu1 %vm12806_vm0, %v12857_v14 }
 0x162   : > { %10027 = vmatpush3.bf16.msra.mxu1 %v11341_v34  ;;  %10014 = vmatprep.mubr.msk.bf16.mxu1 %vm12839_vm2, %v12887_v40 }
 0x163   : > { %10028 = vmatprep.subr.bf16.mxu1 %v11343_v41 }
 0x164   : > { %9741 = vmatpush3.bf16.msra.mxu0 %v11342_v50 }
 0x165   : > { %9742 = vmatprep.subr.bf16.mxu0 %v11344_v48 }
 0x166   : > { %10029 = vmatpush3.bf16.msra.mxu1 %v11343_v41 }
 0x167   : > { %9727 = vmatmul.mubr.msk.bf16.gmra.mrb[8].mxu0 %vm12850_vm3, %v12885_v38  ;;  %10030 = vmatprep.subr.bf16.mxu1 %v11345_v22 }
 0x168   : > { %9743 = vmatpush3.bf16.msra.mxu0 %v11344_v48  ;;  %9730 = vmatprep.mubr.msk.bf16.mxu0 %vm12881_vm5, %v12912_v12 }
 0x169   : > { %9744 = vmatprep.subr.bf16.mxu0 %v11346_v19  ;;  %10015 = vmatmul.mubr.msk.bf16.gmra.mrb[8].mxu1 %vm12850_vm3, %v12895_v47 }
 0x16a   : > { %10031 = vmatpush3.bf16.msra.mxu1 %v11345_v22  ;;  %10018 = vmatprep.mubr.msk.bf16.mxu1 %vm12881_vm5, %v12917_v59 }
 0x16b   : > { %10032 = vmatprep.subr.bf16.mxu1 %v11347_v30 }
 0x16c   : > { %9745 = vmatpush3.bf16.msra.mxu0 %v11346_v19 }
 0x16d   : > { %9746 = vmatprep.subr.bf16.mxu0 %v11348_v57 }
 0x16e   : > { %10033 = vmatpush3.bf16.msra.mxu1 %v11347_v30 }
 0x16f   : > { %9731 = vmatmul.mubr.msk.bf16.gmra.mrb[12].mxu0 %vm12993_vm8, %v12772_v62  ;;  %10034 = vmatprep.subr.bf16.mxu1 %v11349_v2 }
 0x170   : > { %9747 = vmatpush3.bf16.msra.mxu0 %v11348_v57  ;;  %9750 = vmatprep.mubr.msk.bf16.mxu0 %vm12768_vm11, %v12799_v39  ;;  %v368_v39 = vadd.s32 152, %v11828_v4 }
 0x171   : > { %9748 = vmatprep.subr.bf16.mxu0 %v11350_v10  ;;  %10019 = vmatmul.mubr.msk.bf16.gmra.mrb[12].mxu1 %vm12993_vm8, %v3658_v37 }
 0x172   : > { %10035 = vmatpush3.bf16.msra.mxu1 %v11349_v2  ;;  %10038 = vmatprep.mubr.msk.bf16.mxu1 %vm12768_vm11, %v12813_v17  ;;  %v506_v17 = vand.u32 15, %v368_v39 }
 0x173   : > { %10036 = vmatprep.subr.bf16.mxu1 %v11351_v61 }
 0x174   : > { %9749 = vmatpush3.bf16.msra.mxu0 %v11350_v10  ;;  %vm1833_vm9 = vcmp.eq.s32.totalorder %v506_v17, 15 }
 0x175   : > { %10054 = vmatprep.subr.bf16.mxu0 %v11352_v3  ;;  %vm1853_vm4 = vmpackc.low %vm1833_vm9, %vm1833_vm9  ;;  %vm13927_vm9 = vnez %v13864_v27  ;;  %v11416_v27 = vld [vmem:[#allocation7 + $0x68] sm:$0xff]  }
 0x176   : > { %10037 = vmatpush3.bf16.msra.mxu1 %v11351_v61  ;;  %v1873_v4 = vsel %vm1853_vm4, 65537, %v11638_v24  ;;  %v13925_v24 = vmov 0  ;;  %vm13928_vm4 = vnez %v13868_v46 }
 0x177   : > { %9751 = vmatmul.mubr.msk.bf16.vlgmr.msra.gmra.mrb[0].mxu0 %vm12795_vm13, %v12834_v11  ;;  %v8118_v11 = vcombine.low %v11879_v25, %v1873_v4  ;;  %v11355_v25 = vld [vmem:[#allocation7 + $0xd8] sm:$0xff]  }
 0x178   : > { %9754 = vmatprep.mubr.msk.bf16.mxu0 %vm12806_vm0, %v12843_v36  ;;  %10055 = vmatpush3.bf16.msra.mxu0 %v11352_v3  ;;  %v3648_v36 = vld [vmem:[#allocation2 + $0x121] sm:$0xff] }
 0x179   : > { %10056 = vmatprep.subr.bf16.mxu0 %v11353_v18  ;;  %10039 = vmatmul.mubr.msk.bf16.vlgmr.msra.gmra.mrb[0].mxu1 %vm12795_vm13, %v12845_v6  ;;  %v3649_v6 = vld [vmem:[#allocation2 + $0x129] sm:$0xff]  ;;  %vm13073_vm15 = vcmp.eq.s16.totalorder %v8118_v11, 0 }
 0x17a   : > { %10042 = vmatprep.mubr.msk.bf16.mxu1 %vm12806_vm0, %v12857_v14  ;;  %v13926_v24 = vsel %vm13073_vm15, 4294967295, %v13925_v24  ;;  %v3659_v14 = vpack.c.bf16 %v3649_v6, %v3648_v36 }
 0x17c   : > { %10057 = vmatpush3.bf16.msra.mxu0 %v11353_v18 }
 0x17d   : > { %10058 = vmatprep.subr.bf16.mxu0 %v11354_v43 }
 0x17f   : > { %9755 = vmatmul.mubr.msk.bf16.gmra.mrb[4].mxu0 %vm12839_vm2, %v12876_v45  ;;  %v11357_v45 = vld [vmem:[#allocation7 + $0xe8] sm:$0xff]  }
 0x180   : > { %9758 = vmatprep.mubr.msk.bf16.mxu0 %vm12850_vm3, %v12885_v38  ;;  %10059 = vmatpush3.bf16.msra.mxu0 %v11354_v43  ;;  %v11358_v38 = vld [vmem:[#allocation7 + $0xc0] sm:$0xff]  }
 0x181   : > { %10043 = vmatmul.mubr.msk.bf16.gmra.mrb[4].mxu1 %vm12839_vm2, %v12887_v40  ;;  %10060 = vmatprep.subr.bf16.mxu0 %v11355_v25  ;;  %v11359_v40 = vld [vmem:[#allocation7 + $0xf0] sm:$0xff]  }
 0x182   : > { %10046 = vmatprep.mubr.msk.bf16.mxu1 %vm12850_vm3, %v12895_v47  ;;  %10342 = vmatprep.subr.bf16.mxu1 %v11358_v38  ;;  %v11360_v47 = vld [vmem:[#allocation7 + $0xc8] sm:$0xff]  }
 0x183   : > { %10343 = vmatpush3.bf16.msra.mxu1 %v11358_v38 }
 0x184   : > { %10061 = vmatpush3.bf16.msra.mxu0 %v11355_v25  ;;  %10344 = vmatprep.subr.bf16.mxu1 %v11360_v47 }
 0x187   : > { %9759 = vmatmul.mubr.msk.bf16.gmra.mrb[8].mxu0 %vm12881_vm5, %v12912_v12  ;;  %10345 = vmatpush3.bf16.msra.mxu1 %v11360_v47  ;;  %v11366_v12 = vld [vmem:[#allocation7 + $0xe0] sm:$0xff]  }
 0x188   : > { %9762 = vmatprep.mubr.msk.bf16.mxu0 %vm12993_vm8, %v12772_v62  ;;  %v11356_v62 = vld [vmem:[#allocation7 + $0xe0] sm:$0xff]   ;;  %10346 = vmatprep.subr.bf16.mxu1 %v11362_v16 }
 0x189   : > { %10047 = vmatmul.mubr.msk.bf16.gmra.mrb[8].mxu1 %vm12881_vm5, %v12917_v59  ;;  %10062 = vmatprep.subr.bf16.mxu0 %v11356_v62  ;;  %v11370_v59 = vld [vmem:[#allocation7 + $0xf0] sm:$0xff]   ;;  %vm13931_vm5 = vnez %v13876_v8 }
 0x18a   : > { %10050 = vmatprep.mubr.msk.bf16.mxu1 %vm12993_vm8, %v3658_v37  ;;  %10063 = vmatpush3.bf16.msra.mxu0 %v11356_v62  ;;  %vm13930_vm8 = vnez %v13874_v42  ;;  %v11394_v8 = vld [vmem:[#allocation7 + $0x190] sm:$0xff]   ;;  %v11421_v42 = vld [vmem:[#allocation7 + $0x128] sm:$0xff]  }
 0x18b   : > { %10064 = vmatprep.subr.bf16.mxu0 %v11357_v45  ;;  %10347 = vmatpush3.bf16.msra.mxu1 %v11362_v16 }
 0x18c   : > { %10348 = vmatprep.subr.bf16.mxu1 %v11364_v13 }
 0x18e   : > { %10065 = vmatpush3.bf16.msra.mxu0 %v11357_v45 }
 0x18f   : > { %9763 = vmatmul.mubr.msk.bf16.gmra.mrb[12].mxu0 %vm13073_vm15, %v12801_v9  ;;  %10066 = vmatprep.subr.bf16.mxu0 %v11359_v40  ;;  %v11361_v9 = vld [vmem:[#allocation7 + $0xf8] sm:$0xff]  }
 0x190   : > { %10349 = vmatpush3.bf16.msra.mxu1 %v11364_v13 }
 0x191   : > { %10051 = vmatmul.mubr.msk.bf16.gmra.mrb[12].mxu1 %vm13073_vm15, %v3659_v14  ;;  %10350 = vmatprep.subr.bf16.mxu1 %v11366_v12  ;;  %vm13929_vm15 = vnez %v13872_v20  ;;  %v6067_v20 = vld [vmem:[#allocation3 + $0x127] sm:$0xff] }
 0x192   : > { %10067 = vmatpush3.bf16.msra.mxu0 %v11359_v40 }
 0x193   : > { %10068 = vmatprep.subr.bf16.mxu0 %v11361_v9 }
 0x194   : > { %10351 = vmatpush3.bf16.msra.mxu1 %v11366_v12 }
 0x195   : > { %10352 = vmatprep.subr.bf16.mxu1 %v11368_v26 }
 0x196   : > { %10069 = vmatpush3.bf16.msra.mxu0 %v11361_v9 }
 0x197   : > { %10086 = vmatprep.subr.bf16.mxu0 %v13082_v58 }
 0x198   : > { %10353 = vmatpush3.bf16.msra.mxu1 %v11368_v26 }
 0x199   : > { %10354 = vmatprep.subr.bf16.mxu1 %v11370_v59 }
 0x19c   : > { %10355 = vmatpush3.bf16.msra.mxu1 %v11370_v59 }
 0x19d   : > { %10356 = vmatprep.subr.bf16.mxu1 %v11372_v56 }
 0x1a0   : > { %10357 = vmatpush3.bf16.msra.mxu1 %v11372_v56 }
 0x1a1   : > { %10374 = vmatprep.subr.bf16.mxu1 %v13085_v63 }
 0x24a   : > { %v9752_v7 = vpop.f32.mrb[0].mxu0 }
 0x24b   : > { %v2464_v55 = vmul.f32 %v9752_v7, %v13091_v0  ;;  %v2379_v34 = vpop.f32.mrb[1].mxu0 }
 0x24c   : > { %v2462_v50 = vmul.f32 %v13091_v0, %v2379_v34  ;;  %v9753_v41 = vpop.f32.mrb[2].mxu0  ;;  %v10040_v53 = vpop.f32.mrb[0].mxu1 }
 0x24d   : > { %v2484_v48 = vadd.f32 %v13096_v49, %v2464_v55  ;;  %v2465_v22 = vmul.f32 %v9753_v41, %v13091_v0  ;;  %v2382_v19 = vpop.f32.mrb[3].mxu0  ;;  %v4203_v30 = vmul.f32 %v10040_v53, %v13091_v0  ;;  %v4122_v44 = vpop.f32.mrb[1].mxu1 }
 0x24e   : > { %v2482_v57 = vadd.f32 %v13096_v49, %v2462_v50  ;;  %v2463_v31 = vmul.f32 %v13091_v0, %v2382_v19  ;;  %v4201_v10 = vmul.f32 %v13091_v0, %v4122_v44  ;;  %v10041_v61 = vpop.f32.mrb[2].mxu1 }
 0x24f   : > { %v2500_v2 = vmax.f32 %v2484_v48, 0.0  ;;  %v2485_v37 = vadd.f32 %v13096_v49, %v2465_v22  ;;  %v4219_v3 = vadd.f32 %v13096_v49, %v4203_v30  ;;  %v4204_v39 = vmul.f32 %v10041_v61, %v13091_v0  ;;  %v4125_v17 = vpop.f32.mrb[3].mxu1 }
 0x250   : > { %v2498_v18 = vmax.f32 %v2482_v57, 0.0  ;;  %v13110_v43 = vadd.f32 %v13096_v49, %v2463_v31  ;;  %v4217_v4 = vadd.f32 %v13096_v49, %v4201_v10  ;;  %v4202_v36 = vmul.f32 %v13091_v0, %v4125_v17 }
 0x251   : > { %2516 = vst [vmem:[#allocation3 + $0x30] sm:$0xff] %v2500_v2  ;;  %v2501_v11 = vmax.f32 %v2485_v37, 0.0  ;;  %v4235_v6 = vmax.f32 %v4219_v3, 0.0  ;;  %v4220_v14 = vadd.f32 %v13096_v49, %v4204_v39 }
 0x252   : > { %2514 = vst [vmem:[#allocation3 + $0x20] sm:$0xff] %v2498_v18  ;;  %v2499_v25 = vmax.f32 %v13110_v43, 0.0  ;;  %v9756_v62 = vpop.f32.mrb[4].mxu0  ;;  %v4233_v45 = vmax.f32 %v4217_v4, 0.0  ;;  %v4218_v38 = vadd.f32 %v13096_v49, %v4202_v36  ;;  %v11414_v43 = vld [vmem:[#allocation7 + $0x60] sm:$0xff]  }
 0x253   : > { %2517 = vst [vmem:[#allocation3 + $0x38] sm:$0xff] %v2501_v11  ;;  %v2468_v40 = vmul.f32 %v9756_v62, %v13091_v0  ;;  %v2395_v47 = vpop.f32.mrb[5].mxu0  ;;  %4251 = vst [vmem:[#allocation3 + $0xb0] sm:$0xff] %v4235_v6  ;;  %v4236_v9 = vmax.f32 %v4220_v14, 0.0 }
 0x254   : > { %2515 = vst [vmem:[#allocation3 + $0x28] sm:$0xff] %v2499_v25  ;;  %v2466_v16 = vmul.f32 %v13091_v0, %v2395_v47  ;;  %v9757_v13 = vpop.f32.mrb[6].mxu0  ;;  %4249 = vst [vmem:[#allocation3 + $0xa0] sm:$0xff] %v4233_v45  ;;  %v4234_v12 = vmax.f32 %v4218_v38, 0.0  ;;  %v10044_v59 = vpop.f32.mrb[4].mxu1 }
 0x255   : > { %v2488_v26 = vadd.f32 %v13096_v49, %v2468_v40  ;;  %v2469_v56 = vmul.f32 %v9757_v13, %v13091_v0  ;;  %v2398_v7 = vpop.f32.mrb[7].mxu0  ;;  %4252 = vst [vmem:[#allocation3 + $0xb8] sm:$0xff] %v4236_v9  ;;  %v4207_v55 = vmul.f32 %v10044_v59, %v13091_v0  ;;  %v4138_v50 = vpop.f32.mrb[5].mxu1 }
 0x256   : > { %v2486_v34 = vadd.f32 %v13096_v49, %v2466_v16  ;;  %v2467_v41 = vmul.f32 %v13091_v0, %v2398_v7  ;;  %4250 = vst [vmem:[#allocation3 + $0xa8] sm:$0xff] %v4234_v12  ;;  %v4205_v53 = vmul.f32 %v13091_v0, %v4138_v50  ;;  %v10045_v19 = vpop.f32.mrb[6].mxu1 }
 0x257   : > { %v2504_v48 = vmax.f32 %v2488_v26, 0.0  ;;  %v13128_v22 = vadd.f32 %v13096_v49, %v2469_v56  ;;  %v4223_v30 = vadd.f32 %v13096_v49, %v4207_v55  ;;  %v4208_v44 = vmul.f32 %v10045_v19, %v13091_v0  ;;  %v4141_v2 = vpop.f32.mrb[7].mxu1  ;;  %v11365_v55 = vld [vmem:[#allocation7 + $0x8] sm:$0xff]  }
 0x258   : > { %v2502_v57 = vmax.f32 %v2486_v34, 0.0  ;;  %v2487_v31 = vadd.f32 %v13096_v49, %v2467_v41  ;;  %v4221_v10 = vadd.f32 %v13096_v49, %v4205_v53  ;;  %v4206_v61 = vmul.f32 %v13091_v0, %v4141_v2  ;;  %v4810_v1 = vld [vmem:[#allocation3 + $0x30] sm:$0xff] }
 0x259   : > { %2520 = vst [vmem:[#allocation3 + $0x50] sm:$0xff] %v2504_v48  ;;  %v2505_v37 = vmax.f32 %v13128_v22, 0.0  ;;  %v4239_v3 = vmax.f32 %v4223_v30, 0.0  ;;  %v4224_v18 = vadd.f32 %v13096_v49, %v4208_v44  ;;  %v4267_v62 = vld [vmem:[#allocation3 + $0x1f] sm:$0xff] }
 0x25a   : > { %2518 = vst [vmem:[#allocation3 + $0x40] sm:$0xff] %v2502_v57  ;;  %v2503_v39 = vmax.f32 %v2487_v31, 0.0  ;;  %v9760_v17 = vpop.f32.mrb[8].mxu0  ;;  %v4270_v4 = vld [vmem:[#allocation3 + $0x37] sm:$0xff]  ;;  %v4237_v11 = vmax.f32 %v4221_v10, 0.0  ;;  %v4222_v36 = vadd.f32 %v13096_v49, %v4206_v61 }
 0x25b   : > { %2521 = vst [vmem:[#allocation3 + $0x58] sm:$0xff] %v2505_v37  ;;  %v2472_v6 = vmul.f32 %v9760_v17, %v13091_v0  ;;  %v2411_v14 = vpop.f32.mrb[9].mxu0  ;;  %v4268_v45 = vld [vmem:[#allocation3 + $0x27] sm:$0xff]  ;;  %v4269_v38 = vld [vmem:[#allocation3 + $0x2f] sm:$0xff]  ;;  %4255 = vst [vmem:[#allocation3 + $0xd0] sm:$0xff] %v4239_v3  ;;  %v4240_v40 = vmax.f32 %v4224_v18, 0.0 }
 0x25c   : > { %2519 = vst [vmem:[#allocation3 + $0x48] sm:$0xff] %v2503_v39  ;;  %v2470_v47 = vmul.f32 %v13091_v0, %v2411_v14  ;;  %v9761_v9 = vpop.f32.mrb[10].mxu0  ;;  %v13142_v16 = vpack.c.bf16 %v4268_v45, %v4267_v62  ;;  %v13144_v13 = vpack.c.bf16 %v4270_v4, %v4269_v38  ;;  %4253 = vst [vmem:[#allocation3 + $0xc0] sm:$0xff] %v4237_v11  ;;  %v4238_v12 = vmax.f32 %v4222_v36, 0.0  ;;  %v10048_v59 = vpop.f32.mrb[8].mxu1  ;;  %v11367_v4 = vld [vmem:[#allocation7 + $0x10] sm:$0xff]  }
 0x25d   : > { %v2492_v26 = vadd.f32 %v13096_v49, %v2472_v6  ;;  %v2473_v56 = vmul.f32 %v9761_v9, %v13091_v0  ;;  %v2414_v7 = vpop.f32.mrb[11].mxu0  ;;  %v13148_v34 = vpack.c.bf16 %v2503_v39, %v2502_v57  ;;  %4256 = vst [vmem:[#allocation3 + $0xd8] sm:$0xff] %v4240_v40  ;;  %v4211_v50 = vmul.f32 %v10048_v59, %v13091_v0  ;;  %v4154_v48 = vpop.f32.mrb[9].mxu1  ;;  %v4811_v32 = vld [vmem:[#allocation3 + $0x38] sm:$0xff] }
 0x25e   : > { %v2490_v41 = vadd.f32 %v13096_v49, %v2470_v47  ;;  %v2471_v53 = vmul.f32 %v13091_v0, %v2414_v7  ;;  %10070 = vmatprep.mubr.msk.bf16.mxu0 %vm11924_vm7, %v13142_v16  ;;  %4254 = vst [vmem:[#allocation3 + $0xc8] sm:$0xff] %v4238_v12  ;;  %v4209_v30 = vmul.f32 %v13091_v0, %v4154_v48  ;;  %v10049_v57 = vpop.f32.mrb[10].mxu1 }
 0x25f   : > { %v2508_v19 = vmax.f32 %v2492_v26, 0.0  ;;  %v2493_v44 = vadd.f32 %v13096_v49, %v2473_v56  ;;  %10071 = vmatmul.mubr.msk.bf16.vlgmr.msra.gmra.mrb[16].mxu0 %vm11986_vm12, %v13144_v13  ;;  %v4227_v31 = vadd.f32 %v13096_v49, %v4211_v50  ;;  %v4212_v10 = vmul.f32 %v10049_v57, %v13091_v0  ;;  %v4157_v3 = vpop.f32.mrb[11].mxu1  ;;  %v11369_v57 = vld [vmem:[#allocation7 + $0x18] sm:$0xff]  }
 0x260   : > { %v2506_v2 = vmax.f32 %v2490_v41, 0.0  ;;  %v2491_v61 = vadd.f32 %v13096_v49, %v2471_v53  ;;  %10087 = vmatpush3.bf16.msra.mxu0 %v13082_v58  ;;  %v4225_v18 = vadd.f32 %v13096_v49, %v4209_v30  ;;  %v4210_v17 = vmul.f32 %v13091_v0, %v4157_v3 }
 0x261   : > { %2524 = vst [vmem:[#allocation3 + $0x70] sm:$0xff] %v2508_v19  ;;  %v2509_v39 = vmax.f32 %v2493_v44, 0.0  ;;  %10088 = vmatprep.subr.bf16.mxu0 %v11365_v55  ;;  %v4243_v11 = vmax.f32 %v4227_v31, 0.0  ;;  %v4228_v36 = vadd.f32 %v13096_v49, %v4212_v10  ;;  %v4271_v47 = vld [vmem:[#allocation3 + $0x3f] sm:$0xff] }
 0x262   : > { %2522 = vst [vmem:[#allocation3 + $0x60] sm:$0xff] %v2506_v2  ;;  %v2507_v6 = vmax.f32 %v2491_v61, 0.0  ;;  %v9764_v14 = vpop.f32.mrb[12].mxu0  ;;  %v4274_v62 = vld [vmem:[#allocation3 + $0x57] sm:$0xff]  ;;  %v4241_v45 = vmax.f32 %v4225_v18, 0.0  ;;  %v4226_v38 = vadd.f32 %v13096_v49, %v4210_v17 }
 0x263   : > { %2525 = vst [vmem:[#allocation3 + $0x78] sm:$0xff] %v2509_v39  ;;  %v2476_v58 = vmul.f32 %v9764_v14, %v13091_v0  ;;  %v2427_v40 = vpop.f32.mrb[13].mxu0  ;;  %v4272_v9 = vld [vmem:[#allocation3 + $0x47] sm:$0xff]  ;;  %v4273_v12 = vld [vmem:[#allocation3 + $0x4f] sm:$0xff]  ;;  %v13170_v26 = vpack.c.bf16 %v2509_v39, %v2508_v19  ;;  %4259 = vst [vmem:[#allocation3 + $0xf0] sm:$0xff] %v4243_v11  ;;  %v4244_v59 = vmax.f32 %v4228_v36, 0.0 }
 0x264   : > { %2523 = vst [vmem:[#allocation3 + $0x68] sm:$0xff] %v2507_v6  ;;  %v2474_v56 = vmul.f32 %v13091_v0, %v2427_v40  ;;  %v9765_v7 = vpop.f32.mrb[14].mxu0  ;;  %10089 = vmatpush3.bf16.msra.mxu0 %v11365_v55  ;;  %v13173_v50 = vpack.c.bf16 %v4272_v9, %v4271_v47  ;;  %v13175_v41 = vpack.c.bf16 %v4274_v62, %v4273_v12  ;;  %4257 = vst [vmem:[#allocation3 + $0xe0] sm:$0xff] %v4241_v45  ;;  %v10052_v30 = vpop.f32.mrb[12].mxu1  ;;  %v11371_v40 = vld [vmem:[#allocation7 + $0x20] sm:$0xff]  }
 0x265   : > { %v4242_v48 = vmax.f32 %v4226_v38, 0.0  ;;  %v2496_v53 = vadd.f32 %v13096_v49, %v2476_v58  ;;  %v2477_v44 = vmul.f32 %v9765_v7, %v13091_v0  ;;  %v2430_v19 = vpop.f32.mrb[15].mxu0  ;;  %10090 = vmatprep.subr.bf16.mxu0 %v11367_v4  ;;  %v13179_v31 = vpack.c.bf16 %v2507_v6, %v2506_v2  ;;  %4260 = vst [vmem:[#allocation3 + $0xf8] sm:$0xff] %v4244_v59  ;;  %v4170_v61 = vpop.f32.mrb[13].mxu1 }
 0x266   : > { %v4215_v10 = vmul.f32 %v10052_v30, %v13091_v0  ;;  %v2494_v55 = vadd.f32 %v13096_v49, %v2474_v56  ;;  %v2475_v3 = vmul.f32 %v13091_v0, %v2430_v19  ;;  %10074 = vmatprep.mubr.msk.bf16.mxu0 %vm12011_vm14, %v13173_v50  ;;  %v4213_v39 = vmul.f32 %v13091_v0, %v4170_v61  ;;  %v10053_v2 = vpop.f32.mrb[14].mxu1  ;;  %v6051_v61 = vld [vmem:[#allocation3 + $0xa7] sm:$0xff] }
 0x267   : > { %4258 = vst [vmem:[#allocation3 + $0xe8] sm:$0xff] %v4242_v48  ;;  %v2512_v18 = vmax.f32 %v2496_v53, 0.0  ;;  %v2497_v17 = vadd.f32 %v13096_v49, %v2477_v44  ;;  %10075 = vmatmul.mubr.msk.bf16.gmra.mrb[20].mxu0 %vm12062_vm1, %v13175_v41  ;;  %v4216_v6 = vmul.f32 %v10053_v2, %v13091_v0  ;;  %v4173_v62 = vpop.f32.mrb[15].mxu1 }
 0x268   : > { %v4231_v11 = vadd.f32 %v13096_v49, %v4215_v10  ;;  %v2510_v36 = vmax.f32 %v2494_v55, 0.0  ;;  %v2495_v14 = vadd.f32 %v13096_v49, %v2475_v3  ;;  %10091 = vmatpush3.bf16.msra.mxu0 %v11367_v4  ;;  %v4229_v45 = vadd.f32 %v13096_v49, %v4213_v39  ;;  %v6052_v3 = vld [vmem:[#allocation3 + $0xaf] sm:$0xff] }
 0x269   : > { %2528 = vst [vmem:[#allocation3 + $0x90] sm:$0xff] %v2512_v18  ;;  %v2513_v38 = vmax.f32 %v2497_v17, 0.0  ;;  %v4214_v58 = vmul.f32 %v13091_v0, %v4173_v62  ;;  %10092 = vmatprep.subr.bf16.mxu0 %v11369_v57  ;;  %v4232_v9 = vadd.f32 %v13096_v49, %v4216_v6  ;;  %v4275_v4 = vld [vmem:[#allocation3 + $0x5f] sm:$0xff]  ;;  %v4265_v39 = vld [vmem:[#allocation3 + $0xf] sm:$0xff]  ;;  %v4266_v17 = vld [vmem:[#allocation3 + $0x17] sm:$0xff] }
 0x26a   : > { %v4247_v47 = vmax.f32 %v4231_v11, 0.0  ;;  %2526 = vst [vmem:[#allocation3 + $0x80] sm:$0xff] %v2510_v36  ;;  %v2511_v12 = vmax.f32 %v2495_v14, 0.0  ;;  %v4278_v59 = vld [vmem:[#allocation3 + $0x77] sm:$0xff]  ;;  %v4245_v56 = vmax.f32 %v4229_v45, 0.0 }
 0x26b   : > { %2529 = vst [vmem:[#allocation3 + $0x98] sm:$0xff] %v2513_v38  ;;  %v13199_v7 = vadd.f32 %v13096_v49, %v4214_v58  ;;  %v4276_v48 = vld [vmem:[#allocation3 + $0x67] sm:$0xff]  ;;  %v4277_v53 = vld [vmem:[#allocation3 + $0x6f] sm:$0xff]  ;;  %v13201_v30 = vpack.c.bf16 %v2513_v38, %v2512_v18  ;;  %v4248_v0 = vmax.f32 %v4232_v9, 0.0  ;;  %v6053_v18 = vld [vmem:[#allocation3 + $0xb7] sm:$0xff] }
 0x26c   : > { %4263 = vst [vmem:[#allocation3 + $0x110] sm:$0xff] %v4247_v47  ;;  %2527 = vst [vmem:[#allocation3 + $0x88] sm:$0xff] %v2511_v12  ;;  %10093 = vmatpush3.bf16.msra.mxu0 %v11369_v57  ;;  %v13203_v44 = vpack.c.bf16 %v4276_v48, %v4275_v4  ;;  %v13205_v19 = vpack.c.bf16 %v4278_v59, %v4277_v53  ;;  %v13207_v10 = vpack.c.bf16 %v2511_v12, %v2510_v36  ;;  %v11373_v49 = vld [vmem:[#allocation7 + $0x28] sm:$0xff]   ;;  %v11375_v57 = vld [vmem:[#allocation7 + $0x30] sm:$0xff]  }
 0x26d   : > { %4261 = vst [vmem:[#allocation3 + $0x100] sm:$0xff] %v4245_v56  ;;  %v4246_v55 = vmax.f32 %v13199_v7, 0.0  ;;  %10094 = vmatprep.subr.bf16.mxu0 %v11371_v40  ;;  %4264 = vst [vmem:[#allocation3 + $0x118] sm:$0xff] %v4248_v0  ;;  %v6055_v36 = vld [vmem:[#allocation3 + $0xc7] sm:$0xff]  ;;  %v13222_v58 = vpack.c.bf16 %v6053_v18, %v6052_v3  ;;  %v6054_v47 = vld [vmem:[#allocation3 + $0xbf] sm:$0xff]  ;;  %v4285_v56 = vpack.c.bf16 %v4266_v17, %v4265_v39 }
 0x26e   : > { %10078 = vmatprep.mubr.msk.bf16.mxu0 %vm13927_vm9, %v13203_v44  ;;  %v13229_v9 = vpack.c.bf16 %v6055_v36, %v6054_v47  ;;  %v11376_v12 = vld [vmem:[#allocation7 + $0x8] sm:$0xff]   ;;  %v11377_v59 = vld [vmem:[#allocation7 + $0x38] sm:$0xff]   ;;  %v11378_v4 = vld [vmem:[#allocation7 + $0x10] sm:$0xff]  }
 0x26f   : > { %4262 = vst [vmem:[#allocation3 + $0x108] sm:$0xff] %v4246_v55  ;;  %10079 = vmatmul.mubr.msk.bf16.gmra.mrb[24].mxu0 %vm13928_vm4, %v13205_v19  ;;  %v6056_v48 = vld [vmem:[#allocation3 + $0xcf] sm:$0xff]  ;;  %v6057_v53 = vld [vmem:[#allocation3 + $0xd7] sm:$0xff]  ;;  %v11379_v0 = vld [vmem:[#allocation7 + $0x180] sm:$0xff]  }
 0x270   : > { %10095 = vmatpush3.bf16.msra.mxu0 %v11371_v40  ;;  %v6058_v3 = vld [vmem:[#allocation3 + $0xdf] sm:$0xff]  ;;  %v6060_v39 = vld [vmem:[#allocation3 + $0xef] sm:$0xff]  ;;  %v6061_v17 = vld [vmem:[#allocation3 + $0xf7] sm:$0xff] }
 0x271   : > { %10096 = vmatprep.subr.bf16.mxu0 %v11373_v49  ;;  %v4279_v14 = vld [vmem:[#allocation3 + $0x7f] sm:$0xff] }
 0x272   : > { %v6050_v2 = vld [vmem:[#allocation3 + $0x9f] sm:$0xff]  ;;  %v4282_v11 = vld [vmem:[#allocation3 + $0x97] sm:$0xff] }
 0x273   : > { %v13218_v6 = vpack.c.bf16 %v6051_v61, %v6050_v2  ;;  %v4280_v62 = vld [vmem:[#allocation3 + $0x87] sm:$0xff]  ;;  %v4281_v45 = vld [vmem:[#allocation3 + $0x8f] sm:$0xff]  ;;  %v13246_v61 = vpack.c.bf16 %v6057_v53, %v6056_v48  ;;  %v11385_v47 = vld [vmem:[#allocation7 + $0x198] sm:$0xff]  }
 0x274   : > { %10097 = vmatpush3.bf16.msra.mxu0 %v11373_v49  ;;  %v13220_v38 = vpack.c.bf16 %v4280_v62, %v4279_v14  ;;  %v13224_v40 = vpack.c.bf16 %v4282_v11, %v4281_v45  ;;  %v6059_v49 = vld [vmem:[#allocation3 + $0xe7] sm:$0xff]  ;;  %v11383_v11 = vld [vmem:[#allocation7 + $0x190] sm:$0xff]   ;;  %v13262_v14 = vpack.c.bf16 %v6061_v17, %v6060_v39  ;;  %v11388_v53 = vld [vmem:[#allocation7 + $0x38] sm:$0xff]  }
 0x275   : > { %10358 = vmatprep.mubr.msk.bf16.mxu1 %vm11924_vm7, %v13218_v6  ;;  %10098 = vmatprep.subr.bf16.mxu0 %v11375_v57  ;;  %v13248_v18 = vpack.c.bf16 %v6059_v49, %v6058_v3  ;;  %v11382_v2 = vld [vmem:[#allocation7 + $0x20] sm:$0xff]   ;;  %v11384_v45 = vld [vmem:[#allocation7 + $0x28] sm:$0xff]   ;;  %v11391_v3 = vld [vmem:[#allocation7 + $0x1b0] sm:$0xff]  }
 0x276   : > { %10082 = vmatprep.mubr.msk.bf16.mxu0 %vm13929_vm15, %v13220_v38  ;;  %10359 = vmatmul.mubr.msk.bf16.vlgmr.msra.gmra.mrb[16].mxu1 %vm11986_vm12, %v13222_v58  ;;  %v6063_v36 = vld [vmem:[#allocation3 + $0x107] sm:$0xff]  ;;  %v4823_v7 = vld [vmem:[#allocation3 + $0x98] sm:$0xff] }
 0x277   : > { %10083 = vmatmul.mubr.msk.bf16.gmra.mrb[28].mxu0 %vm13930_vm8, %v13224_v40  ;;  %10362 = vmatprep.mubr.msk.bf16.mxu1 %vm12011_vm14, %v13229_v9  ;;  %v11390_v49 = vld [vmem:[#allocation7 + $0x180] sm:$0xff]   ;;  %v11397_v17 = vld [vmem:[#allocation7 + $0x48] sm:$0xff]  }
 0x278   : > { %10375 = vmatpush3.bf16.msra.mxu1 %v13085_v63  ;;  %10099 = vmatpush3.bf16.msra.mxu0 %v11375_v57  ;;  %v11380_v63 = vld [vmem:[#allocation7 + $0x18] sm:$0xff]   ;;  %v11381_v57 = vld [vmem:[#allocation7 + $0x188] sm:$0xff]   ;;  %v11395_v39 = vld [vmem:[#allocation7 + $0x40] sm:$0xff]  }
 0x279   : > { %10376 = vmatprep.subr.bf16.mxu1 %v11376_v12  ;;  %10100 = vmatprep.subr.bf16.mxu0 %v11377_v59 }
 0x27a   : > { %10102 = vmatprep.mubr.msk.bf16.mxu0 %vm13931_vm5, %v4285_v56  ;;  %v11386_v56 = vld [vmem:[#allocation7 + $0x30] sm:$0xff]  }
 0x27c   : > { %10377 = vmatpush3.bf16.msra.mxu1 %v11376_v12  ;;  %10101 = vmatpush3.bf16.msra.mxu0 %v11377_v59  ;;  %v6064_v12 = vld [vmem:[#allocation3 + $0x10f] sm:$0xff]  ;;  %v6065_v59 = vld [vmem:[#allocation3 + $0x117] sm:$0xff] }
 0x27d   : > { %10378 = vmatprep.subr.bf16.mxu1 %v11378_v4  ;;  %10118 = vmatprep.subr.bf16.mxu0 %v11379_v0  ;;  %v13278_v48 = vpack.c.bf16 %v6065_v59, %v6064_v12  ;;  %v11499_v12 = vld [vmem:[#allocation2] sm:$0xff] }
 0x27e   : > { %10363 = vmatmul.mubr.msk.bf16.gmra.mrb[20].mxu1 %vm12062_vm1, %v13246_v61  ;;  %v13340_v59 = vpack.c.bf16 %v11499_v12, %v11499_v12  ;;  %v6597_v12 = vld [vmem:[#allocation3 + $0xe0] sm:$0xff] }
 0x27f   : > { %10103 = vmatmul.mubr.msk.bf16.vlgmr.msra.gmra.mrb[16].mxu0 %vm11924_vm7, %v13142_v16  ;;  %10366 = vmatprep.mubr.msk.bf16.mxu1 %vm13927_vm9, %v13248_v18  ;;  %v6062_v16 = vld [vmem:[#allocation3 + $0xff] sm:$0xff] }
 0x280   : > { %10379 = vmatpush3.bf16.msra.mxu1 %v11378_v4  ;;  %10106 = vmatprep.mubr.msk.bf16.mxu0 %vm11986_vm12, %v13144_v13  ;;  %v13264_v62 = vpack.c.bf16 %v6063_v36, %v6062_v16  ;;  %v11387_v4 = vld [vmem:[#allocation7 + $0x1a0] sm:$0xff]   ;;  %v11404_v16 = vld [vmem:[#allocation7 + $0x1b8] sm:$0xff]  }
 0x281   : > { %10119 = vmatpush3.bf16.msra.mxu0 %v11379_v0  ;;  %10380 = vmatprep.subr.bf16.mxu1 %v11380_v63  ;;  %v11389_v0 = vld [vmem:[#allocation7 + $0x1a8] sm:$0xff]   ;;  %v11403_v36 = vld [vmem:[#allocation7 + $0x60] sm:$0xff]  }
 0x282   : > { %10120 = vmatprep.subr.bf16.mxu0 %v11381_v57 }
 0x284   : > { %10381 = vmatpush3.bf16.msra.mxu1 %v11380_v63  ;;  %v11392_v63 = vld [vmem:[#allocation7 + $0x188] sm:$0xff]  }
 0x285   : > { %10121 = vmatpush3.bf16.msra.mxu0 %v11381_v57  ;;  %10382 = vmatprep.subr.bf16.mxu1 %v11382_v2  ;;  %v11393_v57 = vld [vmem:[#allocation7 + $0x1b8] sm:$0xff]  }
 0x286   : > { %10367 = vmatmul.mubr.msk.bf16.gmra.mrb[24].mxu1 %vm13928_vm4, %v13262_v14  ;;  %10122 = vmatprep.subr.bf16.mxu0 %v11383_v11 }
 0x287   : > { %10107 = vmatmul.mubr.msk.bf16.gmra.mrb[20].mxu0 %vm12011_vm14, %v13173_v50  ;;  %10370 = vmatprep.mubr.msk.bf16.mxu1 %vm13929_vm15, %v13264_v62 }
 0x288   : > { %10383 = vmatpush3.bf16.msra.mxu1 %v11382_v2  ;;  %10110 = vmatprep.mubr.msk.bf16.mxu0 %vm12062_vm1, %v13175_v41  ;;  %v11399_v2 = vld [vmem:[#allocation7 + $0x50] sm:$0xff]  }
 0x289   : > { %10123 = vmatpush3.bf16.msra.mxu0 %v11383_v11  ;;  %10384 = vmatprep.subr.bf16.mxu1 %v11384_v45  ;;  %v11400_v11 = vld [vmem:[#allocation7 + $0x1a8] sm:$0xff]  }
 0x28a   : > { %10124 = vmatprep.subr.bf16.mxu0 %v11385_v47 }
 0x28c   : > { %10385 = vmatpush3.bf16.msra.mxu1 %v11384_v45  ;;  %v11407_v45 = vld [vmem:[#allocation7 + $0x70] sm:$0xff]  }
 0x28d   : > { %10125 = vmatpush3.bf16.msra.mxu0 %v11385_v47  ;;  %10386 = vmatprep.subr.bf16.mxu1 %v11386_v56  ;;  %v11408_v47 = vld [vmem:[#allocation7 + $0x48] sm:$0xff]  }
 0x28e   : > { %10371 = vmatmul.mubr.msk.bf16.gmra.mrb[28].mxu1 %vm13930_vm8, %v13278_v48  ;;  %10126 = vmatprep.subr.bf16.mxu0 %v11387_v4 }
 0x28f   : > { %10111 = vmatmul.mubr.msk.bf16.gmra.mrb[24].mxu0 %vm13927_vm9, %v13203_v44  ;;  %10390 = vmatprep.mubr.msk.bf16.mxu1 %vm13931_vm5, %v13224_v40 }
 0x290   : > { %10387 = vmatpush3.bf16.msra.mxu1 %v11386_v56  ;;  %10114 = vmatprep.mubr.msk.bf16.mxu0 %vm13928_vm4, %v13205_v19  ;;  %v11413_v56 = vld [vmem:[#allocation7 + $0x108] sm:$0xff]  }
 0x291   : > { %10127 = vmatpush3.bf16.msra.mxu0 %v11387_v4  ;;  %10388 = vmatprep.subr.bf16.mxu1 %v11388_v53  ;;  %v4814_v4 = vld [vmem:[#allocation3 + $0x50] sm:$0xff] }
 0x292   : > { %10128 = vmatprep.subr.bf16.mxu0 %v11389_v0  ;;  %v13371_v46 = vpack.c.bf16 %v2505_v37, %v4814_v4  ;;  %v11420_v37 = vld [vmem:[#allocation7 + $0x78] sm:$0xff]   ;;  %v11437_v4 = vld [vmem:[#allocation7 + $0x1e8] sm:$0xff]  }
 0x294   : > { %10389 = vmatpush3.bf16.msra.mxu1 %v11388_v53  ;;  %v11419_v53 = vld [vmem:[#allocation7 + $0x120] sm:$0xff]  }
 0x295   : > { %10129 = vmatpush3.bf16.msra.mxu0 %v11389_v0  ;;  %10406 = vmatprep.subr.bf16.mxu1 %v11390_v49  ;;  %v6590_v0 = vld [vmem:[#allocation3 + $0xa8] sm:$0xff] }
 0x296   : > { %10130 = vmatprep.subr.bf16.mxu0 %v11391_v3 }
 0x297   : > { %10391 = vmatmul.mubr.msk.bf16.vlgmr.msra.gmra.mrb[16].mxu1 %vm11924_vm7, %v13218_v6  ;;  %10115 = vmatmul.mubr.msk.bf16.gmra.mrb[28].mxu0 %vm13929_vm15, %v13220_v38  ;;  %vm13932_vm7 = vnez %v13880_v15 }
 0x298   : > { %10394 = vmatprep.mubr.msk.bf16.mxu1 %vm11986_vm12, %v13222_v58  ;;  %10407 = vmatpush3.bf16.msra.mxu1 %v11390_v49  ;;  %v11423_v49 = vld [vmem:[#allocation7 + $0x130] sm:$0xff]  }
 0x299   : > { %10131 = vmatpush3.bf16.msra.mxu0 %v11391_v3  ;;  %10134 = vmatprep.mubr.msk.bf16.mxu0 %vm11986_vm12, %v13144_v13  ;;  %v11398_v13 = vld [vmem:[#allocation7 + $0x1a0] sm:$0xff]   ;;  %v6592_v3 = vld [vmem:[#allocation3 + $0xb8] sm:$0xff] }
 0x29a   : > { %10408 = vmatprep.subr.bf16.mxu1 %v11392_v63  ;;  %10132 = vmatprep.subr.bf16.mxu0 %v11393_v57 }
 0x29c   : > { %10409 = vmatpush3.bf16.msra.mxu1 %v11392_v63  ;;  %v6589_v63 = vld [vmem:[#allocation3 + $0xa0] sm:$0xff] }
 0x29d   : > { %10133 = vmatpush3.bf16.msra.mxu0 %v11393_v57  ;;  %10410 = vmatprep.subr.bf16.mxu1 %v11394_v8  ;;  %v13383_v15 = vpack.c.bf16 %v6590_v0, %v6589_v63  ;;  %v6591_v57 = vld [vmem:[#allocation3 + $0xb0] sm:$0xff]  ;;  %v11448_v0 = vld [vmem:[#allocation7 + $0x1e8] sm:$0xff]  }
 0x29e   : > { %10150 = vmatprep.subr.bf16.mxu0 %v11395_v39  ;;  %v6603_v63 = vld [vmem:[#allocation3 + $0x110] sm:$0xff] }
 0x29f   : > { %10395 = vmatmul.mubr.msk.bf16.gmra.mrb[20].mxu1 %vm12011_vm14, %v13229_v9 }
 0x2a0   : > { %10135 = vmatmul.mubr.msk.bf16.vlgmr.msra.gmra.mrb[16].mxu0 %vm12011_vm14, %v13173_v50  ;;  %10398 = vmatprep.mubr.msk.bf16.mxu1 %vm12062_vm1, %v13246_v61  ;;  %v11401_v50 = vld [vmem:[#allocation7 + $0x58] sm:$0xff]  }
 0x2a1   : > { %10411 = vmatpush3.bf16.msra.mxu1 %v11394_v8  ;;  %10138 = vmatprep.mubr.msk.bf16.mxu0 %vm12062_vm1, %v13175_v41  ;;  %v11402_v41 = vld [vmem:[#allocation7 + $0x1b0] sm:$0xff]   ;;  %v13385_v8 = vpack.c.bf16 %v6592_v3, %v6591_v57  ;;  %v11451_v3 = vld [vmem:[#allocation7 + $0xa0] sm:$0xff]  }
 0x2a2   : > { %10151 = vmatpush3.bf16.msra.mxu0 %v11395_v39  ;;  %10412 = vmatprep.subr.bf16.mxu1 %v11396_v52  ;;  %v11425_v39 = vld [vmem:[#allocation7 + $0x138] sm:$0xff]  }
 0x2a3   : > { %10152 = vmatprep.subr.bf16.mxu0 %v11397_v17 }
 0x2a5   : > { %10413 = vmatpush3.bf16.msra.mxu1 %v11396_v52  ;;  %v11426_v52 = vld [vmem:[#allocation7 + $0x110] sm:$0xff]  }
 0x2a6   : > { %10153 = vmatpush3.bf16.msra.mxu0 %v11397_v17  ;;  %10414 = vmatprep.subr.bf16.mxu1 %v11398_v13  ;;  %v6594_v17 = vld [vmem:[#allocation3 + $0xc8] sm:$0xff] }
 0x2a7   : > { %10399 = vmatmul.mubr.msk.bf16.gmra.mrb[24].mxu1 %vm13927_vm9, %v13248_v18  ;;  %10154 = vmatprep.subr.bf16.mxu0 %v11399_v2 }
 0x2a8   : > { %10139 = vmatmul.mubr.msk.bf16.gmra.mrb[20].mxu0 %vm13927_vm9, %v13203_v44  ;;  %10402 = vmatprep.mubr.msk.bf16.mxu1 %vm13928_vm4, %v13262_v14  ;;  %v11405_v44 = vld [vmem:[#allocation7 + $0x68] sm:$0xff]  }
 0x2a9   : > { %10415 = vmatpush3.bf16.msra.mxu1 %v11398_v13  ;;  %10142 = vmatprep.mubr.msk.bf16.mxu0 %vm13928_vm4, %v13205_v19  ;;  %v11406_v19 = vld [vmem:[#allocation7 + $0x40] sm:$0xff]  }
 0x2aa   : > { %10155 = vmatpush3.bf16.msra.mxu0 %v11399_v2  ;;  %10416 = vmatprep.subr.bf16.mxu1 %v11400_v11  ;;  %v11427_v13 = vld [vmem:[#allocation7 + $0x1c0] sm:$0xff]   ;;  %v6596_v2 = vld [vmem:[#allocation3 + $0xd8] sm:$0xff] }
 0x2ab   : > { %10156 = vmatprep.subr.bf16.mxu0 %v11401_v50 }
 0x2ad   : > { %10417 = vmatpush3.bf16.msra.mxu1 %v11400_v11  ;;  %v6593_v11 = vld [vmem:[#allocation3 + $0xc0] sm:$0xff] }
 0x2ae   : > { %10157 = vmatpush3.bf16.msra.mxu0 %v11401_v50  ;;  %10418 = vmatprep.subr.bf16.mxu1 %v11402_v41  ;;  %v13391_v50 = vpack.c.bf16 %v6594_v17, %v6593_v11  ;;  %v5371_v17 = vld [vmem:[#allocation3 + $0x19] sm:$0xff] }
 0x2af   : > { %10403 = vmatmul.mubr.msk.bf16.gmra.mrb[28].mxu1 %vm13929_vm15, %v13264_v62  ;;  %10158 = vmatprep.subr.bf16.mxu0 %v11403_v36  ;;  %v11459_v11 = vld [vmem:[#allocation7 + $0x140] sm:$0xff]  }
 0x2b0   : > { %10143 = vmatmul.mubr.msk.bf16.gmra.mrb[24].mxu0 %vm13929_vm15, %v13220_v38  ;;  %10422 = vmatprep.mubr.msk.bf16.mxu1 %vm11986_vm12, %v13222_v58  ;;  %v11409_v38 = vld [vmem:[#allocation7 + $0x78] sm:$0xff]   ;;  %v11411_v58 = vld [vmem:[#allocation7 + $0x100] sm:$0xff]   ;;  %vm13933_vm12 = vnez %v13922_v33 }
 0x2b1   : > { %10419 = vmatpush3.bf16.msra.mxu1 %v11402_v41  ;;  %10146 = vmatprep.mubr.msk.bf16.mxu0 %vm13930_vm8, %v13224_v40  ;;  %v4808_v40 = vld [vmem:[#allocation3 + $0x20] sm:$0xff]  ;;  %v6595_v41 = vld [vmem:[#allocation3 + $0xd0] sm:$0xff] }
 0x2b2   : > { %10159 = vmatpush3.bf16.msra.mxu0 %v11403_v36  ;;  %10420 = vmatprep.subr.bf16.mxu1 %v11404_v16  ;;  %v13393_v36 = vpack.c.bf16 %v6596_v2, %v6595_v41  ;;  %v11457_v2 = vld [vmem:[#allocation7 + $0xb8] sm:$0xff]   ;;  %v5372_v41 = vld [vmem:[#allocation3 + $0x21] sm:$0xff] }
 0x2b3   : > { %10160 = vmatprep.subr.bf16.mxu0 %v11405_v44 }
 0x2b5   : > { %10421 = vmatpush3.bf16.msra.mxu1 %v11404_v16  ;;  %v11428_v16 = vld [vmem:[#allocation7 + $0x118] sm:$0xff]  }
 0x2b6   : > { %10161 = vmatpush3.bf16.msra.mxu0 %v11405_v44  ;;  %10438 = vmatprep.subr.bf16.mxu1 %v11406_v19  ;;  %v11429_v44 = vld [vmem:[#allocation7 + $0x1c8] sm:$0xff]  }
 0x2b7   : > { %10162 = vmatprep.subr.bf16.mxu0 %v11407_v45 }
 0x2b8   : > { %10423 = vmatmul.mubr.msk.bf16.vlgmr.msra.gmra.mrb[16].mxu1 %vm12011_vm14, %v13229_v9  ;;  %10147 = vmatmul.mubr.msk.bf16.gmra.mrb[28].mxu0 %vm13932_vm7, %v13218_v6  ;;  %v13354_v6 = vpack.c.bf16 %v2499_v25, %v4808_v40  ;;  %v11412_v9 = vld [vmem:[#allocation7 + $0x58] sm:$0xff]   ;;  %v11415_v25 = vld [vmem:[#allocation7 + $0x110] sm:$0xff]   ;;  %vm13934_vm14 = vnez %v13924_v54 }
 0x2b9   : > { %10426 = vmatprep.mubr.msk.bf16.mxu1 %vm12062_vm1, %v13246_v61  ;;  %10439 = vmatpush3.bf16.msra.mxu1 %v11406_v19  ;;  %v13359_v61 = vpack.c.bf16 %v4811_v32, %v4810_v1  ;;  %v6598_v19 = vld [vmem:[#allocation3 + $0xe8] sm:$0xff]  ;;  %v6601_v1 = vld [vmem:[#allocation3 + $0x100] sm:$0xff]  ;;  %vm13935_vm1 = vnez %v13926_v24 }
 0x2ba   : > { %10163 = vmatpush3.bf16.msra.mxu0 %v11407_v45  ;;  %10440 = vmatprep.subr.bf16.mxu1 %v11408_v47  ;;  %v11430_v45 = vld [vmem:[#allocation7 + $0x120] sm:$0xff]   ;;  %v11432_v32 = vld [vmem:[#allocation7 + $0x128] sm:$0xff]  }
 0x2bb   : > { %10164 = vmatprep.subr.bf16.mxu0 %v11409_v38  ;;  %10166 = vmatprep.mubr.bf16.mxu0 %v13340_v59 }
 0x2bd   : > { %10441 = vmatpush3.bf16.msra.mxu1 %v11408_v47  ;;  %v11431_v47 = vld [vmem:[#allocation7 + $0x1d0] sm:$0xff]  }
 0x2be   : > { %10165 = vmatpush3.bf16.msra.mxu0 %v11409_v38  ;;  %10442 = vmatprep.subr.bf16.mxu1 %v11410_v21  ;;  %v6600_v38 = vld [vmem:[#allocation3 + $0xf8] sm:$0xff] }
 0x2bf   : > { %10182 = vmatprep.subr.bf16.mxu0 %v11411_v58 }
 0x2c0   : > { %10427 = vmatmul.mubr.msk.bf16.gmra.mrb[20].mxu1 %vm13927_vm9, %v13248_v18  ;;  %v11417_v18 = vld [vmem:[#allocation7 + $0x118] sm:$0xff]  }
 0x2c1   : > { %10167 = vmatmul.mubr.bf16.vlgmr.msra.gmra.mrb[16].mxu0 %v13354_v6  ;;  %10430 = vmatprep.mubr.msk.bf16.mxu1 %vm13928_vm4, %v13262_v14  ;;  %v6066_v14 = vld [vmem:[#allocation3 + $0x11f] sm:$0xff] }
 0x2c2   : > { %10443 = vmatpush3.bf16.msra.mxu1 %v11410_v21  ;;  %10170 = vmatprep.mubr.bf16.mxu0 %v13359_v61  ;;  %v6077_v22 = vpack.c.bf16 %v6067_v20, %v6066_v14  ;;  %v13399_v21 = vpack.c.bf16 %v6598_v19, %v6597_v12  ;;  %v11440_v20 = vld [vmem:[#allocation7 + $0x1c8] sm:$0xff]  }
 0x2c3   : > { %10183 = vmatpush3.bf16.msra.mxu0 %v11411_v58  ;;  %10444 = vmatprep.subr.bf16.mxu1 %v11412_v9  ;;  %v6599_v58 = vld [vmem:[#allocation3 + $0xf0] sm:$0xff] }
 0x2c4   : > { %10184 = vmatprep.subr.bf16.mxu0 %v11413_v56  ;;  %v13401_v40 = vpack.c.bf16 %v6600_v38, %v6599_v58  ;;  %v5376_v38 = vld [vmem:[#allocation3 + $0x41] sm:$0xff]  ;;  %v5377_v12 = vld [vmem:[#allocation3 + $0x49] sm:$0xff]  ;;  %v5379_v58 = vld [vmem:[#allocation3 + $0x59] sm:$0xff] }
 0x2c6   : > { %10445 = vmatpush3.bf16.msra.mxu1 %v11412_v9  ;;  %v11434_v9 = vld [vmem:[#allocation7 + $0x130] sm:$0xff]  }
 0x2c7   : > { %10185 = vmatpush3.bf16.msra.mxu0 %v11413_v56  ;;  %10446 = vmatprep.subr.bf16.mxu1 %v11414_v43  ;;  %v11435_v56 = vld [vmem:[#allocation7 + $0x1e0] sm:$0xff]  }
 0x2c8   : > { %10431 = vmatmul.mubr.msk.bf16.gmra.mrb[24].mxu1 %vm13929_vm15, %v13264_v62  ;;  %10186 = vmatprep.subr.bf16.mxu0 %v11415_v25  ;;  %v11418_v62 = vld [vmem:[#allocation7 + $0x70] sm:$0xff]  }
 0x2c9   : > { %10171 = vmatmul.mubr.bf16.gmra.mrb[20].mxu0 %v13148_v34  ;;  %10434 = vmatprep.mubr.msk.bf16.mxu1 %vm13930_vm8, %v13278_v48  ;;  %v11422_v48 = vld [vmem:[#allocation7 + $0x100] sm:$0xff]  }
 0x2ca   : > { %10447 = vmatpush3.bf16.msra.mxu1 %v11414_v43  ;;  %10174 = vmatprep.mubr.bf16.mxu0 %v13371_v46  ;;  %v13409_v43 = vpack.c.bf16 %v4246_v55, %v6601_v1  ;;  %v11439_v55 = vld [vmem:[#allocation7 + $0x1f0] sm:$0xff]  }
 0x2cb   : > { %10187 = vmatpush3.bf16.msra.mxu0 %v11415_v25  ;;  %10448 = vmatprep.subr.bf16.mxu1 %v11416_v27  ;;  %v11436_v25 = vld [vmem:[#allocation7 + $0x138] sm:$0xff]  }
 0x2cc   : > { %10188 = vmatprep.subr.bf16.mxu0 %v11417_v18 }
 0x2ce   : > { %10449 = vmatpush3.bf16.msra.mxu1 %v11416_v27  ;;  %v11438_v27 = vld [vmem:[#allocation7 + $0x1c0] sm:$0xff]  }
 0x2cf   : > { %10189 = vmatpush3.bf16.msra.mxu0 %v11417_v18  ;;  %10450 = vmatprep.subr.bf16.mxu1 %v11418_v62  ;;  %v4822_v18 = vld [vmem:[#allocation3 + $0x90] sm:$0xff] }
 0x2d0   : > { %10435 = vmatmul.mubr.msk.bf16.gmra.mrb[28].mxu1 %vm13932_vm7, %v6077_v22  ;;  %10190 = vmatprep.subr.bf16.mxu0 %v11419_v53  ;;  %v4834_v14 = vpack.c.bf16 %v4823_v7, %v4822_v18  ;;  %v11443_v22 = vld [vmem:[#allocation7 + $0x80] sm:$0xff]  }
 0x2d1   : > { %10175 = vmatmul.mubr.bf16.gmra.mrb[24].mxu0 %v13179_v31  ;;  %10454 = vmatprep.mubr.bf16.mxu1 %v13201_v30  ;;  %v11424_v30 = vld [vmem:[#allocation7 + $0x108] sm:$0xff]   ;;  %v7149_v7 = vld [vmem:[#allocation3 + $0x99] sm:$0xff] }
 0x2d2   : > { %10451 = vmatpush3.bf16.msra.mxu1 %v11418_v62  ;;  %10178 = vmatprep.mubr.bf16.mxu0 %v13170_v26  ;;  %v11441_v62 = vld [vmem:[#allocation7 + $0x1f8] sm:$0xff]  }
 0x2d3   : > { %10191 = vmatpush3.bf16.msra.mxu0 %v11419_v53  ;;  %10452 = vmatprep.subr.bf16.mxu1 %v11420_v37  ;;  %v11442_v53 = vld [vmem:[#allocation7 + $0x1d0] sm:$0xff]  }
 0x2d4   : > { %10192 = vmatprep.subr.bf16.mxu0 %v11421_v42 }
 0x2d6   : > { %10453 = vmatpush3.bf16.msra.mxu1 %v11420_v37  ;;  %v11444_v37 = vld [vmem:[#allocation7 + $0x1d8] sm:$0xff]  }
 0x2d7   : > { %10193 = vmatpush3.bf16.msra.mxu0 %v11421_v42  ;;  %10470 = vmatprep.subr.bf16.mxu1 %v11422_v48  ;;  %v11445_v42 = vld [vmem:[#allocation7 + $0x88] sm:$0xff]  }
 0x2d8   : > { %10194 = vmatprep.subr.bf16.mxu0 %v11423_v49 }
 0x2d9   : > { %10455 = vmatmul.mubr.bf16.vlgmr.msra.gmra.mrb[16].mxu1 %v13383_v15  ;;  %10179 = vmatmul.mubr.bf16.gmra.mrb[28].mxu0 %v13207_v10 }
 0x2da   : > { %10458 = vmatprep.mubr.bf16.mxu1 %v13385_v8  ;;  %10471 = vmatpush3.bf16.msra.mxu1 %v11422_v48  ;;  %v11447_v48 = vld [vmem:[#allocation7 + $0x90] sm:$0xff]  }
 0x2db   : > { %10195 = vmatpush3.bf16.msra.mxu0 %v11423_v49  ;;  %10198 = vmatprep.mubr.bf16.mxu0 %v13354_v6  ;;  %v11433_v6 = vld [vmem:[#allocation7 + $0x1d8] sm:$0xff]  }
 0x2dc   : > { %10472 = vmatprep.subr.bf16.mxu1 %v11424_v30  ;;  %10196 = vmatprep.subr.bf16.mxu0 %v11425_v39  ;;  %v11449_v49 = vld [vmem:[#allocation7 + $0x98] sm:$0xff]  }
 0x2de   : > { %10473 = vmatpush3.bf16.msra.mxu1 %v11424_v30  ;;  %v11452_v30 = vld [vmem:[#allocation7 + $0x1f8] sm:$0xff]  }
 0x2df   : > { %10197 = vmatpush3.bf16.msra.mxu0 %v11425_v39  ;;  %10474 = vmatprep.subr.bf16.mxu1 %v11426_v52  ;;  %v11455_v39 = vld [vmem:[#allocation7 + $0xb0] sm:$0xff]  }
 0x2e0   : > { %10214 = vmatprep.subr.bf16.mxu0 %v11427_v13 }
 0x2e1   : > { %10459 = vmatmul.mubr.bf16.gmra.mrb[20].mxu1 %v13391_v50 }
 0x2e2   : > { %10199 = vmatmul.mubr.bf16.vlgmr.msra.gmra.mrb[16].mxu0 %v13359_v61  ;;  %10462 = vmatprep.mubr.bf16.mxu1 %v13393_v36 }
 0x2e3   : > { %10475 = vmatpush3.bf16.msra.mxu1 %v11426_v52  ;;  %10202 = vmatprep.mubr.bf16.mxu0 %v13148_v34  ;;  %v5370_v52 = vld [vmem:[#allocation3 + $0x11] sm:$0xff] }
 0x2e4   : > { %10215 = vmatpush3.bf16.msra.mxu0 %v11427_v13  ;;  %10476 = vmatprep.subr.bf16.mxu1 %v11428_v16  ;;  %v11456_v13 = vld [vmem:[#allocation7 + $0x88] sm:$0xff]  }
 0x2e5   : > { %10216 = vmatprep.subr.bf16.mxu0 %v11429_v44 }
 0x2e7   : > { %10477 = vmatpush3.bf16.msra.mxu1 %v11428_v16  ;;  %v5373_v16 = vld [vmem:[#allocation3 + $0x29] sm:$0xff] }
 0x2e8   : > { %10217 = vmatpush3.bf16.msra.mxu0 %v11429_v44  ;;  %10478 = vmatprep.subr.bf16.mxu1 %v11430_v45  ;;  %v5375_v44 = vld [vmem:[#allocation3 + $0x39] sm:$0xff] }
 0x2e9   : > { %10463 = vmatmul.mubr.bf16.gmra.mrb[24].mxu1 %v13399_v21  ;;  %10218 = vmatprep.subr.bf16.mxu0 %v11431_v47 }
 0x2ea   : > { %10203 = vmatmul.mubr.bf16.gmra.mrb[20].mxu0 %v13371_v46  ;;  %10466 = vmatprep.mubr.bf16.mxu1 %v13401_v40 }
 0x2eb   : > { %10479 = vmatpush3.bf16.msra.mxu1 %v11430_v45  ;;  %10206 = vmatprep.mubr.bf16.mxu0 %v13179_v31  ;;  %v11461_v45 = vld [vmem:[#allocation7 + $0x148] sm:$0xff]  }
 0x2ec   : > { %10219 = vmatpush3.bf16.msra.mxu0 %v11431_v47  ;;  %10480 = vmatprep.subr.bf16.mxu1 %v11432_v32  ;;  %v11462_v47 = vld [vmem:[#allocation7 + $0xa0] sm:$0xff]  }
 0x2ed   : > { %10220 = vmatprep.subr.bf16.mxu0 %v11433_v6 }
 0x2ef   : > { %10481 = vmatpush3.bf16.msra.mxu1 %v11432_v32  ;;  %v13448_v32 = vpack.c.bf16 %v5377_v12, %v5376_v38  ;;  %v11481_v38 = vld [vmem:[#allocation7 + $0x218] sm:$0xff]   ;;  %v7162_v12 = vld [vmem:[#allocation3 + $0x101] sm:$0xff] }
 0x2f0   : > { %10221 = vmatpush3.bf16.msra.mxu0 %v11433_v6  ;;  %10482 = vmatprep.subr.bf16.mxu1 %v11434_v9  ;;  %v5378_v6 = vld [vmem:[#allocation3 + $0x51] sm:$0xff] }
 0x2f1   : > { %10467 = vmatmul.mubr.bf16.gmra.mrb[28].mxu1 %v13409_v43  ;;  %10222 = vmatprep.subr.bf16.mxu0 %v11435_v56  ;;  %v13451_v1 = vpack.c.bf16 %v5379_v58, %v5378_v6  ;;  %v11482_v58 = vld [vmem:[#allocation7 + $0x170] sm:$0xff]   ;;  %v11483_v6 = vld [vmem:[#allocation7 + $0x220] sm:$0xff]  }
 0x2f2   : > { %10207 = vmatmul.mubr.bf16.gmra.mrb[24].mxu0 %v13170_v26  ;;  %10486 = vmatprep.mubr.bf16.mxu1 %v13383_v15 }
 0x2f3   : > { %10483 = vmatpush3.bf16.msra.mxu1 %v11434_v9  ;;  %10210 = vmatprep.mubr.bf16.mxu0 %v13207_v10  ;;  %v11465_v9 = vld [vmem:[#allocation7 + $0x158] sm:$0xff]  }
 0x2f4   : > { %10223 = vmatpush3.bf16.msra.mxu0 %v11435_v56  ;;  %10484 = vmatprep.subr.bf16.mxu1 %v11436_v25  ;;  %v11466_v56 = vld [vmem:[#allocation7 + $0xb0] sm:$0xff]  }
 0x2f5   : > { %10224 = vmatprep.subr.bf16.mxu0 %v11437_v4 }
 0x2f7   : > { %10485 = vmatpush3.bf16.msra.mxu1 %v11436_v25  ;;  %v5380_v25 = vld [vmem:[#allocation3 + $0x61] sm:$0xff] }
 0x2f8   : > { %10225 = vmatpush3.bf16.msra.mxu0 %v11437_v4  ;;  %10502 = vmatprep.subr.bf16.mxu1 %v11438_v27  ;;  %v11467_v4 = vld [vmem:[#allocation7 + $0x160] sm:$0xff]  }
 0x2f9   : > { %10226 = vmatprep.subr.bf16.mxu0 %v11439_v55 }
 0x2fa   : > { %10487 = vmatmul.mubr.bf16.vlgmr.msra.gmra.mrb[16].mxu1 %v13385_v8  ;;  %10211 = vmatmul.mubr.bf16.gmra.mrb[28].mxu0 %v4834_v14 }
 0x2fb   : > { %10490 = vmatprep.mubr.bf16.mxu1 %v13391_v50  ;;  %10503 = vmatpush3.bf16.msra.mxu1 %v11438_v27  ;;  %v7148_v27 = vld [vmem:[#allocation3 + $0x91] sm:$0xff] }
 0x2fc   : > { %10227 = vmatpush3.bf16.msra.mxu0 %v11439_v55  ;;  %10230 = vmatprep.mubr.bf16.mxu0 %v13359_v61  ;;  %v11446_v61 = vld [vmem:[#allocation7 + $0x1e0] sm:$0xff]  }
 0x2fd   : > { %10504 = vmatprep.subr.bf16.mxu1 %v11440_v20  ;;  %10228 = vmatprep.subr.bf16.mxu0 %v11441_v62  ;;  %v5383_v55 = vld [vmem:[#allocation3 + $0x79] sm:$0xff] }
 0x2ff   : > { %10505 = vmatpush3.bf16.msra.mxu1 %v11440_v20  ;;  %v5382_v20 = vld [vmem:[#allocation3 + $0x71] sm:$0xff] }
 0x300   : > { %10229 = vmatpush3.bf16.msra.mxu0 %v11441_v62  ;;  %10506 = vmatprep.subr.bf16.mxu1 %v11442_v53  ;;  %v11468_v62 = vld [vmem:[#allocation7 + $0xb8] sm:$0xff]  }
 0x301   : > { %10246 = vmatprep.subr.bf16.mxu0 %v11443_v22 }
 0x302   : > { %10491 = vmatmul.mubr.bf16.gmra.mrb[20].mxu1 %v13393_v36 }
 0x303   : > { %10231 = vmatmul.mubr.bf16.vlgmr.msra.gmra.mrb[16].mxu0 %v13148_v34  ;;  %10494 = vmatprep.mubr.bf16.mxu1 %v13399_v21  ;;  %v6604_v34 = vld [vmem:[#allocation3 + $0x118] sm:$0xff] }
 0x304   : > { %10507 = vmatpush3.bf16.msra.mxu1 %v11442_v53  ;;  %10234 = vmatprep.mubr.bf16.mxu0 %v13371_v46  ;;  %v11450_v46 = vld [vmem:[#allocation7 + $0x1f0] sm:$0xff]   ;;  %v13426_v57 = vpack.c.bf16 %v6604_v34, %v6603_v63  ;;  %v13465_v53 = vpack.c.bf16 %v5383_v55, %v5382_v20  ;;  %v11472_v63 = vld [vmem:[#allocation7 + $0x148] sm:$0xff]  }
 0x305   : > { %10247 = vmatpush3.bf16.msra.mxu0 %v11443_v22  ;;  %10508 = vmatprep.subr.bf16.mxu1 %v11444_v37  ;;  %v11469_v22 = vld [vmem:[#allocation7 + $0x168] sm:$0xff]   ;;  %v11494_v20 = vld [vmem:[#allocation7 + $0x230] sm:$0xff]  }
 0x306   : > { %10248 = vmatprep.subr.bf16.mxu0 %v11445_v42  ;;  %v11493_v55 = vld [vmem:[#allocation7 + $0x228] sm:$0xff]  }
 0x308   : > { %10509 = vmatpush3.bf16.msra.mxu1 %v11444_v37  ;;  %v7151_v37 = vld [vmem:[#allocation3 + $0xa9] sm:$0xff] }
 0x309   : > { %10249 = vmatpush3.bf16.msra.mxu0 %v11445_v42  ;;  %10510 = vmatprep.subr.bf16.mxu1 %v11446_v61  ;;  %v11470_v42 = vld [vmem:[#allocation7 + $0x140] sm:$0xff]  }
 0x30a   : > { %10495 = vmatmul.mubr.bf16.gmra.mrb[24].mxu1 %v13401_v40  ;;  %10250 = vmatprep.subr.bf16.mxu0 %v11447_v48 }
 0x30b   : > { %10235 = vmatmul.mubr.bf16.gmra.mrb[20].mxu0 %v13179_v31  ;;  %10498 = vmatprep.mubr.bf16.mxu1 %v13409_v43  ;;  %v11453_v31 = vld [vmem:[#allocation7 + $0xa8] sm:$0xff]  }
 0x30c   : > { %10511 = vmatpush3.bf16.msra.mxu1 %v11446_v61  ;;  %10238 = vmatprep.mubr.bf16.mxu0 %v13170_v26  ;;  %v11454_v26 = vld [vmem:[#allocation7 + $0x80] sm:$0xff]  }
 0x30d   : > { %10251 = vmatpush3.bf16.msra.mxu0 %v11447_v48  ;;  %10512 = vmatprep.subr.bf16.mxu1 %v11448_v0  ;;  %v5384_v61 = vld [vmem:[#allocation3 + $0x81] sm:$0xff]  ;;  %v5385_v48 = vld [vmem:[#allocation3 + $0x89] sm:$0xff] }
 0x30e   : > { %10252 = vmatprep.subr.bf16.mxu0 %v11449_v49  ;;  %v13478_v28 = vpack.c.bf16 %v5385_v48, %v5384_v61 }
 0x310   : > { %10513 = vmatpush3.bf16.msra.mxu1 %v11448_v0  ;;  %v11471_v0 = vld [vmem:[#allocation7 + $0x170] sm:$0xff]  }
 0x311   : > { %10253 = vmatpush3.bf16.msra.mxu0 %v11449_v49  ;;  %10514 = vmatprep.subr.bf16.mxu1 %v11450_v46  ;;  %v7153_v49 = vld [vmem:[#allocation3 + $0xb9] sm:$0xff] }
 0x312   : > { %10499 = vmatmul.mubr.bf16.gmra.mrb[28].mxu1 %v13426_v57  ;;  %10254 = vmatprep.subr.bf16.mxu0 %v11451_v3 }
 0x313   : > { %10239 = vmatmul.mubr.bf16.gmra.mrb[24].mxu0 %v13207_v10  ;;  %10518 = vmatprep.mubr.bf16.mxu1 %v13385_v8  ;;  %v5390_v10 = vpack.c.bf16 %v5371_v17, %v5370_v52  ;;  %v11458_v8 = vld [vmem:[#allocation7 + $0x90] sm:$0xff]   ;;  %v7157_v52 = vld [vmem:[#allocation3 + $0xd9] sm:$0xff] }
 0x314   : > { %10515 = vmatpush3.bf16.msra.mxu1 %v11450_v46  ;;  %10242 = vmatprep.mubr.bf16.mxu0 %v4834_v14  ;;  %v13462_v14 = vpack.c.bf16 %v7149_v7, %v7148_v27  ;;  %v7152_v46 = vld [vmem:[#allocation3 + $0xb1] sm:$0xff] }
 0x315   : > { %10255 = vmatpush3.bf16.msra.mxu0 %v11451_v3  ;;  %10516 = vmatprep.subr.bf16.mxu1 %v11452_v30  ;;  %v13480_v3 = vpack.c.bf16 %v7153_v49, %v7152_v46  ;;  %v11489_v27 = vld [vmem:[#allocation7 + $0x238] sm:$0xff]   ;;  %v5985_v46 = vld [vmem:[%s11812_s20 + $0x8] sm:$0xff] }
 0x316   : > { %10256 = vmatprep.subr.bf16.mxu0 %v11453_v31  ;;  %v11491_v7 = vld [vmem:[#allocation7 + $0x218] sm:$0xff]  }
 0x318   : > { %10517 = vmatpush3.bf16.msra.mxu1 %v11452_v30  ;;  %v11474_v30 = vld [vmem:[#allocation7 + $0x150] sm:$0xff]  }
 0x319   : > { %10257 = vmatpush3.bf16.msra.mxu0 %v11453_v31  ;;  %10534 = vmatprep.subr.bf16.mxu1 %v11454_v26  ;;  %v7154_v31 = vld [vmem:[#allocation3 + $0xc1] sm:$0xff] }
 0x31a   : > { %10258 = vmatprep.subr.bf16.mxu0 %v11455_v39 }
 0x31b   : > { %10519 = vmatmul.mubr.bf16.vlgmr.msra.gmra.mrb[16].mxu1 %v13391_v50  ;;  %10243 = vmatmul.mubr.bf16.gmra.mrb[28].mxu0 %v13383_v15  ;;  %v13436_v50 = vpack.c.bf16 %v5373_v16, %v5372_v41  ;;  %v5374_v15 = vld [vmem:[#allocation3 + $0x31] sm:$0xff]  ;;  %v7159_v41 = vld [vmem:[#allocation3 + $0xe9] sm:$0xff]  ;;  %v11478_v16 = vld [vmem:[#allocation7 + $0x160] sm:$0xff]  }
 0x31c   : > { %10522 = vmatprep.mubr.bf16.mxu1 %v13393_v36  ;;  %10535 = vmatpush3.bf16.msra.mxu1 %v11454_v26  ;;  %v11460_v36 = vld [vmem:[#allocation7 + $0x98] sm:$0xff]   ;;  %v13439_v19 = vpack.c.bf16 %v5375_v44, %v5374_v15  ;;  %v7155_v26 = vld [vmem:[#allocation3 + $0xc9] sm:$0xff] }
 0x31d   : > { %10259 = vmatpush3.bf16.msra.mxu0 %v11455_v39  ;;  %10262 = vmatprep.mubr.msk.bf16.mxu0 %vm12740_vm6, %v5390_v10  ;;  %v11475_v39 = vld [vmem:[#allocation7 + $0x200] sm:$0xff]   ;;  %v13494_v17 = vpack.c.bf16 %v7155_v26, %v7154_v31  ;;  %v11476_v10 = vld [vmem:[#allocation7 + $0x158] sm:$0xff]   ;;  %v11479_v44 = vld [vmem:[#allocation7 + $0x210] sm:$0xff]  }
 0x31e   : > { %10536 = vmatprep.subr.bf16.mxu1 %v11456_v13  ;;  %10260 = vmatprep.subr.bf16.mxu0 %v11457_v2 }
 0x320   : > { %10537 = vmatpush3.bf16.msra.mxu1 %v11456_v13  ;;  %v7156_v13 = vld [vmem:[#allocation3 + $0xd1] sm:$0xff] }
 0x321   : > { %10261 = vmatpush3.bf16.msra.mxu0 %v11457_v2  ;;  %10538 = vmatprep.subr.bf16.mxu1 %v11458_v8  ;;  %v13496_v2 = vpack.c.bf16 %v7157_v52, %v7156_v13 }
 0x322   : > { %10278 = vmatprep.subr.bf16.mxu0 %v11459_v11 }
 0x323   : > { %10523 = vmatmul.mubr.bf16.gmra.mrb[20].mxu1 %v13399_v21  ;;  %v11463_v21 = vld [vmem:[#allocation7 + $0x150] sm:$0xff]  }
 0x324   : > { %10263 = vmatmul.mubr.msk.bf16.vlgmr.msra.gmra.mrb[16].mxu0 %vm12761_vm10, %v13436_v50  ;;  %10526 = vmatprep.mubr.bf16.mxu1 %v13401_v40  ;;  %v11464_v40 = vld [vmem:[#allocation7 + $0xa8] sm:$0xff]  }
 0x325   : > { %10539 = vmatpush3.bf16.msra.mxu1 %v11458_v8  ;;  %10266 = vmatprep.mubr.msk.bf16.mxu0 %vm12768_vm11, %v13439_v19  ;;  %v11477_v8 = vld [vmem:[#allocation7 + $0x208] sm:$0xff]  }
 0x326   : > { %10279 = vmatpush3.bf16.msra.mxu0 %v11459_v11  ;;  %10540 = vmatprep.subr.bf16.mxu1 %v11460_v36  ;;  %v7158_v11 = vld [vmem:[#allocation3 + $0xe1] sm:$0xff] }
 0x327   : > { %10280 = vmatprep.subr.bf16.mxu0 %v11461_v45  ;;  %v13510_v15 = vpack.c.bf16 %v7159_v41, %v7158_v11 }
 0x329   : > { %10541 = vmatpush3.bf16.msra.mxu1 %v11460_v36  ;;  %v7160_v36 = vld [vmem:[#allocation3 + $0xf1] sm:$0xff] }
 0x32a   : > { %10281 = vmatpush3.bf16.msra.mxu0 %v11461_v45  ;;  %10542 = vmatprep.subr.bf16.mxu1 %v11462_v47 }
 0x32b   : > { %10527 = vmatmul.mubr.bf16.gmra.mrb[24].mxu1 %v13409_v43  ;;  %10282 = vmatprep.subr.bf16.mxu0 %v11463_v21  ;;  %v5381_v43 = vld [vmem:[#allocation3 + $0x69] sm:$0xff] }
 0x32c   : > { %10267 = vmatmul.mubr.msk.bf16.gmra.mrb[20].mxu0 %vm12795_vm13, %v13448_v32  ;;  %10530 = vmatprep.mubr.bf16.mxu1 %v13426_v57  ;;  %v13460_v18 = vpack.c.bf16 %v5381_v43, %v5380_v25  ;;  %v11473_v57 = vld [vmem:[#allocation7 + $0x178] sm:$0xff]   ;;  %v11486_v25 = vld [vmem:[#allocation7 + $0x200] sm:$0xff]   ;;  %v11487_v43 = vld [vmem:[#allocation7 + $0x230] sm:$0xff]  }
 0x32d   : > { %10543 = vmatpush3.bf16.msra.mxu1 %v11462_v47  ;;  %10270 = vmatprep.mubr.msk.bf16.mxu0 %vm12806_vm0, %v13451_v1  ;;  %v11480_v47 = vld [vmem:[#allocation7 + $0x168] sm:$0xff]  }
 0x32e   : > { %10283 = vmatpush3.bf16.msra.mxu0 %v11463_v21  ;;  %10544 = vmatprep.subr.bf16.mxu1 %v11464_v40  ;;  %v7163_v21 = vld [vmem:[#allocation3 + $0x109] sm:$0xff] }
 0x32f   : > { %10284 = vmatprep.subr.bf16.mxu0 %v11465_v9 }
 0x331   : > { %10545 = vmatpush3.bf16.msra.mxu1 %v11464_v40  ;;  %v13526_v40 = vpack.c.bf16 %v7163_v21, %v7162_v12  ;;  %v5989_v12 = vld [vmem:[%s11812_s20 + $0x28] sm:$0xff] }
 0x332   : > { %10285 = vmatpush3.bf16.msra.mxu0 %v11465_v9  ;;  %10546 = vmatprep.subr.bf16.mxu1 %v11466_v56  ;;  %v11484_v9 = vld [vmem:[#allocation7 + $0x178] sm:$0xff]  }
 0x333   : > { %10531 = vmatmul.mubr.bf16.gmra.mrb[28].mxu1 %v13340_v59  ;;  %10286 = vmatprep.subr.bf16.mxu0 %v11467_v4  ;;  %v7150_v59 = vld [vmem:[#allocation3 + $0xa1] sm:$0xff] }
 0x334   : > { %10271 = vmatmul.mubr.msk.bf16.gmra.mrb[24].mxu0 %vm12839_vm2, %v13460_v18  ;;  %10550 = vmatprep.mubr.msk.bf16.mxu1 %vm12740_vm6, %v13462_v14  ;;  %v13476_v34 = vpack.c.bf16 %v7151_v37, %v7150_v59  ;;  %v5984_v37 = vld [vmem:[%s11812_s20] sm:$0xff] }
 0x335   : > { %10547 = vmatpush3.bf16.msra.mxu1 %v11466_v56  ;;  %10274 = vmatprep.mubr.msk.bf16.mxu0 %vm12850_vm3, %v13465_v53  ;;  %v11485_v56 = vld [vmem:[#allocation7 + $0x228] sm:$0xff]  }
 0x336   : > { %10287 = vmatpush3.bf16.msra.mxu0 %v11467_v4  ;;  %10548 = vmatprep.subr.bf16.mxu1 %v11468_v62  ;;  %v11488_v4 = vld [vmem:[#allocation7 + $0x208] sm:$0xff]  }
 0x337   : > { %10288 = vmatprep.subr.bf16.mxu0 %v11469_v22 }
 0x339   : > { %10549 = vmatpush3.bf16.msra.mxu1 %v11468_v62 }
 0x33a   : > { %10289 = vmatpush3.bf16.msra.mxu0 %v11469_v22  ;;  %10566 = vmatprep.subr.bf16.mxu1 %v11470_v42  ;;  %v11495_v22 = vld [vmem:[#allocation7 + $0x238] sm:$0xff]  }
 0x33b   : > { %10290 = vmatprep.subr.bf16.mxu0 %v11471_v0 }
 0x33c   : > { %10551 = vmatmul.mubr.msk.bf16.vlgmr.msra.gmra.mrb[16].mxu1 %vm12761_vm10, %v13476_v34  ;;  %10275 = vmatmul.mubr.msk.bf16.gmra.mrb[28].mxu0 %vm13933_vm12, %v13478_v28 }
 0x33d   : > { %10554 = vmatprep.mubr.msk.bf16.mxu1 %vm12768_vm11, %v13480_v3  ;;  %10567 = vmatpush3.bf16.msra.mxu1 %v11470_v42 }
 0x33e   : > { %10291 = vmatpush3.bf16.msra.mxu0 %v11471_v0  ;;  %10294 = vmatprep.mubr.msk.bf16.mxu0 %vm12761_vm10, %v13436_v50  ;;  %v7161_v50 = vld [vmem:[#allocation3 + $0xf9] sm:$0xff] }
 0x33f   : > { %10568 = vmatprep.subr.bf16.mxu1 %v11472_v63  ;;  %10292 = vmatprep.subr.bf16.mxu0 %v11473_v57  ;;  %v13512_v45 = vpack.c.bf16 %v7161_v50, %v7160_v36  ;;  %v5987_v0 = vld [vmem:[%s11812_s20 + $0x18] sm:$0xff] }
 0x340   : > { %v5991_v36 = vld [vmem:[%s11812_s20 + $0x38] sm:$0xff] }
 0x341   : > { %10569 = vmatpush3.bf16.msra.mxu1 %v11472_v63 }
 0x342   : > { %10293 = vmatpush3.bf16.msra.mxu0 %v11473_v57  ;;  %10570 = vmatprep.subr.bf16.mxu1 %v11474_v30 }
 0x343   : > { %10310 = vmatprep.subr.bf16.mxu0 %v11475_v39 }
 0x344   : > { %10555 = vmatmul.mubr.msk.bf16.gmra.mrb[20].mxu1 %vm12795_vm13, %v13494_v17 }
 0x345   : > { %10295 = vmatmul.mubr.msk.bf16.vlgmr.msra.gmra.mrb[16].mxu0 %vm12768_vm11, %v13439_v19  ;;  %10558 = vmatprep.mubr.msk.bf16.mxu1 %vm12806_vm0, %v13496_v2 }
 0x346   : > { %10571 = vmatpush3.bf16.msra.mxu1 %v11474_v30  ;;  %10298 = vmatprep.mubr.msk.bf16.mxu0 %vm12795_vm13, %v13448_v32 }
 0x347   : > { %10311 = vmatpush3.bf16.msra.mxu0 %v11475_v39  ;;  %10572 = vmatprep.subr.bf16.mxu1 %v11476_v10 }
 0x348   : > { %10312 = vmatprep.subr.bf16.mxu0 %v11477_v8 }
 0x34a   : > { %10573 = vmatpush3.bf16.msra.mxu1 %v11476_v10  ;;  %v5990_v10 = vld [vmem:[%s11812_s20 + $0x30] sm:$0xff] }
 0x34b   : > { %10313 = vmatpush3.bf16.msra.mxu0 %v11477_v8  ;;  %10574 = vmatprep.subr.bf16.mxu1 %v11478_v16 }
 0x34c   : > { %10559 = vmatmul.mubr.msk.bf16.gmra.mrb[24].mxu1 %vm12839_vm2, %v13510_v15  ;;  %10314 = vmatprep.subr.bf16.mxu0 %v11479_v44 }
 0x34d   : > { %10299 = vmatmul.mubr.msk.bf16.gmra.mrb[20].mxu0 %vm12806_vm0, %v13451_v1  ;;  %10562 = vmatprep.mubr.msk.bf16.mxu1 %vm12850_vm3, %v13512_v45 }
 0x34e   : > { %10575 = vmatpush3.bf16.msra.mxu1 %v11478_v16  ;;  %10302 = vmatprep.mubr.msk.bf16.mxu0 %vm12839_vm2, %v13460_v18  ;;  %v5988_v16 = vld [vmem:[%s11812_s20 + $0x20] sm:$0xff] }
 0x34f   : > { %10315 = vmatpush3.bf16.msra.mxu0 %v11479_v44  ;;  %10576 = vmatprep.subr.bf16.mxu1 %v11480_v47 }
 0x350   : > { %10316 = vmatprep.subr.bf16.mxu0 %v11481_v38 }
 0x352   : > { %10577 = vmatpush3.bf16.msra.mxu1 %v11480_v47 }
 0x353   : > { %10317 = vmatpush3.bf16.msra.mxu0 %v11481_v38  ;;  %10578 = vmatprep.subr.bf16.mxu1 %v11482_v58 }
 0x354   : > { %10563 = vmatmul.mubr.msk.bf16.gmra.mrb[28].mxu1 %vm13933_vm12, %v13526_v40  ;;  %10318 = vmatprep.subr.bf16.mxu0 %v11483_v6 }
 0x355   : > { %10303 = vmatmul.mubr.msk.bf16.gmra.mrb[24].mxu0 %vm12850_vm3, %v13465_v53  ;;  %10582 = vmatprep.mubr.msk.bf16.mxu1 %vm12761_vm10, %v13476_v34 }
 0x356   : > { %10579 = vmatpush3.bf16.msra.mxu1 %v11482_v58  ;;  %10306 = vmatprep.mubr.msk.bf16.mxu0 %vm13933_vm12, %v13478_v28 }
 0x357   : > { %10319 = vmatpush3.bf16.msra.mxu0 %v11483_v6  ;;  %10580 = vmatprep.subr.bf16.mxu1 %v11484_v9 }
 0x358   : > { %10320 = vmatprep.subr.bf16.mxu0 %v11485_v56 }
 0x35a   : > { %10581 = vmatpush3.bf16.msra.mxu1 %v11484_v9 }
 0x35b   : > { %10321 = vmatpush3.bf16.msra.mxu0 %v11485_v56  ;;  %10598 = vmatprep.subr.bf16.mxu1 %v11486_v25 }
 0x35c   : > { %10322 = vmatprep.subr.bf16.mxu0 %v11487_v43 }
 0x35d   : > { %10583 = vmatmul.mubr.msk.bf16.vlgmr.msra.gmra.mrb[16].mxu1 %vm12768_vm11, %v13480_v3  ;;  %10307 = vmatmul.mubr.msk.bf16.gmra.mrb[28].mxu0 %vm13934_vm14, %v13462_v14 }
 0x35e   : > { %10586 = vmatprep.mubr.msk.bf16.mxu1 %vm12795_vm13, %v13494_v17  ;;  %10599 = vmatpush3.bf16.msra.mxu1 %v11486_v25 }
 0x35f   : > { %10323 = vmatpush3.bf16.msra.mxu0 %v11487_v43  ;;  %10326 = vmatprep.mubr.msk.bf16.mxu0 %vm12768_vm11, %v13439_v19  ;;  %v11492_v19 = vld [vmem:[#allocation7 + $0x220] sm:$0xff]  }
 0x360   : > { %10600 = vmatprep.subr.bf16.mxu1 %v11488_v4  ;;  %10324 = vmatprep.subr.bf16.mxu0 %v11489_v27 }
 0x362   : > { %10601 = vmatpush3.bf16.msra.mxu1 %v11488_v4 }
 0x363   : > { %10325 = vmatpush3.bf16.msra.mxu0 %v11489_v27  ;;  %10602 = vmatprep.subr.bf16.mxu1 %v11490_v60 }
 0x365   : > { %10587 = vmatmul.mubr.msk.bf16.gmra.mrb[20].mxu1 %vm12806_vm0, %v13496_v2 }
 0x366   : > { %10327 = vmatmul.mubr.msk.bf16.vlgmr.msra.gmra.mrb[16].mxu0 %vm12795_vm13, %v13448_v32  ;;  %10590 = vmatprep.mubr.msk.bf16.mxu1 %vm12839_vm2, %v13510_v15  ;;  %v7164_v32 = vld [vmem:[#allocation3 + $0x111] sm:$0xff] }
 0x367   : > { %10603 = vmatpush3.bf16.msra.mxu1 %v11490_v60  ;;  %10330 = vmatprep.mubr.msk.bf16.mxu0 %vm12806_vm0, %v13451_v1  ;;  %v7165_v1 = vld [vmem:[#allocation3 + $0x119] sm:$0xff] }
 0x368   : > { %10604 = vmatprep.subr.bf16.mxu1 %v11491_v7  ;;  %v7176_v62 = vpack.c.bf16 %v7165_v1, %v7164_v32  ;;  %v5992_v1 = vld [vmem:[%s11812_s20 + $0x40] sm:$0xff] }
 0x36b   : > { %10605 = vmatpush3.bf16.msra.mxu1 %v11491_v7  ;;  %v5994_v7 = vld [vmem:[%s11812_s20 + $0x50] sm:$0xff] }
 0x36c   : > { %10606 = vmatprep.subr.bf16.mxu1 %v11492_v19 }
 0x36d   : > { %10591 = vmatmul.mubr.msk.bf16.gmra.mrb[24].mxu1 %vm12850_vm3, %v13512_v45 }
 0x36e   : > { %10331 = vmatmul.mubr.msk.bf16.gmra.mrb[20].mxu0 %vm12839_vm2, %v13460_v18  ;;  %10594 = vmatprep.mubr.msk.bf16.mxu1 %vm13933_vm12, %v13526_v40 }
 0x36f   : > { %10607 = vmatpush3.bf16.msra.mxu1 %v11492_v19  ;;  %10334 = vmatprep.mubr.msk.bf16.mxu0 %vm12850_vm3, %v13465_v53 }
 0x370   : > { %10608 = vmatprep.subr.bf16.mxu1 %v11493_v55 }
 0x373   : > { %10609 = vmatpush3.bf16.msra.mxu1 %v11493_v55 }
 0x374   : > { %10610 = vmatprep.subr.bf16.mxu1 %v11494_v20 }
 0x375   : > { %10595 = vmatmul.mubr.msk.bf16.gmra.mrb[28].mxu1 %vm13934_vm14, %v7176_v62 }
 0x376   : > { %10335 = vmatmul.mubr.msk.bf16.gmra.mrb[24].mxu0 %vm13933_vm12, %v13478_v28  ;;  %10614 = vmatprep.mubr.msk.bf16.mxu1 %vm12768_vm11, %v13480_v3 }
 0x377   : > { %10611 = vmatpush3.bf16.msra.mxu1 %v11494_v20  ;;  %10338 = vmatprep.mubr.msk.bf16.mxu0 %vm13934_vm14, %v13462_v14  ;;  %v5986_v14 = vld [vmem:[%s11812_s20 + $0x10] sm:$0xff] }
 0x378   : > { %10612 = vmatprep.subr.bf16.mxu1 %v11495_v22 }
 0x37b   : > { %10613 = vmatpush3.bf16.msra.mxu1 %v11495_v22 }
 0x37e   : > { %10615 = vmatmul.mubr.msk.bf16.vlgmr.msra.gmra.mrb[16].mxu1 %vm12795_vm13, %v13494_v17  ;;  %10339 = vmatmul.mubr.msk.bf16.gmra.mrb[28].mxu0 %vm13935_vm1, %v13476_v34 }
 0x37f   : > { %10618 = vmatprep.mubr.msk.bf16.mxu1 %vm12806_vm0, %v13496_v2 }
 0x386   : > { %10619 = vmatmul.mubr.msk.bf16.gmra.mrb[20].mxu1 %vm12839_vm2, %v13510_v15 }
 0x387   : > { %10622 = vmatprep.mubr.msk.bf16.mxu1 %vm12850_vm3, %v13512_v45 }
 0x38e   : > { %10623 = vmatmul.mubr.msk.bf16.gmra.mrb[24].mxu1 %vm13933_vm12, %v13526_v40 }
 0x38f   : > { %10626 = vmatprep.mubr.msk.bf16.mxu1 %vm13934_vm14, %v7176_v62 }
 0x396   : > { %10627 = vmatmul.mubr.msk.bf16.gmra.mrb[28].mxu1 %vm13935_vm1, %v7177_v23 }
 0x439   : > { %v10328_v33 = vpop.f32.mrb[16].mxu0 }
 0x43a   : > { %v5950_v54 = vmul.f32 %v10328_v33, %v13612_v35  ;;  %v5865_v18 = vpop.f32.mrb[17].mxu0 }
 0x43b   : > { %v5948_v53 = vmul.f32 %v13612_v35, %v5865_v18  ;;  %v10329_v24 = vpop.f32.mrb[18].mxu0 }
 0x43c   : > { %v5970_v59 = vadd.f32 %v13617_v51, %v5950_v54  ;;  %v5951_v42 = vmul.f32 %v10329_v24, %v13612_v35  ;;  %v5868_v61 = vpop.f32.mrb[19].mxu0  ;;  %v5993_v54 = vld [vmem:[%s11812_s20 + $0x48] sm:$0xff] }
 0x43d   : > { %v5968_v48 = vadd.f32 %v13617_v51, %v5948_v53  ;;  %v5949_v49 = vmul.f32 %v13612_v35, %v5868_v61 }
 0x43e   : > { %v6002_v34 = vadd.f32 %v5986_v14, %v5970_v59  ;;  %v5971_v28 = vadd.f32 %v13617_v51, %v5951_v42 }
 0x43f   : > { %v6000_v3 = vadd.f32 %v5984_v37, %v5968_v48  ;;  %v5969_v63 = vadd.f32 %v13617_v51, %v5949_v49 }
 0x440   : > { %v6018_v57 = vmax.f32 %v6002_v34, 0.0  ;;  %v6003_v30 = vadd.f32 %v5987_v0, %v5971_v28 }
 0x441   : > { %v6016_v31 = vmax.f32 %v6000_v3, 0.0  ;;  %v6001_v26 = vadd.f32 %v5985_v46, %v5969_v63  ;;  %v10332_v39 = vpop.f32.mrb[20].mxu0  ;;  %v7753_v3 = vld [vmem:[%s11812_s20 + $0x90] sm:$0xff] }
 0x442   : > { %6034 = vst [vmem:[%s13633_s9 + $0x10] sm:$0xff] %v6018_v57  ;;  %v6019_v52 = vmax.f32 %v6003_v30, 0.0  ;;  %v5954_v17 = vmul.f32 %v10332_v39, %v13612_v35  ;;  %v5881_v13 = vpop.f32.mrb[21].mxu0  ;;  %v5998_v63 = vld [vmem:[%s11812_s20 + $0x70] sm:$0xff] }
 0x443   : > { %6032 = vst [vmem:[%s13633_s9] sm:$0xff] %v6016_v31  ;;  %v6017_v2 = vmax.f32 %v6001_v26, 0.0  ;;  %v5952_v8 = vmul.f32 %v13612_v35, %v5881_v13  ;;  %v10333_v11 = vpop.f32.mrb[22].mxu0  ;;  %v5996_v13 = vld [vmem:[%s11812_s20 + $0x60] sm:$0xff] }
 0x444   : > { %6035 = vst [vmem:[%s13633_s9 + $0x18] sm:$0xff] %v6019_v52  ;;  %v5974_v41 = vadd.f32 %v13617_v51, %v5954_v17  ;;  %v5955_v44 = vmul.f32 %v10333_v11, %v13612_v35  ;;  %v5884_v50 = vpop.f32.mrb[23].mxu0  ;;  %v7751_v17 = vld [vmem:[%s11812_s20 + $0x80] sm:$0xff] }
 0x445   : > { %6033 = vst [vmem:[%s13633_s9 + $0x8] sm:$0xff] %v6017_v2  ;;  %v5972_v15 = vadd.f32 %v13617_v51, %v5952_v8  ;;  %v5953_v45 = vmul.f32 %v13612_v35, %v5884_v50  ;;  %v5999_v50 = vld [vmem:[%s11812_s20 + $0x78] sm:$0xff] }
 0x446   : > { %v6006_v47 = vadd.f32 %v5990_v10, %v5974_v41  ;;  %v5975_v38 = vadd.f32 %v13617_v51, %v5955_v44  ;;  %v7754_v44 = vld [vmem:[%s11812_s20 + $0x98] sm:$0xff] }
 0x447   : > { %v6004_v21 = vadd.f32 %v5988_v16, %v5972_v15  ;;  %v5973_v58 = vadd.f32 %v13617_v51, %v5953_v45 }
 0x448   : > { %v6022_v6 = vmax.f32 %v6006_v47, 0.0  ;;  %v6007_v40 = vadd.f32 %v5991_v36, %v5975_v38 }
 0x449   : > { %v6020_v9 = vmax.f32 %v6004_v21, 0.0  ;;  %v6005_v56 = vadd.f32 %v5989_v12, %v5973_v58  ;;  %v10336_v25 = vpop.f32.mrb[24].mxu0  ;;  %v7752_v21 = vld [vmem:[%s11812_s20 + $0x88] sm:$0xff] }
 0x44a   : > { %6038 = vst [vmem:[%s13633_s9 + $0x30] sm:$0xff] %v6022_v6  ;;  %v6023_v43 = vmax.f32 %v6007_v40, 0.0  ;;  %v5958_v4 = vmul.f32 %v10336_v25, %v13612_v35  ;;  %v5897_v27 = vpop.f32.mrb[25].mxu0  ;;  %v5997_v58 = vld [vmem:[%s11812_s20 + $0x68] sm:$0xff] }
 0x44b   : > { %6036 = vst [vmem:[%s13633_s9 + $0x20] sm:$0xff] %v6020_v9  ;;  %v6021_v60 = vmax.f32 %v6005_v56, 0.0  ;;  %v5956_v19 = vmul.f32 %v13612_v35, %v5897_v27  ;;  %v10337_v55 = vpop.f32.mrb[26].mxu0 }
 0x44c   : > { %6039 = vst [vmem:[%s13633_s9 + $0x38] sm:$0xff] %v6023_v43  ;;  %v5978_v32 = vadd.f32 %v13617_v51, %v5958_v4  ;;  %v5959_v20 = vmul.f32 %v10337_v55, %v13612_v35  ;;  %v5900_v62 = vpop.f32.mrb[27].mxu0 }
 0x44d   : > { %6037 = vst [vmem:[%s13633_s9 + $0x28] sm:$0xff] %v6021_v60  ;;  %v5976_v22 = vadd.f32 %v13617_v51, %v5956_v19  ;;  %v5957_v29 = vmul.f32 %v13612_v35, %v5900_v62 }
 0x44e   : > { %v6010_v23 = vadd.f32 %v5994_v7, %v5978_v32  ;;  %v5979_v33 = vadd.f32 %v13617_v51, %v5959_v20 }
 0x44f   : > { %v6008_v18 = vadd.f32 %v5992_v1, %v5976_v22  ;;  %v5977_v14 = vadd.f32 %v13617_v51, %v5957_v29 }
 0x450   : > { %v6026_v53 = vmax.f32 %v6010_v23, 0.0  ;;  %v6011_v24 = vadd.f32 %v5995_v5, %v5979_v33  ;;  %v7757_v23 = vld [vmem:[%s11812_s20 + $0xb0] sm:$0xff] }
 0x451   : > { %v6024_v59 = vmax.f32 %v6008_v18, 0.0  ;;  %v6009_v37 = vadd.f32 %v5993_v54, %v5977_v14  ;;  %v10616_v42 = vpop.f32.mrb[16].mxu1  ;;  %v10340_v61 = vpop.f32.mrb[28].mxu0  ;;  %v7755_v14 = vld [vmem:[%s11812_s20 + $0xa0] sm:$0xff] }
 0x452   : > { %6042 = vst [vmem:[%s13633_s9 + $0x50] sm:$0xff] %v6026_v53  ;;  %v6027_v48 = vmax.f32 %v6011_v24, 0.0  ;;  %v7721_v0 = vmul.f32 %v10616_v42, %v13612_v35  ;;  %v5962_v49 = vmul.f32 %v10340_v61, %v13612_v35  ;;  %v7640_v34 = vpop.f32.mrb[17].mxu1  ;;  %v5913_v28 = vpop.f32.mrb[29].mxu0 }
 0x453   : > { %6040 = vst [vmem:[%s13633_s9 + $0x40] sm:$0xff] %v6024_v59  ;;  %v6025_v46 = vmax.f32 %v6009_v37, 0.0  ;;  %v7719_v57 = vmul.f32 %v13612_v35, %v7640_v34  ;;  %v5960_v30 = vmul.f32 %v13612_v35, %v5913_v28  ;;  %v10617_v31 = vpop.f32.mrb[18].mxu1  ;;  %v10341_v26 = vpop.f32.mrb[30].mxu0  ;;  %v7758_v37 = vld [vmem:[%s11812_s20 + $0xb8] sm:$0xff] }
 0x454   : > { %6043 = vst [vmem:[%s13633_s9 + $0x58] sm:$0xff] %v6027_v48  ;;  %v7737_v39 = vadd.f32 %v13617_v51, %v7721_v0  ;;  %v5982_v52 = vadd.f32 %v13617_v51, %v5962_v49  ;;  %v7722_v2 = vmul.f32 %v10617_v31, %v13612_v35  ;;  %v5963_v10 = vmul.f32 %v10341_v26, %v13612_v35  ;;  %v7643_v8 = vpop.f32.mrb[19].mxu1  ;;  %v5916_v11 = vpop.f32.mrb[31].mxu0  ;;  %v7756_v0 = vld [vmem:[%s11812_s20 + $0xa8] sm:$0xff] }
 0x455   : > { %6041 = vst [vmem:[%s13633_s9 + $0x48] sm:$0xff] %v6025_v46  ;;  %v7735_v41 = vadd.f32 %v13617_v51, %v7719_v57  ;;  %v5980_v16 = vadd.f32 %v13617_v51, %v5960_v30  ;;  %v7720_v15 = vmul.f32 %v13612_v35, %v7643_v8  ;;  %v5961_v36 = vmul.f32 %v13612_v35, %v5916_v11 }
 0x456   : > { %v7769_v45 = vadd.f32 %v7753_v3, %v7737_v39  ;;  %v6014_v47 = vadd.f32 %v5998_v63, %v5982_v52  ;;  %v7738_v38 = vadd.f32 %v13617_v51, %v7722_v2  ;;  %v5983_v12 = vadd.f32 %v13617_v51, %v5963_v10  ;;  %v7761_v52 = vld [vmem:[%s11812_s20 + $0xd0] sm:$0xff]  ;;  %v7759_v10 = vld [vmem:[%s11812_s20 + $0xc0] sm:$0xff] }
 0x457   : > { %v7767_v6 = vadd.f32 %v7751_v17, %v7735_v41  ;;  %v6012_v40 = vadd.f32 %v5996_v13, %v5980_v16  ;;  %v7736_v9 = vadd.f32 %v13617_v51, %v7720_v15  ;;  %v5981_v56 = vadd.f32 %v13617_v51, %v5961_v36  ;;  %v7762_v16 = vld [vmem:[%s11812_s20 + $0xd8] sm:$0xff]  ;;  %v7760_v36 = vld [vmem:[%s11812_s20 + $0xc8] sm:$0xff] }
 0x458   : > { %v7785_v25 = vmax.f32 %v7769_v45, 0.0  ;;  %v6030_v43 = vmax.f32 %v6014_v47, 0.0  ;;  %v7770_v4 = vadd.f32 %v7754_v44, %v7738_v38  ;;  %v6015_v27 = vadd.f32 %v5999_v50, %v5983_v12 }
 0x459   : > { %v7783_v60 = vmax.f32 %v7767_v6, 0.0  ;;  %v6028_v7 = vmax.f32 %v6012_v40, 0.0  ;;  %v7768_v19 = vadd.f32 %v7752_v21, %v7736_v9  ;;  %v6013_v55 = vadd.f32 %v5997_v58, %v5981_v56  ;;  %v10620_v32 = vpop.f32.mrb[20].mxu1 }
 0x45a   : > { %7801 = vst [vmem:[%s13633_s9 + $0x90] sm:$0xff] %v7785_v25  ;;  %6046 = vst [vmem:[%s13633_s9 + $0x70] sm:$0xff] %v6030_v43  ;;  %v7786_v1 = vmax.f32 %v7770_v4, 0.0  ;;  %v6031_v20 = vmax.f32 %v6015_v27, 0.0  ;;  %v7725_v62 = vmul.f32 %v10620_v32, %v13612_v35  ;;  %v7656_v22 = vpop.f32.mrb[21].mxu1  ;;  %v7765_v43 = vld [vmem:[%s11812_s20 + $0xf0] sm:$0xff] }
 0x45b   : > { %7799 = vst [vmem:[%s13633_s9 + $0x80] sm:$0xff] %v7783_v60  ;;  %6044 = vst [vmem:[%s13633_s9 + $0x60] sm:$0xff] %v6028_v7  ;;  %v7784_v5 = vmax.f32 %v7768_v19, 0.0  ;;  %v6029_v29 = vmax.f32 %v6013_v55, 0.0  ;;  %v7723_v33 = vmul.f32 %v13612_v35, %v7656_v22  ;;  %v10621_v54 = vpop.f32.mrb[22].mxu1  ;;  %v7763_v7 = vld [vmem:[%s11812_s20 + $0xe0] sm:$0xff] }
 0x45c   : > { %7802 = vst [vmem:[%s13633_s9 + $0x98] sm:$0xff] %v7786_v1  ;;  %6047 = vst [vmem:[%s13633_s9 + $0x78] sm:$0xff] %v6031_v20  ;;  %v7741_v18 = vadd.f32 %v13617_v51, %v7725_v62  ;;  %v7726_v53 = vmul.f32 %v10621_v54, %v13612_v35  ;;  %v7659_v24 = vpop.f32.mrb[23].mxu1  ;;  %v7766_v1 = vld [vmem:[%s11812_s20 + $0xf8] sm:$0xff] }
 0x45d   : > { %7800 = vst [vmem:[%s13633_s9 + $0x88] sm:$0xff] %v7784_v5  ;;  %6045 = vst [vmem:[%s13633_s9 + $0x68] sm:$0xff] %v6029_v29  ;;  %v7739_v59 = vadd.f32 %v13617_v51, %v7723_v33  ;;  %v7724_v42 = vmul.f32 %v13612_v35, %v7659_v24  ;;  %v7764_v5 = vld [vmem:[%s11812_s20 + $0xe8] sm:$0xff]  ;;  %s11558_s20 = scalar_lea.vmem %s13755_s28, 4096 }
 0x45e   : > { %v7773_v61 = vadd.f32 %v7757_v23, %v7741_v18  ;;  %v7742_v48 = vadd.f32 %v13617_v51, %v7726_v53  ;;  %p11559_p4 = scmp.ne.s32.totalorder %s13755_s28, %s11558_s20  ;;  %p11566_p13 = scmp.lt.s32.totalorder %s11564_s26, %s11558_s20 }
 0x45f   : > { %v7771_v49 = vadd.f32 %v7755_v14, %v7739_v59  ;;  %v7740_v34 = vadd.f32 %v13617_v51, %v7724_v42 }
 0x460   : > { %v7789_v28 = vmax.f32 %v7773_v61, 0.0  ;;  %v7774_v46 = vadd.f32 %v7758_v37, %v7742_v48  ;;  %p11560_p6 = pnand %p11559_p4, %p11758_p12  ;;  %p11567_p3 = por %p11566_p13, %p11565_p10 }
 0x461   : > { %v7787_v3 = vmax.f32 %v7771_v49, 0.0  ;;  %v7772_v63 = vadd.f32 %v7756_v0, %v7740_v34  ;;  %v10624_v57 = vpop.f32.mrb[24].mxu1 }
 0x462   : > { %7805 = vst [vmem:[%s13633_s9 + $0xb0] sm:$0xff] %v7789_v28  ;;  %v7790_v30 = vmax.f32 %v7774_v46, 0.0  ;;  %v7729_v31 = vmul.f32 %v10624_v57, %v13612_v35  ;;  %v7672_v26 = vpop.f32.mrb[25].mxu1  ;;  %p11561_p8 = pneg %p11560_p6 }
 0x463   : > { %7803 = vst [vmem:[%s13633_s9 + $0xa0] sm:$0xff] %v7787_v3  ;;  %v7788_v39 = vmax.f32 %v7772_v63, 0.0  ;;  %v7727_v17 = vmul.f32 %v13612_v35, %v7672_v26  ;;  %v10625_v13 = vpop.f32.mrb[26].mxu1 }
 0x464   : > { %7806 = vst [vmem:[%s13633_s9 + $0xb8] sm:$0xff] %v7790_v30  ;;  %v7745_v2 = vadd.f32 %v13617_v51, %v7729_v31  ;;  %v7730_v8 = vmul.f32 %v10625_v13, %v13612_v35  ;;  %v7675_v11 = vpop.f32.mrb[27].mxu1  ;;  %p11568_p7 = pnand %p11567_p3, %p11561_p8 }
 0x465   : > { %7804 = vst [vmem:[%s13633_s9 + $0xa8] sm:$0xff] %v7788_v39  ;;  %v7743_v41 = vadd.f32 %v13617_v51, %v7727_v17  ;;  %v7728_v44 = vmul.f32 %v13612_v35, %v7675_v11 }
 0x466   : > { %v7777_v50 = vadd.f32 %v7761_v52, %v7745_v2  ;;  %v7746_v15 = vadd.f32 %v13617_v51, %v7730_v8 }
 0x467   : > { %v7775_v45 = vadd.f32 %v7759_v10, %v7743_v41  ;;  %v7744_v47 = vadd.f32 %v13617_v51, %v7728_v44 }
 0x468   : > { %v7793_v38 = vmax.f32 %v7777_v50, 0.0  ;;  %v7778_v12 = vadd.f32 %v7762_v16, %v7746_v15 }
 0x469   : > { %v7791_v21 = vmax.f32 %v7775_v45, 0.0  ;;  %v7776_v58 = vadd.f32 %v7760_v36, %v7744_v47  ;;  %v10628_v6 = vpop.f32.mrb[28].mxu1 }
 0x46a   : > { %7809 = vst [vmem:[%s13633_s9 + $0xd0] sm:$0xff] %v7793_v38  ;;  %v7794_v40 = vmax.f32 %v7778_v12, 0.0  ;;  %v7733_v9 = vmul.f32 %v10628_v6, %v13612_v35  ;;  %v7688_v56 = vpop.f32.mrb[29].mxu1 }
 0x46b   : > { %7807 = vst [vmem:[%s13633_s9 + $0xc0] sm:$0xff] %v7791_v21  ;;  %v7792_v25 = vmax.f32 %v7776_v58, 0.0  ;;  %v7731_v4 = vmul.f32 %v13612_v35, %v7688_v56  ;;  %v10629_v27 = vpop.f32.mrb[30].mxu1 }
 0x46c   : > { %7810 = vst [vmem:[%s13633_s9 + $0xd8] sm:$0xff] %v7794_v40  ;;  %v7749_v60 = vadd.f32 %v13617_v51, %v7733_v9  ;;  %v7734_v19 = vmul.f32 %v10629_v27, %v13612_v35  ;;  %v7691_v55 = vpop.f32.mrb[31].mxu1 }
 0x46d   : > { %7808 = vst [vmem:[%s13633_s9 + $0xc8] sm:$0xff] %v7792_v25  ;;  %v7747_v32 = vadd.f32 %v13617_v51, %v7731_v4  ;;  %v7732_v20 = vmul.f32 %v13612_v35, %v7691_v55 }
 0x46e   : > { %v7781_v62 = vadd.f32 %v7765_v43, %v7749_v60  ;;  %v7750_v22 = vadd.f32 %v13617_v51, %v7734_v19 }
 0x46f   : > { %v7779_v29 = vadd.f32 %v7763_v7, %v7747_v32  ;;  %v7748_v23 = vadd.f32 %v13617_v51, %v7732_v20 }
 0x470   : > { %v7797_v33 = vmax.f32 %v7781_v62, 0.0  ;;  %v7782_v54 = vadd.f32 %v7766_v1, %v7750_v22 }
 0x471   : > { %v7795_v18 = vmax.f32 %v7779_v29, 0.0  ;;  %v7780_v14 = vadd.f32 %v7764_v5, %v7748_v23 }
 0x472   : > { %7813 = vst [vmem:[%s13633_s9 + $0xf0] sm:$0xff] %v7797_v33  ;;  %v7798_v35 = vmax.f32 %v7782_v54, 0.0 }
 0x473   : > { %7811 = vst [vmem:[%s13633_s9 + $0xe0] sm:$0xff] %v7795_v18  ;;  %v7796_v51 = vmax.f32 %v7780_v14, 0.0 }
 0x474   : > { %7814 = vst [vmem:[%s13633_s9 + $0xf8] sm:$0xff] %v7798_v35 }
 0x475   : > { %7812 = vst [vmem:[%s13633_s9 + $0xe8] sm:$0xff] %v7796_v51 }
 0x476   : > { %11571 = shalt.err (!%p11568_p7)
}
 0x477   : > { %s11572_s8 = scalar_lea.hbm %s13753_s6, 4096  ;;  %s11576_s14 = scalar_lea.hbm %s13806_s4, 8192 }
 0x478   : > { %p11573_p9 = scmp.ne.s32.totalorder %s13753_s6, %s11572_s8  ;;  %p11577_p5 = scmp.lt.u32.totalorder %s13753_s6, %s13806_s4 }
 0x479   : > { %p11578_p11 = scmp.lt.u32.totalorder %s11576_s14, %s11572_s8  ;;  %p11580_p4 = scmp.lt.u32.totalorder %s11572_s8, %s13753_s6 }
 0x47a   : > { %p11574_p2 = pnand %p11573_p9, %p11758_p12 }
 0x47b   : > { %p11579_p1 = por %p11578_p11, %p11577_p5 }
 0x47c   : > { %p11575_p0 = pneg %p11574_p2 }
 0x47d   : > { %p11581_p6 = por %p11580_p4, %p11579_p1 }
 0x47f   : > { %p11582_p8 = pnand %p11581_p6, %p11575_p0 }
 0x481   : > { %11585 = shalt.err (!%p11582_p8)
}
 0x482   : > { %s11640_s9 = smov 128   ;;  %s11641_s13 = smov 8  }
 0x483   : > { %11148 = dma.vmem_to_hbm [thread:$0]  (%p11758_p12), %s13755_s28, 4096, %s13753_s6, %s7816_s19, %s11640_s9, %s11640_s9, %s11641_s13  }
 0x484 PF: > { %s7844_s29 = sand.u32 1, %s11616_s15   ;;  %p13936_p10 = scmp.ne.s32.totalorder %s13829_s22, 0 }
 0x485   : > { %p13937_p13 = scmp.ge.s32.totalorder %s11628_s18, 2  ;;  %s7845_s10 = scalar_lea.sflag [#allocation6], %s7844_s29 }
 0x487   : > { %p11159_p3 = pnand %p13937_p13, %p13936_p10 }
 0x489   : > { %11611 = dma.done.wait (!%p11159_p3), %s7845_s10, 4096  }
 0x48a   : > { %11613 = vsyncadd (!%p11159_p3), %s7845_s10, 4294963200  ;;  %p18_p7 = scmp.ge.s32.totalorder %s11723_s27, 4   ;;  %s13938_s15 = smov %s11620_s16 }
 0x48b   : > { %s13939_s16 = smov %s11624_s17  ;;  %s13940_s17 = smov %s11754_s24 }
 0x48c   : > { %s13941_s18 = smov %s11723_s27  ;;  %20 = sbr.rel (!%p18_p7) target bundleno = 6 (0x6), region = 101 }
 0x493   :  { %7850 = vsyncpa [#allocation5], 1 }
 0x494   :  { %7852 = vsyncpa [#allocation5 + $0x1], 1 }
 0x495   :  { %7853 = vsyncpa [#allocation8], 1 }
 0x496   :  { %7854 = vsyncpa [#allocation6], 1 }
 0x497   :  { %7856 = vsyncpa [#allocation6 + $0x1], 1 }

</bundles_post_ra>
